<compile_context>
chip_gen: v5e
topology: v5e:2x2
jax: 0.10.0
libtpu: 0.0.40
codegen_flags: <defaults>
</compile_context>

<pallas_src>
import jax
import jax.numpy as jnp
import numpy as np
from jax.experimental import pallas as pl
from jax.experimental.pallas import tpu as pltpu


def _basic_block_kernel(x_ref, w1_ref, b1_ref, w2_ref, b2_ref, out_ref,
                        xpad_scr, y1pad_scr):
    _, H, W, C = out_ref.shape
    HW = H * W

    # Keep the 1-wide halo of both padded scratch buffers at zero. Only thin border
    # strips are written (the interiors are fully overwritten every grid step), so
    # there is no full-scratch memset, and this stays correct even when the
    # "parallel" batch axis is partitioned across TensorCores.
    zrow = jnp.zeros((1, W + 2, C), xpad_scr.dtype)
    zcol = jnp.zeros((H + 2, 1, C), xpad_scr.dtype)
    for scr in (xpad_scr, y1pad_scr):
        scr[0:1, :, :] = zrow
        scr[H + 1:H + 2, :, :] = zrow
        scr[:, 0:1, :] = zcol
        scr[:, W + 1:W + 2, :] = zcol

    x_f32 = x_ref[0].astype(jnp.float32)                      # (H, W, C)
    xpad_scr[1:1 + H, 1:1 + W, :] = x_f32

    def conv3x3_bn_relu(pad_scr, w_ref, b_ref):
        # im2col: 9 shifted (HW, C) taps concatenated along channels -> (HW, 9C),
        # then ONE MXU matmul against the K-packed (9C, C) bf16 weights.
        taps = [pad_scr[dy:dy + H, dx:dx + W, :].reshape(HW, C)
                for dy in range(3) for dx in range(3)]
        patch = jnp.concatenate(taps, axis=1).astype(jnp.bfloat16)
        acc = jnp.dot(patch, w_ref[...], preferred_element_type=jnp.float32)
        return jnp.maximum(acc + b_ref[...], 0.0)              # bias + ReLU in f32

    # Stage 1: ConvBNLayer(3x3, pad=1, act='relu').
    y1 = conv3x3_bn_relu(xpad_scr, w1_ref, b1_ref)             # (HW, C) f32
    y1pad_scr[1:1 + H, 1:1 + W, :] = y1.reshape(H, W, C)

    # Stage 2: RepVggBlock, re-parameterized into a single 3x3 conv + ReLU.
    y2 = conv3x3_bn_relu(y1pad_scr, w2_ref, b2_ref)            # (HW, C) f32

    # Residual shortcut.
    out_ref[0] = (x_f32 + y2.reshape(H, W, C)).astype(out_ref.dtype)


def _fuse_conv_bn(w, gamma, beta, mean, var, eps=1e-5):
    # BatchNorm2d (eval mode) folded into the conv: per-out-channel scale + bias.
    scale = gamma / jnp.sqrt(var + eps)                        # (Cout,)
    w_f = w * scale[:, None, None, None]                       # (Cout, Cin, kh, kw)
    b_f = beta - mean * scale                                  # (Cout,)
    return w_f, b_f


def _pack_taps(w_oihw):
    # (Cout, Cin, 3, 3) -> (9*Cin, Cout); row block k = dy*3+dx holds tap (dy, dx),
    # matching the channel-concatenation order of the in-kernel im2col.
    cout, cin, kh, kw = w_oihw.shape
    return jnp.transpose(w_oihw, (2, 3, 1, 0)).reshape(kh * kw * cin, cout)


def basic_block_forward(x_nchw, params):
    x = jnp.transpose(x_nchw, (0, 2, 3, 1))                    # NHWC
    N, H, W, C = x.shape

    # Fold eval-mode BN into each conv.
    w1f, b1f = _fuse_conv_bn(params['w1'], *params['bn1'])
    w23f, b23f = _fuse_conv_bn(params['w2_3'], *params['bn2_3'])
    w21f, b21f = _fuse_conv_bn(params['w2_1'], *params['bn2_1'])

    # RepVGG re-parameterization: add the fused 1x1 branch into the center 3x3 tap.
    w2_eq = w23f.at[:, :, 1, 1].add(w21f[:, :, 0, 0])
    b2_eq = b23f + b21f

    w1p = _pack_taps(w1f).astype(jnp.bfloat16)                 # (9C, C)
    w2p = _pack_taps(w2_eq).astype(jnp.bfloat16)               # (9C, C)
    b1 = b1f.reshape(1, C).astype(jnp.float32)
    b2 = b2_eq.reshape(1, C).astype(jnp.float32)
    x_bf16 = x.astype(jnp.bfloat16)                            # halves input HBM bytes

    out = pl.pallas_call(
        _basic_block_kernel,
        out_shape=jax.ShapeDtypeStruct((N, H, W, C), jnp.float32),
        grid=(N,),
        in_specs=[
            pl.BlockSpec((1, H, W, C), lambda b: (b, 0, 0, 0)),
            pl.BlockSpec((9 * C, C), lambda b: (0, 0)),
            pl.BlockSpec((1, C), lambda b: (0, 0)),
            pl.BlockSpec((9 * C, C), lambda b: (0, 0)),
            pl.BlockSpec((1, C), lambda b: (0, 0)),
        ],
        out_specs=pl.BlockSpec((1, H, W, C), lambda b: (b, 0, 0, 0)),
        scratch_shapes=[
            pltpu.VMEM((H + 2, W + 2, C), jnp.float32),        # zero-padded x
            pltpu.VMEM((H + 2, W + 2, C), jnp.float32),        # zero-padded stage-1 out
        ],
        compiler_params=pltpu.CompilerParams(
            dimension_semantics=("parallel",)),
    )(x_bf16, w1p, b1, w2p, b2)

    return jnp.transpose(out, (0, 3, 1, 2))                    # back to NCHW


def init_params(key, C):
    ks = jax.random.split(key, 6)

    def bn(k):
        gamma = 1.0 + 0.1 * jax.random.normal(jax.random.fold_in(k, 0), (C,))
        beta = 0.1 * jax.random.normal(jax.random.fold_in(k, 1), (C,))
        mean = 0.1 * jax.random.normal(jax.random.fold_in(k, 2), (C,))
        var = jnp.abs(jax.random.normal(jax.random.fold_in(k, 3), (C,))) + 0.5
        return (gamma, beta, mean, var)

    return dict(
        w1=0.2 * jax.random.normal(ks[0], (C, C, 3, 3), jnp.float32),
        bn1=bn(ks[1]),
        w2_3=0.2 * jax.random.normal(ks[2], (C, C, 3, 3), jnp.float32),
        bn2_3=bn(ks[3]),
        w2_1=0.2 * jax.random.normal(ks[4], (C, C, 1, 1), jnp.float32),
        bn2_1=bn(ks[5]),
    )


def ref_forward(x, p, eps=1e-5):
    # Pure-JAX f32 reference matching the PyTorch forward (eval-mode BN).
    def convbn(z, w, bn, pad):
        gamma, beta, mean, var = bn
        y = jax.lax.conv_general_dilated(
            z, w, window_strides=(1, 1), padding=[(pad, pad), (pad, pad)],
            dimension_numbers=('NCHW', 'OIHW', 'NCHW'))
        scale = (gamma / jnp.sqrt(var + eps))[None, :, None, None]
        shift = (beta - mean * gamma / jnp.sqrt(var + eps))[None, :, None, None]
        return y * scale + shift

    y = jax.nn.relu(convbn(x, p['w1'], p['bn1'], 1))
    y2 = convbn(y, p['w2_3'], p['bn2_3'], 1) + convbn(y, p['w2_1'], p['bn2_1'], 0)
    y2 = jax.nn.relu(y2)
    return x + y2


if __name__ == "__main__":
    key = jax.random.PRNGKey(0)
    kx, kp = jax.random.split(key)
    N, C, H, W = 2, 4, 16, 16          # ch_in == ch_out (asserted by BasicBlock)
    x = jax.random.normal(kx, (N, C, H, W), jnp.float32)
    params = init_params(kp, C)

    out = jax.block_until_ready(basic_block_forward(x, params))
    ref = jax.block_until_ready(ref_forward(x, params))
    # Loose tolerance: the kernel uses bf16 MXU operands (f32 accumulation) while the
    # reference runs fully in f32.
    np.testing.assert_allclose(np.asarray(out), np.asarray(ref), rtol=5e-2, atol=1e-1)
    print("KERNEL_OK")
</pallas_src>

<mosaic_0001>
module attributes {stable_mosaic.version = 11 : i64} {
  func.func @_basic_block_kernel(%arg0: i32, %arg1: memref<1x16x16x4xbf16, #tpu.memory_space<vmem>>, %arg2: memref<36x4xbf16, #tpu.memory_space<vmem>>, %arg3: memref<1x4xf32, #tpu.memory_space<vmem>>, %arg4: memref<36x4xbf16, #tpu.memory_space<vmem>>, %arg5: memref<1x4xf32, #tpu.memory_space<vmem>>, %arg6: memref<1x16x16x4xf32, #tpu.memory_space<vmem>>, %arg7: memref<18x18x4xf32, #tpu.memory_space<vmem>>, %arg8: memref<18x18x4xf32, #tpu.memory_space<vmem>>) attributes {dimension_semantics = [#tpu.dimension_semantics<parallel>], iteration_bounds = array<i64: 2>, scalar_prefetch = 0 : i64, scratch_operands = 2 : i64, tpu.core_type = #tpu.core_type<tc>, window_params = [{transform_indices = @transform_0, window_bounds = array<i64: 1, 16, 16, 4>}, {pipeline_mode = #tpu.pipeline_mode<synchronous>, transform_indices = @transform_1, window_bounds = array<i64: 36, 4>}, {pipeline_mode = #tpu.pipeline_mode<synchronous>, transform_indices = @transform_2, window_bounds = array<i64: 1, 4>}, {pipeline_mode = #tpu.pipeline_mode<synchronous>, transform_indices = @transform_3, window_bounds = array<i64: 36, 4>}, {pipeline_mode = #tpu.pipeline_mode<synchronous>, transform_indices = @transform_4, window_bounds = array<i64: 1, 4>}, {transform_indices = @transform_5, window_bounds = array<i64: 1, 16, 16, 4>}]} {
    %cst = arith.constant 0.000000e+00 : f32
    %0 = vector.broadcast %cst : f32 to vector<1x18x4xf32>
    %cst_0 = arith.constant 0.000000e+00 : f32
    %1 = vector.broadcast %cst_0 : f32 to vector<18x1x4xf32>
    %c0 = arith.constant 0 : index
    %c0_1 = arith.constant 0 : index
    %c0_2 = arith.constant 0 : index
    %2 = vector.load %arg7[%c0, %c0_1, %c0_2] : memref<18x18x4xf32, #tpu.memory_space<vmem>>, vector<1x18x4xf32>
    tpu.vector_store %arg7[%c0, %c0_1, %c0_2], %0 {strides = array<i32>} : memref<18x18x4xf32, #tpu.memory_space<vmem>>, vector<1x18x4xf32>,
    %c17 = arith.constant 17 : index
    %c0_3 = arith.constant 0 : index
    %c0_4 = arith.constant 0 : index
    %3 = vector.load %arg7[%c17, %c0_3, %c0_4] : memref<18x18x4xf32, #tpu.memory_space<vmem>>, vector<1x18x4xf32>
    tpu.vector_store %arg7[%c17, %c0_3, %c0_4], %0 {strides = array<i32>} : memref<18x18x4xf32, #tpu.memory_space<vmem>>, vector<1x18x4xf32>,
    %c0_5 = arith.constant 0 : index
    %c0_6 = arith.constant 0 : index
    %c0_7 = arith.constant 0 : index
    %4 = vector.load %arg7[%c0_5, %c0_6, %c0_7] : memref<18x18x4xf32, #tpu.memory_space<vmem>>, vector<18x1x4xf32>
    tpu.vector_store %arg7[%c0_5, %c0_6, %c0_7], %1 {strides = array<i32>} : memref<18x18x4xf32, #tpu.memory_space<vmem>>, vector<18x1x4xf32>,
    %c0_8 = arith.constant 0 : index
    %c17_9 = arith.constant 17 : index
    %c0_10 = arith.constant 0 : index
    %5 = vector.load %arg7[%c0_8, %c17_9, %c0_10] : memref<18x18x4xf32, #tpu.memory_space<vmem>>, vector<18x1x4xf32>
    tpu.vector_store %arg7[%c0_8, %c17_9, %c0_10], %1 {strides = array<i32>} : memref<18x18x4xf32, #tpu.memory_space<vmem>>, vector<18x1x4xf32>,
    %c0_11 = arith.constant 0 : index
    %c0_12 = arith.constant 0 : index
    %c0_13 = arith.constant 0 : index
    %6 = vector.load %arg8[%c0_11, %c0_12, %c0_13] : memref<18x18x4xf32, #tpu.memory_space<vmem>>, vector<1x18x4xf32>
    tpu.vector_store %arg8[%c0_11, %c0_12, %c0_13], %0 {strides = array<i32>} : memref<18x18x4xf32, #tpu.memory_space<vmem>>, vector<1x18x4xf32>,
    %c17_14 = arith.constant 17 : index
    %c0_15 = arith.constant 0 : index
    %c0_16 = arith.constant 0 : index
    %7 = vector.load %arg8[%c17_14, %c0_15, %c0_16] : memref<18x18x4xf32, #tpu.memory_space<vmem>>, vector<1x18x4xf32>
    tpu.vector_store %arg8[%c17_14, %c0_15, %c0_16], %0 {strides = array<i32>} : memref<18x18x4xf32, #tpu.memory_space<vmem>>, vector<1x18x4xf32>,
    %c0_17 = arith.constant 0 : index
    %c0_18 = arith.constant 0 : index
    %c0_19 = arith.constant 0 : index
    %8 = vector.load %arg8[%c0_17, %c0_18, %c0_19] : memref<18x18x4xf32, #tpu.memory_space<vmem>>, vector<18x1x4xf32>
    tpu.vector_store %arg8[%c0_17, %c0_18, %c0_19], %1 {strides = array<i32>} : memref<18x18x4xf32, #tpu.memory_space<vmem>>, vector<18x1x4xf32>,
    %c0_20 = arith.constant 0 : index
    %c17_21 = arith.constant 17 : index
    %c0_22 = arith.constant 0 : index
    %9 = vector.load %arg8[%c0_20, %c17_21, %c0_22] : memref<18x18x4xf32, #tpu.memory_space<vmem>>, vector<18x1x4xf32>
    tpu.vector_store %arg8[%c0_20, %c17_21, %c0_22], %1 {strides = array<i32>} : memref<18x18x4xf32, #tpu.memory_space<vmem>>, vector<18x1x4xf32>,
    %c0_23 = arith.constant 0 : index
    %c0_24 = arith.constant 0 : index
    %c0_25 = arith.constant 0 : index
    %c0_26 = arith.constant 0 : index
    %10 = vector.load %arg1[%c0_23, %c0_24, %c0_25, %c0_26] : memref<1x16x16x4xbf16, #tpu.memory_space<vmem>>, vector<1x16x16x4xbf16>
    %11 = vector.shape_cast %10 : vector<1x16x16x4xbf16> to vector<16x16x4xbf16>
    %12 = arith.extf %11 : vector<16x16x4xbf16> to vector<16x16x4xf32>
    %c1 = arith.constant 1 : index
    %c1_27 = arith.constant 1 : index
    %c0_28 = arith.constant 0 : index
    %13 = vector.load %arg7[%c1, %c1_27, %c0_28] : memref<18x18x4xf32, #tpu.memory_space<vmem>>, vector<16x16x4xf32>
    tpu.vector_store %arg7[%c1, %c1_27, %c0_28], %12 {strides = array<i32>} : memref<18x18x4xf32, #tpu.memory_space<vmem>>, vector<16x16x4xf32>,
    %c0_29 = arith.constant 0 : index
    %c0_30 = arith.constant 0 : index
    %c0_31 = arith.constant 0 : index
    %14 = vector.load %arg7[%c0_29, %c0_30, %c0_31] : memref<18x18x4xf32, #tpu.memory_space<vmem>>, vector<16x16x4xf32>
    %15 = vector.shape_cast %14 : vector<16x16x4xf32> to vector<256x4xf32>
    %c0_32 = arith.constant 0 : index
    %c1_33 = arith.constant 1 : index
    %c0_34 = arith.constant 0 : index
    %16 = vector.load %arg7[%c0_32, %c1_33, %c0_34] : memref<18x18x4xf32, #tpu.memory_space<vmem>>, vector<16x16x4xf32>
    %17 = vector.shape_cast %16 : vector<16x16x4xf32> to vector<256x4xf32>
    %c0_35 = arith.constant 0 : index
    %c2 = arith.constant 2 : index
    %c0_36 = arith.constant 0 : index
    %18 = vector.load %arg7[%c0_35, %c2, %c0_36] : memref<18x18x4xf32, #tpu.memory_space<vmem>>, vector<16x16x4xf32>
    %19 = vector.shape_cast %18 : vector<16x16x4xf32> to vector<256x4xf32>
    %c1_37 = arith.constant 1 : index
    %c0_38 = arith.constant 0 : index
    %c0_39 = arith.constant 0 : index
    %20 = vector.load %arg7[%c1_37, %c0_38, %c0_39] : memref<18x18x4xf32, #tpu.memory_space<vmem>>, vector<16x16x4xf32>
    %21 = vector.shape_cast %20 : vector<16x16x4xf32> to vector<256x4xf32>
    %c1_40 = arith.constant 1 : index
    %c1_41 = arith.constant 1 : index
    %c0_42 = arith.constant 0 : index
    %22 = vector.load %arg7[%c1_40, %c1_41, %c0_42] : memref<18x18x4xf32, #tpu.memory_space<vmem>>, vector<16x16x4xf32>
    %23 = vector.shape_cast %22 : vector<16x16x4xf32> to vector<256x4xf32>
    %c1_43 = arith.constant 1 : index
    %c2_44 = arith.constant 2 : index
    %c0_45 = arith.constant 0 : index
    %24 = vector.load %arg7[%c1_43, %c2_44, %c0_45] : memref<18x18x4xf32, #tpu.memory_space<vmem>>, vector<16x16x4xf32>
    %25 = vector.shape_cast %24 : vector<16x16x4xf32> to vector<256x4xf32>
    %c2_46 = arith.constant 2 : index
    %c0_47 = arith.constant 0 : index
    %c0_48 = arith.constant 0 : index
    %26 = vector.load %arg7[%c2_46, %c0_47, %c0_48] : memref<18x18x4xf32, #tpu.memory_space<vmem>>, vector<16x16x4xf32>
    %27 = vector.shape_cast %26 : vector<16x16x4xf32> to vector<256x4xf32>
    %c2_49 = arith.constant 2 : index
    %c1_50 = arith.constant 1 : index
    %c0_51 = arith.constant 0 : index
    %28 = vector.load %arg7[%c2_49, %c1_50, %c0_51] : memref<18x18x4xf32, #tpu.memory_space<vmem>>, vector<16x16x4xf32>
    %29 = vector.shape_cast %28 : vector<16x16x4xf32> to vector<256x4xf32>
    %c2_52 = arith.constant 2 : index
    %c2_53 = arith.constant 2 : index
    %c0_54 = arith.constant 0 : index
    %30 = vector.load %arg7[%c2_52, %c2_53, %c0_54] : memref<18x18x4xf32, #tpu.memory_space<vmem>>, vector<16x16x4xf32>
    %31 = vector.shape_cast %30 : vector<16x16x4xf32> to vector<256x4xf32>
    %32 = tpu.concatenate %15, %17, %19, %21, %23, %25, %27, %29, %31 in 1 : vector<256x4xf32>, vector<256x4xf32>, vector<256x4xf32>, vector<256x4xf32>, vector<256x4xf32>, vector<256x4xf32>, vector<256x4xf32>, vector<256x4xf32>, vector<256x4xf32> -> vector<256x36xf32>
    %33 = arith.truncf %32 : vector<256x36xf32> to vector<256x36xbf16>
    %c0_55 = arith.constant 0 : index
    %c0_56 = arith.constant 0 : index
    %34 = vector.load %arg2[%c0_55, %c0_56] : memref<36x4xbf16, #tpu.memory_space<vmem>>, vector<36x4xbf16>
    %cst_57 = arith.constant dense<0.000000e+00> : vector<256x4xf32>
    %35 = tpu.matmul %33, %34, %cst_57 {dimension_numbers = #tpu.dot_dimension_numbers<[1], [0], [0], [1], [0, 0, 1, 1], [], []>} : vector<256x36xbf16>, vector<36x4xbf16>, vector<256x4xf32> -> vector<256x4xf32>
    %c0_58 = arith.constant 0 : index
    %c0_59 = arith.constant 0 : index
    %36 = vector.load %arg3[%c0_58, %c0_59] : memref<1x4xf32, #tpu.memory_space<vmem>>, vector<1x4xf32>
    %37 = vector.broadcast %36 : vector<1x4xf32> to vector<256x4xf32>
    %38 = arith.addf %35, %37 : vector<256x4xf32>
    %cst_60 = arith.constant 0.000000e+00 : f32
    %39 = vector.broadcast %cst_60 : f32 to vector<256x4xf32>
    %40 = arith.maximumf %38, %39 : vector<256x4xf32>
    %41 = vector.shape_cast %40 : vector<256x4xf32> to vector<16x16x4xf32>
    %c1_61 = arith.constant 1 : index
    %c1_62 = arith.constant 1 : index
    %c0_63 = arith.constant 0 : index
    %42 = vector.load %arg8[%c1_61, %c1_62, %c0_63] : memref<18x18x4xf32, #tpu.memory_space<vmem>>, vector<16x16x4xf32>
    tpu.vector_store %arg8[%c1_61, %c1_62, %c0_63], %41 {strides = array<i32>} : memref<18x18x4xf32, #tpu.memory_space<vmem>>, vector<16x16x4xf32>,
    %c0_64 = arith.constant 0 : index
    %c0_65 = arith.constant 0 : index
    %c0_66 = arith.constant 0 : index
    %43 = vector.load %arg8[%c0_64, %c0_65, %c0_66] : memref<18x18x4xf32, #tpu.memory_space<vmem>>, vector<16x16x4xf32>
    %44 = vector.shape_cast %43 : vector<16x16x4xf32> to vector<256x4xf32>
    %c0_67 = arith.constant 0 : index
    %c1_68 = arith.constant 1 : index
    %c0_69 = arith.constant 0 : index
    %45 = vector.load %arg8[%c0_67, %c1_68, %c0_69] : memref<18x18x4xf32, #tpu.memory_space<vmem>>, vector<16x16x4xf32>
    %46 = vector.shape_cast %45 : vector<16x16x4xf32> to vector<256x4xf32>
    %c0_70 = arith.constant 0 : index
    %c2_71 = arith.constant 2 : index
    %c0_72 = arith.constant 0 : index
    %47 = vector.load %arg8[%c0_70, %c2_71, %c0_72] : memref<18x18x4xf32, #tpu.memory_space<vmem>>, vector<16x16x4xf32>
    %48 = vector.shape_cast %47 : vector<16x16x4xf32> to vector<256x4xf32>
    %c1_73 = arith.constant 1 : index
    %c0_74 = arith.constant 0 : index
    %c0_75 = arith.constant 0 : index
    %49 = vector.load %arg8[%c1_73, %c0_74, %c0_75] : memref<18x18x4xf32, #tpu.memory_space<vmem>>, vector<16x16x4xf32>
    %50 = vector.shape_cast %49 : vector<16x16x4xf32> to vector<256x4xf32>
    %c1_76 = arith.constant 1 : index
    %c1_77 = arith.constant 1 : index
    %c0_78 = arith.constant 0 : index
    %51 = vector.load %arg8[%c1_76, %c1_77, %c0_78] : memref<18x18x4xf32, #tpu.memory_space<vmem>>, vector<16x16x4xf32>
    %52 = vector.shape_cast %51 : vector<16x16x4xf32> to vector<256x4xf32>
    %c1_79 = arith.constant 1 : index
    %c2_80 = arith.constant 2 : index
    %c0_81 = arith.constant 0 : index
    %53 = vector.load %arg8[%c1_79, %c2_80, %c0_81] : memref<18x18x4xf32, #tpu.memory_space<vmem>>, vector<16x16x4xf32>
    %54 = vector.shape_cast %53 : vector<16x16x4xf32> to vector<256x4xf32>
    %c2_82 = arith.constant 2 : index
    %c0_83 = arith.constant 0 : index
    %c0_84 = arith.constant 0 : index
    %55 = vector.load %arg8[%c2_82, %c0_83, %c0_84] : memref<18x18x4xf32, #tpu.memory_space<vmem>>, vector<16x16x4xf32>
    %56 = vector.shape_cast %55 : vector<16x16x4xf32> to vector<256x4xf32>
    %c2_85 = arith.constant 2 : index
    %c1_86 = arith.constant 1 : index
    %c0_87 = arith.constant 0 : index
    %57 = vector.load %arg8[%c2_85, %c1_86, %c0_87] : memref<18x18x4xf32, #tpu.memory_space<vmem>>, vector<16x16x4xf32>
    %58 = vector.shape_cast %57 : vector<16x16x4xf32> to vector<256x4xf32>
    %c2_88 = arith.constant 2 : index
    %c2_89 = arith.constant 2 : index
    %c0_90 = arith.constant 0 : index
    %59 = vector.load %arg8[%c2_88, %c2_89, %c0_90] : memref<18x18x4xf32, #tpu.memory_space<vmem>>, vector<16x16x4xf32>
    %60 = vector.shape_cast %59 : vector<16x16x4xf32> to vector<256x4xf32>
    %61 = tpu.concatenate %44, %46, %48, %50, %52, %54, %56, %58, %60 in 1 : vector<256x4xf32>, vector<256x4xf32>, vector<256x4xf32>, vector<256x4xf32>, vector<256x4xf32>, vector<256x4xf32>, vector<256x4xf32>, vector<256x4xf32>, vector<256x4xf32> -> vector<256x36xf32>
    %62 = arith.truncf %61 : vector<256x36xf32> to vector<256x36xbf16>
    %c0_91 = arith.constant 0 : index
    %c0_92 = arith.constant 0 : index
    %63 = vector.load %arg4[%c0_91, %c0_92] : memref<36x4xbf16, #tpu.memory_space<vmem>>, vector<36x4xbf16>
    %cst_93 = arith.constant dense<0.000000e+00> : vector<256x4xf32>
    %64 = tpu.matmul %62, %63, %cst_93 {dimension_numbers = #tpu.dot_dimension_numbers<[1], [0], [0], [1], [0, 0, 1, 1], [], []>} : vector<256x36xbf16>, vector<36x4xbf16>, vector<256x4xf32> -> vector<256x4xf32>
    %c0_94 = arith.constant 0 : index
    %c0_95 = arith.constant 0 : index
    %65 = vector.load %arg5[%c0_94, %c0_95] : memref<1x4xf32, #tpu.memory_space<vmem>>, vector<1x4xf32>
    %66 = vector.broadcast %65 : vector<1x4xf32> to vector<256x4xf32>
    %67 = arith.addf %64, %66 : vector<256x4xf32>
    %cst_96 = arith.constant 0.000000e+00 : f32
    %68 = vector.broadcast %cst_96 : f32 to vector<256x4xf32>
    %69 = arith.maximumf %67, %68 : vector<256x4xf32>
    %70 = vector.shape_cast %69 : vector<256x4xf32> to vector<16x16x4xf32>
    %71 = arith.addf %12, %70 : vector<16x16x4xf32>
    %c0_97 = arith.constant 0 : index
    %c0_98 = arith.constant 0 : index
    %c0_99 = arith.constant 0 : index
    %c0_100 = arith.constant 0 : index
    %72 = vector.load %arg6[%c0_97, %c0_98, %c0_99, %c0_100] : memref<1x16x16x4xf32, #tpu.memory_space<vmem>>, vector<1x16x16x4xf32>
    %73 = vector.shape_cast %72 : vector<1x16x16x4xf32> to vector<16x16x4xf32>
    %74 = vector.shape_cast %71 : vector<16x16x4xf32> to vector<1x16x16x4xf32>
    tpu.vector_store %arg6[%c0_97, %c0_98, %c0_99, %c0_100], %74 {strides = array<i32>} : memref<1x16x16x4xf32, #tpu.memory_space<vmem>>, vector<1x16x16x4xf32>,
    return
  }
  func.func @transform_0(%arg0: i32) -> (i32, i32, i32, i32) {
    %c0_i32 = arith.constant 0 : i32
    %c0_i32_0 = arith.constant 0 : i32
    %c0_i32_1 = arith.constant 0 : i32
    %c0_i32_2 = arith.constant 0 : i32
    return %arg0, %c0_i32, %c0_i32_0, %c0_i32_1 : i32, i32, i32, i32
  }
  func.func @transform_1(%arg0: i32) -> (i32, i32) {
    %c0_i32 = arith.constant 0 : i32
    %c0_i32_0 = arith.constant 0 : i32
    %c0_i32_1 = arith.constant 0 : i32
    return %c0_i32, %c0_i32_0 : i32, i32
  }
  func.func @transform_2(%arg0: i32) -> (i32, i32) {
    %c0_i32 = arith.constant 0 : i32
    %c0_i32_0 = arith.constant 0 : i32
    %c0_i32_1 = arith.constant 0 : i32
    return %c0_i32, %c0_i32_0 : i32, i32
  }
  func.func @transform_3(%arg0: i32) -> (i32, i32) {
    %c0_i32 = arith.constant 0 : i32
    %c0_i32_0 = arith.constant 0 : i32
    %c0_i32_1 = arith.constant 0 : i32
    return %c0_i32, %c0_i32_0 : i32, i32
  }
  func.func @transform_4(%arg0: i32) -> (i32, i32) {
    %c0_i32 = arith.constant 0 : i32
    %c0_i32_0 = arith.constant 0 : i32
    %c0_i32_1 = arith.constant 0 : i32
    return %c0_i32, %c0_i32_0 : i32, i32
  }
  func.func @transform_5(%arg0: i32) -> (i32, i32, i32, i32) {
    %c0_i32 = arith.constant 0 : i32
    %c0_i32_0 = arith.constant 0 : i32
    %c0_i32_1 = arith.constant 0 : i32
    %c0_i32_2 = arith.constant 0 : i32
    return %arg0, %c0_i32, %c0_i32_0, %c0_i32_1 : i32, i32, i32, i32
  }
}

</mosaic_0001>

<bundles_post_ra>
// kernel: tpu_custom_call.1
= control target key start
LH: loop header
LB: loop body
LE: loop exit
PB: predicated region body
PF: predicated region fallthrough
CT: control target
= control target key end

     0   :  { %s5639_s18 = smov 0   ;;  %s8635_s0 = inlined_call_operand.vmem [shape: bf16[2,16,16,4], index: 0, kind: input, shape index: {}]   ;;  %s8636_s1 = inlined_call_operand.vmem [shape: bf16[36,4], index: 1, kind: input, shape index: {}]   ;;  %s8637_s2 = inlined_call_operand.vmem [shape: f32[1,4], index: 2, kind: input, shape index: {}]   ;;  %s8638_s3 = inlined_call_operand.vmem [shape: bf16[36,4], index: 3, kind: input, shape index: {}]   ;;  %s8639_s4 = inlined_call_operand.vmem [shape: f32[1,4], index: 4, kind: input, shape index: {}]   ;;  %s8640_s5 = inlined_call_operand.vmem [shape: f32[2,16,16,4], index: 5, kind: output, shape index: {}]  }
   0x1 LB: > { %s4135_s19 = sadd.s32 4294967295, %s5598_s18   ;;  %p4139_p0 = scmp.ge.s32.totalorder %s5598_s18, 1  ;;  %s5598_s18 = sphi %s5639_s18, %s15_s18  }
   0x2   : > { %p187_p1 = scmp.lt.s32.totalorder %s5598_s18, 3 }
   0x4   : > { %p188_p2 = pnand %p4139_p0, %p187_p1 }
   0x6   : > { %191 = sbr.rel (%p188_p2) target bundleno = 1353 (0x549), region = 40 }
   0xb   : > { %vm226_vm0 = vcmask 31744   ;;  %vm229_vm1 = vcmask 25600   ;;  %v5600_v0 = vmov 0.0   ;;  %vm235_vm2 = vcmask 24576   ;;  %s5601_s20 = smov 4   ;;  %p215_p3 = scmp.lt.s32.totalorder %s4135_s19, 1 }
   0xc   : > { %227 = vst.msk [vmem:[#allocation2] sm:$0xff] %vm226_vm0, %v5600_v0  ;;  %s5602_s25 = smov 8   ;;  %s5603_s26 = smov 12   ;;  %vm1757_vm3 = vcmask 64512   ;;  %vm1790_vm4 = vcmask 97280   ;;  %vm1823_vm5 = vcmask 130048  }
   0xd   : > { %228 = vst.msk [vmem:[#allocation2 + $0x8] sm:$0xff] %vm226_vm0, %v5600_v0  ;;  %s9080_s19 = smov (!%p215_p3, %s4135_s19), 1  ;;  %s5604_s27 = smov 16   ;;  %vm1856_vm6 = vcmask 162816   ;;  %vm2077_vm7 = vcmask 1041408   ;;  %vm1889_vm8 = vcmask 195584  }
   0xe   : > { %230 = vst.msk [vmem:[#allocation2 + $0x10] sm:$0x3] %vm229_vm1, %v5600_v0  ;;  %s4194_s21 = sshll.u32 %s9080_s19, 7  ;;  %s5605_s28 = smov 20   ;;  %vm1922_vm9 = vcmask 228352   ;;  %vm1955_vm10 = vcmask 261120  }
   0xf   : > { %254 = vst.msk [vmem:[#allocation2 + $0x11] sm:$0x1] %vm235_vm2, %v5600_v0  ;;  %s5796_s24 = scalar_lea.vmem %s8635_s0, %s4194_s21  ;;  %s5606_s29 = smov 24   ;;  %vm2028_vm11 = vcmask 293888  }
  0x10   : > { %236 = vst.msk [vmem:[#allocation2] sm:$0x1] %vm235_vm2, %v5600_v0  ;;  %v5805_v4 = vld [vmem:[%s5796_s24 + $0x18] sm:$0xff]   ;;  %v5828_v7 = vld [vmem:[%s5796_s24 + $0x8] sm:$0xff]   ;;  %v5835_v8 = vld [vmem:[%s5796_s24] sm:$0xff]   ;;  %s5607_s30 = smov 28  }
  0x11   : > { %232 = vst.msk [vmem:[#allocation2 + $0x198] sm:$0xff] %vm226_vm0, %v5600_v0  ;;  %v8657_v5 = vunpack.c.l.bf16 %v5805_v4  ;;  %v8655_v6 = vunpack.c.h.bf16 %v5805_v4  ;;  %v8665_v9 = vunpack.c.l.bf16 %v5828_v7  ;;  %v8663_v10 = vunpack.c.h.bf16 %v5828_v7  ;;  %v5844_v11 = vld [vmem:[%s5796_s24 + $0x20] sm:$0xff]   ;;  %v5853_v15 = vld [vmem:[%s5796_s24 + $0x10] sm:$0xff]   ;;  %v5866_v20 = vld [vmem:[%s5796_s24 + $0x28] sm:$0xff]   ;;  %s5608_s6 = smov 32  }
  0x12   : > { %233 = vst.msk [vmem:[#allocation2 + $0x1a0] sm:$0xff] %vm226_vm0, %v5600_v0  ;;  %v8670_v12 = vunpack.c.l.bf16 %v5835_v8  ;;  %v8667_v14 = vunpack.c.h.bf16 %v5835_v8  ;;  %v8653_v17 = vunpack.c.l.bf16 %v5844_v11  ;;  %v8651_v19 = vunpack.c.h.bf16 %v5844_v11  ;;  %v5879_v23 = vld [vmem:[%s5796_s24 + $0x38] sm:$0xff]   ;;  %v5890_v26 = vld [vmem:[%s5796_s24 + $0x30] sm:$0xff]   ;;  %v5901_v30 = vld [vmem:[%s5796_s24 + $0x40] sm:$0xff]  }
  0x13   : > { %234 = vst.msk [vmem:[#allocation2 + $0x1a8] sm:$0x3] %vm229_vm1, %v5600_v0  ;;  %v8661_v21 = vunpack.c.l.bf16 %v5853_v15  ;;  %v8659_v22 = vunpack.c.h.bf16 %v5853_v15  ;;  %v8649_v24 = vunpack.c.l.bf16 %v5866_v20  ;;  %v8647_v25 = vunpack.c.h.bf16 %v5866_v20  ;;  %v5914_v36 = vld [vmem:[%s5796_s24 + $0x50] sm:$0xff]   ;;  %v5929_v42 = vld [vmem:[%s5796_s24 + $0x48] sm:$0xff]   ;;  %v5944_v48 = vld [vmem:[%s5796_s24 + $0x58] sm:$0xff]  }
  0x14   : > { %v444_v1 = vld [vmem:[#allocation2 + $0x1] sm:$0xff]  ;;  %237 = vst.msk [vmem:[#allocation2 + $0x18] sm:$0x1] %vm235_vm2, %v5600_v0  ;;  %v8642_v27 = vunpack.c.l.bf16 %v5879_v23  ;;  %v8641_v29 = vunpack.c.h.bf16 %v5879_v23  ;;  %v8645_v32 = vunpack.c.l.bf16 %v5890_v26  ;;  %v8643_v35 = vunpack.c.h.bf16 %v5890_v26 }
  0x15   : > { %v445_v2 = vld [vmem:[#allocation2 + $0x9] sm:$0xff]  ;;  %238 = vst.msk [vmem:[#allocation2 + $0x30] sm:$0x1] %vm235_vm2, %v5600_v0  ;;  %v8672_v38 = vunpack.c.l.bf16 %v5901_v30  ;;  %v8669_v41 = vunpack.c.h.bf16 %v5901_v30  ;;  %v8662_v44 = vunpack.c.l.bf16 %v5914_v36  ;;  %v8660_v47 = vunpack.c.h.bf16 %v5914_v36  ;;  %v5972_v60 = vld [vmem:[%s5796_s24 + $0x60] sm:$0xff]  }
  0x16   : > { %v4302_v3 = vpack.i.bf16 %v445_v2, %v444_v1  ;;  %239 = vst.msk [vmem:[#allocation2 + $0x48] sm:$0x1] %vm235_vm2, %v5600_v0  ;;  %v8666_v50 = vunpack.c.l.bf16 %v5929_v42  ;;  %v8664_v53 = vunpack.c.h.bf16 %v5929_v42  ;;  %v5959_v54 = vld [vmem:[%s5796_s24 + $0x68] sm:$0xff]   ;;  %v8658_v56 = vunpack.c.l.bf16 %v5944_v48  ;;  %v5987_v1 = vld [vmem:[%s5796_s24 + $0x70] sm:$0xff]  }
  0x17   : > { %240 = vst.msk [vmem:[#allocation2 + $0x60] sm:$0x1] %vm235_vm2, %v5600_v0  ;;  %v8656_v59 = vunpack.c.h.bf16 %v5944_v48  ;;  %v8650_v62 = vunpack.c.l.bf16 %v5959_v54 }
  0x18   : > { %4303 = vrot.lane.b32.xlu0 %v4302_v3, %s5601_s20  ;;  %241 = vst.msk [vmem:[#allocation2 + $0x78] sm:$0x1] %vm235_vm2, %v5600_v0 }
  0x19   : > { %242 = vst.msk [vmem:[#allocation2 + $0x90] sm:$0x1] %vm235_vm2, %v5600_v0 }
  0x1a   : > { %243 = vst.msk [vmem:[#allocation2 + $0xa8] sm:$0x1] %vm235_vm2, %v5600_v0 }
  0x1b   : > { %244 = vst.msk [vmem:[#allocation2 + $0xc0] sm:$0x1] %vm235_vm2, %v5600_v0 }
  0x1c   : > { %245 = vst.msk [vmem:[#allocation2 + $0xd8] sm:$0x1] %vm235_vm2, %v5600_v0 }
  0x1d   : > { %246 = vst.msk [vmem:[#allocation2 + $0xf0] sm:$0x1] %vm235_vm2, %v5600_v0 }
  0x1e   : > { %247 = vst.msk [vmem:[#allocation2 + $0x108] sm:$0x1] %vm235_vm2, %v5600_v0 }
  0x1f   : > { %248 = vst.msk [vmem:[#allocation2 + $0x120] sm:$0x1] %vm235_vm2, %v5600_v0 }
  0x20   : > { %249 = vst.msk [vmem:[#allocation2 + $0x138] sm:$0x1] %vm235_vm2, %v5600_v0 }
  0x21   : > { %250 = vst.msk [vmem:[#allocation2 + $0x150] sm:$0x1] %vm235_vm2, %v5600_v0 }
  0x22   : > { %251 = vst.msk [vmem:[#allocation2 + $0x168] sm:$0x1] %vm235_vm2, %v5600_v0 }
  0x23   : > { %252 = vst.msk [vmem:[#allocation2 + $0x180] sm:$0x1] %vm235_vm2, %v5600_v0 }
  0x24   : > { %255 = vst.msk [vmem:[#allocation2 + $0x29] sm:$0x1] %vm235_vm2, %v5600_v0 }
  0x25   : > { %256 = vst.msk [vmem:[#allocation2 + $0x41] sm:$0x1] %vm235_vm2, %v5600_v0 }
  0x26   : > { %257 = vst.msk [vmem:[#allocation2 + $0x59] sm:$0x1] %vm235_vm2, %v5600_v0 }
  0x27   : > { %258 = vst.msk [vmem:[#allocation2 + $0x71] sm:$0x1] %vm235_vm2, %v5600_v0 }
  0x28   : > { %259 = vst.msk [vmem:[#allocation2 + $0x89] sm:$0x1] %vm235_vm2, %v5600_v0 }
  0x29   : > { %260 = vst.msk [vmem:[#allocation2 + $0xa1] sm:$0x1] %vm235_vm2, %v5600_v0 }
  0x2a   : > { %261 = vst.msk [vmem:[#allocation2 + $0xb9] sm:$0x1] %vm235_vm2, %v5600_v0 }
  0x2b   : > { %262 = vst.msk [vmem:[#allocation2 + $0xd1] sm:$0x1] %vm235_vm2, %v5600_v0 }
  0x2c   : > { %263 = vst.msk [vmem:[#allocation2 + $0xe9] sm:$0x1] %vm235_vm2, %v5600_v0 }
  0x2d   : > { %264 = vst.msk [vmem:[#allocation2 + $0x101] sm:$0x1] %vm235_vm2, %v5600_v0 }
  0x2e   : > { %265 = vst.msk [vmem:[#allocation2 + $0x119] sm:$0x1] %vm235_vm2, %v5600_v0 }
  0x2f   : > { %266 = vst.msk [vmem:[#allocation2 + $0x131] sm:$0x1] %vm235_vm2, %v5600_v0 }
  0x30   : > { %267 = vst.msk [vmem:[#allocation2 + $0x149] sm:$0x1] %vm235_vm2, %v5600_v0 }
  0x31   : > { %268 = vst.msk [vmem:[#allocation2 + $0x161] sm:$0x1] %vm235_vm2, %v5600_v0 }
  0x32   : > { %269 = vst.msk [vmem:[#allocation2 + $0x179] sm:$0x1] %vm235_vm2, %v5600_v0 }
  0x33   : > { %270 = vst.msk [vmem:[#allocation2 + $0x191] sm:$0x1] %vm235_vm2, %v5600_v0 }
  0x34   : > { %272 = vst.msk [vmem:[#allocation3] sm:$0xff] %vm226_vm0, %v5600_v0 }
  0x35   : > { %273 = vst.msk [vmem:[#allocation3 + $0x8] sm:$0xff] %vm226_vm0, %v5600_v0 }
  0x36   : > { %274 = vst.msk [vmem:[#allocation3 + $0x10] sm:$0x3] %vm229_vm1, %v5600_v0 }
  0x37   : > { %276 = vst.msk [vmem:[#allocation3 + $0x198] sm:$0xff] %vm226_vm0, %v5600_v0 }
  0x38   : > { %277 = vst.msk [vmem:[#allocation3 + $0x1a0] sm:$0xff] %vm226_vm0, %v5600_v0 }
  0x39   : > { %278 = vst.msk [vmem:[#allocation3 + $0x1a8] sm:$0x3] %vm229_vm1, %v5600_v0 }
  0x3a   : > { %280 = vst.msk [vmem:[#allocation3 + $0x18] sm:$0x1] %vm235_vm2, %v5600_v0 }
  0x3b   : > { %281 = vst.msk [vmem:[#allocation3 + $0x30] sm:$0x1] %vm235_vm2, %v5600_v0 }
  0x3c   : > { %282 = vst.msk [vmem:[#allocation3 + $0x48] sm:$0x1] %vm235_vm2, %v5600_v0 }
  0x3d   : > { %283 = vst.msk [vmem:[#allocation3 + $0x60] sm:$0x1] %vm235_vm2, %v5600_v0 }
  0x3e   : > { %284 = vst.msk [vmem:[#allocation3 + $0x78] sm:$0x1] %vm235_vm2, %v5600_v0 }
  0x3f   : > { %285 = vst.msk [vmem:[#allocation3 + $0x90] sm:$0x1] %vm235_vm2, %v5600_v0 }
  0x40   : > { %286 = vst.msk [vmem:[#allocation3 + $0xa8] sm:$0x1] %vm235_vm2, %v5600_v0 }
  0x41   : > { %287 = vst.msk [vmem:[#allocation3 + $0xc0] sm:$0x1] %vm235_vm2, %v5600_v0 }
  0x42   : > { %288 = vst.msk [vmem:[#allocation3 + $0xd8] sm:$0x1] %vm235_vm2, %v5600_v0 }
  0x43   : > { %289 = vst.msk [vmem:[#allocation3 + $0xf0] sm:$0x1] %vm235_vm2, %v5600_v0 }
  0x44   : > { %290 = vst.msk [vmem:[#allocation3 + $0x108] sm:$0x1] %vm235_vm2, %v5600_v0 }
  0x45   : > { %291 = vst.msk [vmem:[#allocation3 + $0x120] sm:$0x1] %vm235_vm2, %v5600_v0 }
  0x46   : > { %292 = vst.msk [vmem:[#allocation3 + $0x138] sm:$0x1] %vm235_vm2, %v5600_v0 }
  0x47   : > { %293 = vst.msk [vmem:[#allocation3 + $0x150] sm:$0x1] %vm235_vm2, %v5600_v0 }
  0x48   : > { %294 = vst.msk [vmem:[#allocation3 + $0x168] sm:$0x1] %vm235_vm2, %v5600_v0 }
  0x49   : > { %295 = vst.msk [vmem:[#allocation3 + $0x180] sm:$0x1] %vm235_vm2, %v5600_v0 }
  0x4a   : > { %298 = vst.msk [vmem:[#allocation3 + $0x29] sm:$0x1] %vm235_vm2, %v5600_v0 }
  0x4b   : > { %299 = vst.msk [vmem:[#allocation3 + $0x41] sm:$0x1] %vm235_vm2, %v5600_v0 }
  0x4c   : > { %300 = vst.msk [vmem:[#allocation3 + $0x59] sm:$0x1] %vm235_vm2, %v5600_v0 }
  0x4d   : > { %301 = vst.msk [vmem:[#allocation3 + $0x71] sm:$0x1] %vm235_vm2, %v5600_v0 }
  0x4e   : > { %302 = vst.msk [vmem:[#allocation3 + $0x89] sm:$0x1] %vm235_vm2, %v5600_v0 }
  0x4f   : > { %303 = vst.msk [vmem:[#allocation3 + $0xa1] sm:$0x1] %vm235_vm2, %v5600_v0 }
  0x50   : > { %304 = vst.msk [vmem:[#allocation3 + $0xb9] sm:$0x1] %vm235_vm2, %v5600_v0 }
  0x51   : > { %305 = vst.msk [vmem:[#allocation3 + $0xd1] sm:$0x1] %vm235_vm2, %v5600_v0 }
  0x52   : > { %306 = vst.msk [vmem:[#allocation3 + $0xe9] sm:$0x1] %vm235_vm2, %v5600_v0 }
  0x53   : > { %307 = vst.msk [vmem:[#allocation3 + $0x101] sm:$0x1] %vm235_vm2, %v5600_v0 }
  0x54   : > { %8807 = vst [vmem:[#allocation4_spill] sm:$0xff] %v5805_v4 }
  0x55   : > { %308 = vst.msk [vmem:[#allocation3 + $0x119] sm:$0x1] %vm235_vm2, %v5600_v0 }
  0x56   : > { %309 = vst.msk [vmem:[#allocation3 + $0x131] sm:$0x1] %vm235_vm2, %v5600_v0 }
  0x57   : > { %310 = vst.msk [vmem:[#allocation3 + $0x149] sm:$0x1] %vm235_vm2, %v5600_v0 }
  0x58   : > { %311 = vst.msk [vmem:[#allocation3 + $0x161] sm:$0x1] %vm235_vm2, %v5600_v0 }
  0x59   : > { %312 = vst.msk [vmem:[#allocation3 + $0x179] sm:$0x1] %vm235_vm2, %v5600_v0 }
  0x5a   : > { %313 = vst.msk [vmem:[#allocation3 + $0x191] sm:$0x1] %vm235_vm2, %v5600_v0 }
  0x5b   : > { %386 = vst.msk [vmem:[#allocation2 + $0x61] sm:$0xff] %vm226_vm0, %v8657_v5 }
  0x5c   : > { %387 = vst.msk [vmem:[#allocation2 + $0x69] sm:$0xff] %vm226_vm0, %v8655_v6 }
  0x5d   : > { %8808 = vst [vmem:[#allocation5_spill] sm:$0xff] %v5828_v7 }
  0x5e   : > { %253 = vst.msk [vmem:[#allocation2 + $0x198] sm:$0x1] %vm235_vm2, %v5600_v0 }
  0x5f   : > { %271 = vst.msk [vmem:[#allocation2 + $0x1a9] sm:$0x1] %vm235_vm2, %v5600_v0 }
  0x60   : > { %8809 = vst [vmem:[#allocation6_spill] sm:$0xff] %v5835_v8 }
  0x61   : > { %279 = vst.msk [vmem:[#allocation3] sm:$0x1] %vm235_vm2, %v5600_v0 }
  0x62   : > { %296 = vst.msk [vmem:[#allocation3 + $0x198] sm:$0x1] %vm235_vm2, %v5600_v0  ;;  %v452_v13 = vld [vmem:[#allocation2 + $0x61] sm:$0xff] }
  0x63   : > { %8810 = vst [vmem:[#allocation7_spill] sm:$0xff] %v5844_v11  ;;  %v453_v16 = vld [vmem:[#allocation2 + $0x69] sm:$0xff] }
  0x64   : > { %297 = vst.msk [vmem:[#allocation3 + $0x11] sm:$0x1] %vm235_vm2, %v5600_v0  ;;  %v5859_v18 = vpack.i.bf16 %v453_v16, %v452_v13  ;;  %v8654_v13 = vunpack.c.l.bf16 %v5972_v60  ;;  %v8652_v16 = vunpack.c.h.bf16 %v5972_v60 }
  0x65   : > { %314 = vst.msk [vmem:[#allocation3 + $0x1a9] sm:$0x1] %vm235_vm2, %v5600_v0  ;;  %v8648_v0 = vunpack.c.h.bf16 %v5959_v54 }
  0x66   : > { %8811 = vst [vmem:[#allocation8_spill] sm:$0xff] %v5853_v15  ;;  %4323 = vrot.lane.b32.xlu2 %v5859_v18, %s5601_s20 }
  0x67   : > { %382 = vst.msk [vmem:[#allocation2 + $0x31] sm:$0xff] %vm226_vm0, %v8665_v9 }
  0x68   : > { %383 = vst.msk [vmem:[#allocation2 + $0x39] sm:$0xff] %vm226_vm0, %v8663_v10 }
  0x69   : > { %8812 = vst [vmem:[#allocation9_spill] sm:$0xff] %v5866_v20 }
  0x6a   : > { %380 = vst.msk [vmem:[#allocation2 + $0x19] sm:$0xff] %vm226_vm0, %v8670_v12 }
  0x6b   : > { %381 = vst.msk [vmem:[#allocation2 + $0x21] sm:$0xff] %vm226_vm0, %v8667_v14 }
  0x6c   : > { %8813 = vst [vmem:[#allocation10_spill] sm:$0xff] %v5879_v23 }
  0x6d   : > { %388 = vst.msk [vmem:[#allocation2 + $0x79] sm:$0xff] %vm226_vm0, %v8653_v17 }
  0x6e   : > { %389 = vst.msk [vmem:[#allocation2 + $0x81] sm:$0xff] %vm226_vm0, %v8651_v19  ;;  %v448_v28 = vld [vmem:[#allocation2 + $0x31] sm:$0xff] }
  0x6f   : > { %8814 = vst [vmem:[#allocation11_spill] sm:$0xff] %v5890_v26  ;;  %v449_v31 = vld [vmem:[#allocation2 + $0x39] sm:$0xff] }
  0x70   : > { %384 = vst.msk [vmem:[#allocation2 + $0x49] sm:$0xff] %vm226_vm0, %v8661_v21  ;;  %v5907_v33 = vpack.i.bf16 %v449_v31, %v448_v28  ;;  %v6128_v21 = vld [vmem:[%s5796_s24 + $0x78] sm:$0xff]  }
  0x71   : > { %385 = vst.msk [vmem:[#allocation2 + $0x51] sm:$0xff] %vm226_vm0, %v8659_v22  ;;  %v446_v34 = vld [vmem:[#allocation2 + $0x19] sm:$0xff]  ;;  %v8668_v10 = vunpack.c.l.bf16 %v6128_v21 }
  0x72   : > { %8815 = vst [vmem:[#allocation12_spill] sm:$0xff] %v5901_v30  ;;  %v447_v37 = vld [vmem:[#allocation2 + $0x21] sm:$0xff]  ;;  %4313 = vrot.lane.b32.xlu1 %v5907_v33, %s5601_s20 }
  0x73   : > { %390 = vst.msk [vmem:[#allocation2 + $0x91] sm:$0xff] %vm226_vm0, %v8649_v24  ;;  %v5922_v39 = vpack.i.bf16 %v447_v37, %v446_v34  ;;  %v8646_v34 = vunpack.c.l.bf16 %v5987_v1 }
  0x74   : > { %391 = vst.msk [vmem:[#allocation2 + $0x99] sm:$0xff] %vm226_vm0, %v8647_v25  ;;  %v454_v40 = vld [vmem:[#allocation2 + $0x79] sm:$0xff] }
  0x75   : > { %8816 = vst [vmem:[#allocation13_spill] sm:$0xff] %v5914_v36  ;;  %v455_v43 = vld [vmem:[#allocation2 + $0x81] sm:$0xff]  ;;  %4308 = vrot.lane.b32.xlu0 %v5922_v39, %s5601_s20  ;;  %v6154_v9 = vld [vmem:[#allocation2 + $0x78] sm:$0xff] }
  0x76   : > { %394 = vst.msk [vmem:[#allocation2 + $0xc1] sm:$0xff] %vm226_vm0, %v8642_v27  ;;  %v5937_v45 = vpack.i.bf16 %v455_v43, %v454_v40  ;;  %v8644_v40 = vunpack.c.h.bf16 %v5987_v1  ;;  %v481_v25 = vld [vmem:[#allocation2 + $0x3a] sm:$0xff] }
  0x77   : > { %395 = vst.msk [vmem:[#allocation2 + $0xc9] sm:$0xff] %vm226_vm0, %v8641_v29  ;;  %v450_v46 = vld [vmem:[#allocation2 + $0x49] sm:$0xff]  ;;  %v486_v24 = vld [vmem:[#allocation2 + $0x7a] sm:$0xff] }
  0x78   : > { %8817 = vst [vmem:[#allocation14_spill] sm:$0xff] %v5929_v42  ;;  %v451_v49 = vld [vmem:[#allocation2 + $0x51] sm:$0xff]  ;;  %4328 = vrot.lane.b32.xlu2 %v5937_v45, %s5601_s20 }
  0x79   : > { %392 = vst.msk [vmem:[#allocation2 + $0xa9] sm:$0xff] %vm226_vm0, %v8645_v32  ;;  %v5952_v51 = vpack.i.bf16 %v451_v49, %v450_v46  ;;  %v477_v32 = vld [vmem:[#allocation2 + $0xa] sm:$0xff] }
  0x7a   : > { %393 = vst.msk [vmem:[#allocation2 + $0xb1] sm:$0xff] %vm226_vm0, %v8643_v35  ;;  %v456_v52 = vld [vmem:[#allocation2 + $0x91] sm:$0xff] }
  0x7b   : > { %8818 = vst [vmem:[#allocation15_spill] sm:$0xff] %v5944_v48  ;;  %v457_v55 = vld [vmem:[#allocation2 + $0x99] sm:$0xff]  ;;  %4318 = vrot.lane.b32.xlu1 %v5952_v51, %s5601_s20  ;;  %v518_v23 = vld [vmem:[#allocation2 + $0x90] sm:$0xff] }
  0x7c   : > { %396 = vst.msk [vmem:[#allocation2 + $0xd9] sm:$0xff] %vm226_vm0, %v8672_v38  ;;  %v5965_v57 = vpack.i.bf16 %v457_v55, %v456_v52 }
  0x7d   : > { %397 = vst.msk [vmem:[#allocation2 + $0xe1] sm:$0xff] %vm226_vm0, %v8669_v41  ;;  %v460_v58 = vld [vmem:[#allocation2 + $0xc1] sm:$0xff] }
  0x7e   : > { %8819 = vst [vmem:[#allocation16_spill] sm:$0xff] %v5959_v54  ;;  %v461_v61 = vld [vmem:[#allocation2 + $0xc9] sm:$0xff]  ;;  %4333 = vrot.lane.b32.xlu0 %v5965_v57, %s5601_s20  ;;  %v6176_v26 = vld [vmem:[#allocation2 + $0xc0] sm:$0xff] }
  0x7f   : > { %400 = vst.msk [vmem:[#allocation2 + $0x109] sm:$0xff] %vm226_vm0, %v8662_v44  ;;  %v5980_v63 = vpack.i.bf16 %v461_v61, %v460_v58 }
  0x80   : > { %401 = vst.msk [vmem:[#allocation2 + $0x111] sm:$0xff] %vm226_vm0, %v8660_v47  ;;  %v458_v2 = vld [vmem:[#allocation2 + $0xa9] sm:$0xff] }
  0x81   : > { %8820 = vst [vmem:[#allocation17_spill] sm:$0xff] %v5972_v60  ;;  %v459_v3 = vld [vmem:[#allocation2 + $0xb1] sm:$0xff]  ;;  %4343 = vrot.lane.b32.xlu2 %v5980_v63, %s5601_s20  ;;  %v520_v41 = vld [vmem:[#allocation2 + $0xa8] sm:$0xff] }
  0x82   : > { %398 = vst.msk [vmem:[#allocation2 + $0xf1] sm:$0xff] %vm226_vm0, %v8666_v50  ;;  %v6005_v37 = vpack.i.bf16 %v459_v3, %v458_v2  ;;  %v491_v19 = vld [vmem:[#allocation2 + $0xb2] sm:$0xff]  ;;  %v6156_v50 = vld [vmem:[#allocation2 + $0x80] sm:$0xff] }
  0x83   : > { %399 = vst.msk [vmem:[#allocation2 + $0xf9] sm:$0xff] %vm226_vm0, %v8664_v53  ;;  %v462_v28 = vld [vmem:[#allocation2 + $0xd9] sm:$0xff]  ;;  %v8671_v53 = vunpack.c.h.bf16 %v6128_v21  ;;  %v521_v12 = vld [vmem:[#allocation2 + $0xb0] sm:$0xff] }
  0x84   : > { %8821 = vst [vmem:[#allocation18_spill] sm:$0xff] %v5987_v1  ;;  %v463_v31 = vld [vmem:[#allocation2 + $0xe1] sm:$0xff]  ;;  %4338 = vrot.lane.b32.xlu1 %v6005_v37, %s5601_s20  ;;  %v6172_v38 = vpack.i.bf16 %v521_v12, %v520_v41 }
  0x85   : > { %402 = vst.msk [vmem:[#allocation2 + $0x121] sm:$0xff] %vm226_vm0, %v8658_v56  ;;  %v6014_v49 = vpack.i.bf16 %v463_v31, %v462_v28  ;;  %v495_v17 = vld [vmem:[#allocation2 + $0xe2] sm:$0xff] }
  0x86   : > { %403 = vst.msk [vmem:[#allocation2 + $0x129] sm:$0xff] %vm226_vm0, %v8656_v59  ;;  %v466_v43 = vld [vmem:[#allocation2 + $0x109] sm:$0xff]  ;;  %v6202_v60 = vld [vmem:[#allocation2 + $0xe0] sm:$0xff] }
  0x87   : > { %406 = vst.msk [vmem:[#allocation2 + $0x151] sm:$0xff] %vm226_vm0, %v8650_v62  ;;  %v467_v46 = vld [vmem:[#allocation2 + $0x111] sm:$0xff]  ;;  %4348 = vrot.lane.b32.xlu0 %v6014_v49, %s5601_s20  ;;  %v487_v62 = vld [vmem:[#allocation2 + $0x82] sm:$0xff] }
  0x88   : > { %407 = vst.msk [vmem:[#allocation2 + $0x159] sm:$0xff] %vm226_vm0, %v8648_v0  ;;  %v6024_v52 = vpack.i.bf16 %v467_v46, %v466_v43  ;;  %v6178_v1 = vld [vmem:[#allocation2 + $0xc8] sm:$0xff]  ;;  %v6208_v48 = vld [vmem:[#allocation2 + $0x110] sm:$0xff] }
  0x89   : > { %404 = vst.msk [vmem:[#allocation2 + $0x139] sm:$0xff] %vm226_vm0, %v8654_v13  ;;  %v464_v55 = vld [vmem:[#allocation2 + $0xf1] sm:$0xff]  ;;  %v6190_v12 = vpack.i.bf16 %v6178_v1, %v6176_v26  ;;  %v6206_v4 = vld [vmem:[#allocation2 + $0x108] sm:$0xff] }
  0x8a   : > { %405 = vst.msk [vmem:[#allocation2 + $0x141] sm:$0xff] %vm226_vm0, %v8652_v16  ;;  %v465_v58 = vld [vmem:[#allocation2 + $0xf9] sm:$0xff]  ;;  %4358 = vrot.lane.b32.xlu2 %v6024_v52, %s5601_s20  ;;  %v498_v13 = vld [vmem:[#allocation2 + $0x10a] sm:$0xff]  ;;  %v6218_v42 = vpack.i.bf16 %v6208_v48, %v6206_v4 }
  0x8b   : > { %408 = vst.msk [vmem:[#allocation2 + $0x169] sm:$0xff] %vm226_vm0, %v8646_v34  ;;  %v6033_v3 = vpack.i.bf16 %v465_v58, %v464_v55  ;;  %v478_v58 = vld [vmem:[#allocation2 + $0x1a] sm:$0xff]  ;;  %v480_v34 = vld [vmem:[#allocation2 + $0x32] sm:$0xff] }
  0x8c   : > { %409 = vst.msk [vmem:[#allocation2 + $0x171] sm:$0xff] %vm226_vm0, %v8644_v40  ;;  %v468_v61 = vld [vmem:[#allocation2 + $0x121] sm:$0xff]  ;;  %v496_v16 = vld [vmem:[#allocation2 + $0xf2] sm:$0xff] }
  0x8d   : > { %v469_v2 = vld [vmem:[#allocation2 + $0x129] sm:$0xff]  ;;  %4353 = vrot.lane.b32.xlu1 %v6033_v3, %s5601_s20  ;;  %8826 = vst [vmem:[#allocation23_spill] sm:$0xff] %v6128_v21  ;;  %v519_v21 = vld [vmem:[#allocation2 + $0x98] sm:$0xff] }
  0x8e   : > { %v472_v28 = vld [vmem:[#allocation2 + $0x151] sm:$0xff]  ;;  %v6035_v43 = vpack.i.bf16 %v469_v2, %v468_v61  ;;  %v479_v61 = vld [vmem:[#allocation2 + $0x22] sm:$0xff]  ;;  %410 = vst.msk [vmem:[#allocation2 + $0x181] sm:$0xff] %vm226_vm0, %v8668_v10  ;;  %v6180_v20 = vpack.i.bf16 %v519_v21, %v518_v23 }
  0x8f   : > { %v473_v31 = vld [vmem:[#allocation2 + $0x159] sm:$0xff]  ;;  %v501_v59 = vld [vmem:[#allocation2 + $0x12a] sm:$0xff]  ;;  %411 = vst.msk [vmem:[#allocation2 + $0x189] sm:$0xff] %vm226_vm0, %v8671_v53  ;;  %v6168_v53 = vpack.i.bf16 %v6156_v50, %v6154_v9 }
  0x90   : > { %v6039_v46 = vpack.i.bf16 %v473_v31, %v472_v28  ;;  %v470_v29 = vld [vmem:[#allocation2 + $0x139] sm:$0xff]  ;;  %4363 = vrot.lane.b32.xlu0 %v6035_v43, %s5601_s20  ;;  %v6051_v28 = vpack.i.bf16 %v479_v61, %v478_v58  ;;  %v476_v31 = vld [vmem:[#allocation2 + $0x2] sm:$0xff]  ;;  %v482_v58 = vld [vmem:[#allocation2 + $0x4a] sm:$0xff]  ;;  %8832 = vst [vmem:[#allocation29_spill] sm:$0xff] %v6202_v60 }
  0x91   : > { %v471_v27 = vld [vmem:[#allocation2 + $0x141] sm:$0xff]  ;;  %v4382_v0 = vpack.i.bf16 %v477_v32, %v476_v31  ;;  %v483_v61 = vld [vmem:[#allocation2 + $0x52] sm:$0xff]  ;;  %v490_v31 = vld [vmem:[#allocation2 + $0xaa] sm:$0xff]  ;;  %8833 = vst [vmem:[#allocation30_spill] sm:$0xff] %v6206_v4 }
  0x92   : > { %v474_v35 = vld [vmem:[#allocation2 + $0x169] sm:$0xff]  ;;  %4373 = vrot.lane.b32.xlu2 %v6039_v46, %s5601_s20  ;;  %v6045_v55 = vpack.i.bf16 %v471_v27, %v470_v29  ;;  %v6064_v32 = vpack.i.bf16 %v483_v61, %v482_v58  ;;  %v502_v6 = vld [vmem:[#allocation2 + $0x13a] sm:$0xff]  ;;  %v504_v5 = vld [vmem:[#allocation2 + $0x152] sm:$0xff]  ;;  %8834 = vst [vmem:[#allocation31_spill] sm:$0xff] %v6208_v48 }
  0x93   : > { %v475_v40 = vld [vmem:[#allocation2 + $0x171] sm:$0xff]  ;;  %v484_v27 = vld [vmem:[#allocation2 + $0x62] sm:$0xff] }
  0x94   : > { %v6047_v2 = vpack.i.bf16 %v475_v40, %v474_v35  ;;  %v485_v29 = vld [vmem:[#allocation2 + $0x6a] sm:$0xff]  ;;  %v6057_v35 = vpack.i.bf16 %v481_v25, %v480_v34  ;;  %v6068_v25 = vpack.i.bf16 %v487_v62, %v486_v24  ;;  %v488_v34 = vld [vmem:[#allocation2 + $0x92] sm:$0xff]  ;;  %v497_v24 = vld [vmem:[#allocation2 + $0xfa] sm:$0xff] }
  0x95   : > { %4368 = vrot.lane.b32.xlu1 %v6045_v55, %s5601_s20  ;;  %v6060_v40 = vpack.i.bf16 %v485_v29, %v484_v27  ;;  %v489_v27 = vld [vmem:[#allocation2 + $0x9a] sm:$0xff]  ;;  %v492_v29 = vld [vmem:[#allocation2 + $0xc2] sm:$0xff]  ;;  %v493_v58 = vld [vmem:[#allocation2 + $0xca] sm:$0xff] }
  0x96   : > { %v6076_v61 = vpack.i.bf16 %v489_v27, %v488_v34  ;;  %v6080_v62 = vpack.i.bf16 %v493_v58, %v492_v29  ;;  %v499_v34 = vld [vmem:[#allocation2 + $0x112] sm:$0xff]  ;;  %v503_v29 = vld [vmem:[#allocation2 + $0x142] sm:$0xff] }
  0x97   : > { %v6092_v58 = vpack.i.bf16 %v499_v34, %v498_v13  ;;  %v6104_v13 = vld [vmem:[#allocation2 + $0x18] sm:$0xff]  ;;  %v6106_v34 = vld [vmem:[#allocation2 + $0x20] sm:$0xff]  ;;  %v6184_v54 = vld [vmem:[#allocation2 + $0xf0] sm:$0xff] }
  0x98   : > { %4378 = vrot.lane.b32.xlu0 %v6047_v2, %s5601_s20  ;;  %8822 = vst [vmem:[#allocation19_spill] sm:$0xff] %v6104_v13  ;;  %v507_v22 = vld [vmem:[#allocation2 + $0x172] sm:$0xff]  ;;  %v533_v7 = vld [vmem:[#allocation2 + $0x140] sm:$0xff] }
  0x99   : > { %8823 = vst [vmem:[#allocation20_spill] sm:$0xff] %v6106_v34  ;;  %v6186_v11 = vld [vmem:[#allocation2 + $0xf8] sm:$0xff] }
  0x9a   : > { %4388 = vrot.lane.b32.xlu2 %v6051_v28, %s5602_s25  ;;  %8829 = vst [vmem:[#allocation26_spill] sm:$0xff] %v6184_v54  ;;  %v6198_v21 = vpack.i.bf16 %v6186_v11, %v6184_v54  ;;  %v6200_v23 = vld [vmem:[#allocation2 + $0xd8] sm:$0xff]  ;;  %v530_v54 = vld [vmem:[#allocation2 + $0x120] sm:$0xff] }
  0x9b   : > { %8830 = vst [vmem:[#allocation27_spill] sm:$0xff] %v6186_v11  ;;  %v6212_v15 = vpack.i.bf16 %v6202_v60, %v6200_v23  ;;  %v532_v36 = vld [vmem:[#allocation2 + $0x138] sm:$0xff]  ;;  %v531_v11 = vld [vmem:[#allocation2 + $0x128] sm:$0xff]  ;;  %v6230_v60 = vld [vmem:[#allocation2 + $0x150] sm:$0xff] }
  0x9c   : > { %8831 = vst [vmem:[#allocation28_spill] sm:$0xff] %v6200_v23  ;;  %v6224_v30 = vpack.i.bf16 %v533_v7, %v532_v36  ;;  %v6228_v23 = vpop.permute.xlu0 %4303 }
  0x9d   : > { %4383 = vrot.lane.b32.xlu1 %v4382_v0, %s5602_s25  ;;  %v6072_v0 = vpack.i.bf16 %v491_v19, %v490_v31  ;;  %v6084_v19 = vpack.i.bf16 %v497_v24, %v496_v16  ;;  %v494_v31 = vld [vmem:[#allocation2 + $0xda] sm:$0xff]  ;;  %v6096_v16 = vpack.i.bf16 %v503_v29, %v502_v6  ;;  %v500_v24 = vld [vmem:[#allocation2 + $0x122] sm:$0xff]  ;;  %v4462_v6 = vpack.i.bf16 %v6106_v34, %v6104_v13  ;;  %v506_v29 = vld [vmem:[#allocation2 + $0x16a] sm:$0xff] }
  0x9e   : > { %v6088_v27 = vpack.i.bf16 %v495_v17, %v494_v31  ;;  %v505_v17 = vld [vmem:[#allocation2 + $0x15a] sm:$0xff]  ;;  %v6100_v31 = vpack.i.bf16 %v501_v59, %v500_v24  ;;  %v6116_v59 = vld [vmem:[#allocation2 + $0x30] sm:$0xff]  ;;  %v6120_v47 = vpack.i.bf16 %v507_v22, %v506_v29  ;;  %8835 = vst [vmem:[#allocation32_spill] sm:$0xff] %v6230_v60  ;;  %v539_v13 = vld [vmem:[#allocation2 + $0x188] sm:$0xff] }
  0x9f   : > { %v6108_v56 = vpack.i.bf16 %v505_v17, %v504_v5  ;;  %8824 = vst [vmem:[#allocation21_spill] sm:$0xff] %v6116_v59  ;;  %v6118_v24 = vld [vmem:[#allocation2 + $0x38] sm:$0xff]  ;;  %v6123_v5 = vld [vmem:[#allocation2 + $0x60] sm:$0xff]  ;;  %v6125_v17 = vld [vmem:[#allocation2 + $0x68] sm:$0xff] }
  0xa0   : > { %4393 = vrot.lane.b32.xlu0 %v6057_v35, %s5602_s25  ;;  %8825 = vst [vmem:[#allocation22_spill] sm:$0xff] %v6118_v24  ;;  %v6132_v44 = vpack.i.bf16 %v6118_v24, %v6116_v59  ;;  %v6140_v22 = vpack.i.bf16 %v6125_v17, %v6123_v5  ;;  %v6147_v29 = vld [vmem:[#allocation2 + $0x50] sm:$0xff]  ;;  %v538_v34 = vld [vmem:[#allocation2 + $0x180] sm:$0xff]  ;;  %v6248_v59 = vld [vmem:[#allocation2 + $0x168] sm:$0xff] }
  0xa1   : > { %8828 = vst [vmem:[#allocation25_spill] sm:$0xff] %v6147_v29  ;;  %v6246_v24 = vpack.i.bf16 %v539_v13, %v538_v34 }
  0xa2   : > { %4403 = vrot.lane.b32.xlu2 %v6060_v40, %s5602_s25  ;;  %8837 = vst [vmem:[#allocation34_spill] sm:$0xff] %v6248_v59 }
  0xa5   : > { %4398 = vrot.lane.b32.xlu1 %v6064_v32, %s5602_s25 }
  0xa8   : > { %4408 = vrot.lane.b32.xlu0 %v6068_v25, %s5602_s25 }
  0xaa   : > { %4418 = vrot.lane.b32.xlu2 %v6072_v0, %s5602_s25 }
  0xad   : > { %4413 = vrot.lane.b32.xlu1 %v6076_v61, %s5602_s25 }
  0xb0   : > { %4423 = vrot.lane.b32.xlu0 %v6080_v62, %s5602_s25 }
  0xb2   : > { %4433 = vrot.lane.b32.xlu2 %v6084_v19, %s5602_s25 }
  0xb5   : > { %4428 = vrot.lane.b32.xlu1 %v6088_v27, %s5602_s25 }
  0xb8   : > { %4438 = vrot.lane.b32.xlu0 %v6092_v58, %s5602_s25 }
  0xba   : > { %4448 = vrot.lane.b32.xlu2 %v6096_v16, %s5602_s25 }
  0xbd   : > { %4443 = vrot.lane.b32.xlu1 %v6100_v31, %s5602_s25 }
  0xc0   : > { %4453 = vrot.lane.b32.xlu0 %v6108_v56, %s5602_s25  ;;  %v6164_v10 = vpop.permute.xlu2 %4323 }
  0xc2   : > { %4463 = vrot.lane.b32.xlu2 %v4462_v6, %s5603_s26  ;;  %v6145_v6 = vld [vmem:[#allocation2 + $0x48] sm:$0xff] }
  0xc3   : > { %8827 = vst [vmem:[#allocation24_spill] sm:$0xff] %v6145_v6  ;;  %v6160_v14 = vpack.i.bf16 %v6147_v29, %v6145_v6  ;;  %v6232_v6 = vld [vmem:[#allocation2 + $0x158] sm:$0xff]  ;;  %v6234_v29 = vpack.i.bf16 %v531_v11, %v530_v54  ;;  %v6250_v11 = vld [vmem:[#allocation2 + $0x170] sm:$0xff] }
  0xc4   : > { %8836 = vst [vmem:[#allocation33_spill] sm:$0xff] %v6232_v6  ;;  %v6240_v7 = vpack.i.bf16 %v6232_v6, %v6230_v60  ;;  %v6260_v60 = vpack.i.bf16 %v6250_v11, %v6248_v59 }
  0xc5   : > { %4458 = vrot.lane.b32.xlu1 %v6120_v47, %s5602_s25  ;;  %8838 = vst [vmem:[#allocation35_spill] sm:$0xff] %v6250_v11 }
  0xc8   : > { %4468 = vrot.lane.b32.xlu0 %v6132_v44, %s5603_s26 }
  0xca   : > { %4478 = vrot.lane.b32.xlu2 %v6140_v22, %s5603_s26 }
  0xcd   : > { %4473 = vrot.lane.b32.xlu1 %v6160_v14, %s5603_s26 }
  0xd0   : > { %4483 = vrot.lane.b32.xlu0 %v6168_v53, %s5603_s26 }
  0xd2   : > { %4493 = vrot.lane.b32.xlu2 %v6172_v38, %s5603_s26  ;;  %v6192_v41 = vpop.permute.xlu2 %4328 }
  0xd5   : > { %4488 = vrot.lane.b32.xlu1 %v6180_v20, %s5603_s26 }
  0xd8   : > { %4498 = vrot.lane.b32.xlu0 %v6190_v12, %s5603_s26 }
  0xda   : > { %4508 = vrot.lane.b32.xlu2 %v6198_v21, %s5603_s26 }
  0xdb   : > { %v6220_v8 = vpop.permute.xlu2 %4343 }
  0xdd   : > { %4503 = vrot.lane.b32.xlu1 %v6212_v15, %s5603_s26 }
  0xe0   : > { %4513 = vrot.lane.b32.xlu0 %v6218_v42, %s5603_s26 }
  0xe2   : > { %4523 = vrot.lane.b32.xlu2 %v6224_v30, %s5603_s26 }
  0xe4   : > { %v6242_v36 = vpop.permute.xlu2 %4358  ;;  %v6254_v54 = vpop.permute.xlu1 %4313 }
  0xe5   : > { %4518 = vrot.lane.b32.xlu1 %v6234_v29, %s5603_s26 }
  0xe7   : > { %v6256_v4 = vpop.permute.xlu0 %4308 }
  0xe8   : > { %4528 = vrot.lane.b32.xlu0 %v6240_v7, %s5603_s26 }
  0xea   : > { %4538 = vrot.lane.b32.xlu2 %v6246_v24, %s5603_s26 }
  0xec   : > { %v6264_v13 = vpop.permute.xlu2 %4373 }
  0xed   : > { %4533 = vrot.lane.b32.xlu1 %v6260_v60, %s5603_s26  ;;  %v6270_v34 = vpop.permute.xlu1 %4318 }
  0xf0   : > { %4543 = vrot.lane.b32.xlu0 %v5922_v39, %s5604_s27  ;;  %v6272_v6 = vpop.permute.xlu0 %4333 }
  0xf1   : > { %8839 = vst [vmem:[#allocation36_spill] sm:$0xff] %v6272_v6  ;;  %v642_v6 = vld [vmem:[#allocation2 + $0x69] sm:$0xff] }
  0xf2   : > { %4553 = vrot.lane.b32.xlu2 %v5952_v51, %s5604_s27 }
  0xf4   : > { %v6276_v59 = vpop.permute.xlu2 %4388 }
  0xf5   : > { %4548 = vrot.lane.b32.xlu1 %v5907_v33, %s5604_s27 }
  0xf6   : > { %v6282_v11 = vpop.permute.xlu1 %4338 }
  0xf7   : > { %8840 = vst [vmem:[#allocation37_spill] sm:$0xff] %v6282_v11 }
  0xf8   : > { %4558 = vrot.lane.b32.xlu0 %v5859_v18, %s5604_s27 }
  0xf9   : > { %v6284_v48 = vpop.permute.xlu0 %4348 }
  0xfa   : > { %4568 = vrot.lane.b32.xlu2 %v5965_v57, %s5604_s27 }
  0xfc   : > { %v6288_v39 = vpop.permute.xlu2 %4403 }
  0xfd   : > { %4563 = vrot.lane.b32.xlu1 %v5937_v45, %s5604_s27 }
  0xff   : > { %v6294_v51 = vpop.permute.xlu1 %4353 }
 0x100   : > { %4573 = vrot.lane.b32.xlu0 %v6005_v37, %s5604_s27 }
 0x102   : > { %v6296_v33 = vpop.permute.xlu0 %4363  ;;  %4583 = vrot.lane.b32.xlu2 %v6014_v49, %s5604_s27 }
 0x103   : > { %8841 = vst [vmem:[#allocation38_spill] sm:$0xff] %v6296_v33  ;;  %v643_v33 = vld [vmem:[#allocation2 + $0x79] sm:$0xff] }
 0x104   : > { %v6300_v18 = vpop.permute.xlu2 %4418 }
 0x105   : > { %8842 = vst [vmem:[#allocation39_spill] sm:$0xff] %v6300_v18  ;;  %4578 = vrot.lane.b32.xlu1 %v5980_v63, %s5604_s27  ;;  %v570_v63 = vld [vmem:[#allocation2 + $0x181] sm:$0xff]  ;;  %v571_v18 = vld [vmem:[#allocation2 + $0x189] sm:$0xff] }
 0x106   : > { %v6324_v11 = vpack.i.bf16 %v571_v18, %v570_v63  ;;  %v603_v63 = vld [vmem:[#allocation2 + $0x18a] sm:$0xff] }
 0x107   : > { %v6306_v57 = vpop.permute.xlu1 %4368 }
 0x108   : > { %4588 = vrot.lane.b32.xlu0 %v6033_v3, %s5604_s27  ;;  %8843 = vst [vmem:[#allocation40_spill] sm:$0xff] %v6306_v57 }
 0x10a   : > { %v6308_v45 = vpop.permute.xlu0 %4378  ;;  %4598 = vrot.lane.b32.xlu2 %v6035_v43, %s5604_s27 }
 0x10c   : > { %v6312_v37 = vpop.permute.xlu2 %4433 }
 0x10d   : > { %4593 = vrot.lane.b32.xlu1 %v6024_v52, %s5604_s27 }
 0x10f   : > { %v6318_v49 = vpop.permute.xlu1 %4383 }
 0x110   : > { %4603 = vrot.lane.b32.xlu0 %v6045_v55, %s5604_s27 }
 0x112   : > { %v6320_v3 = vpop.permute.xlu0 %4393  ;;  %4613 = vrot.lane.b32.xlu2 %v6047_v2, %s5604_s27 }
 0x114   : > { %v6326_v43 = vpop.permute.xlu2 %4448 }
 0x115   : > { %8844 = vst [vmem:[#allocation41_spill] sm:$0xff] %v6326_v43  ;;  %4608 = vrot.lane.b32.xlu1 %v6039_v46, %s5604_s27 }
 0x117   : > { %v6332_v52 = vpop.permute.xlu1 %4398 }
 0x118   : > { %4618 = vrot.lane.b32.xlu0 %v6324_v11, %s5604_s27 }
 0x11a   : > { %v6334_v55 = vpop.permute.xlu0 %4408  ;;  %4628 = vrot.lane.b32.xlu2 %v6057_v35, %s5605_s28 }
 0x11c   : > { %v6338_v57 = vpop.permute.xlu2 %4463 }
 0x11d   : > { %4623 = vrot.lane.b32.xlu1 %v6051_v28, %s5605_s28 }
 0x11f   : > { %v6344_v46 = vpop.permute.xlu1 %4413 }
 0x120   : > { %4633 = vrot.lane.b32.xlu0 %v6064_v32, %s5605_s28  ;;  %8845 = vst [vmem:[#allocation42_spill] sm:$0xff] %v6344_v46  ;;  %v638_v46 = vld [vmem:[#allocation2 + $0x39] sm:$0xff] }
 0x122   : > { %v6346_v2 = vpop.permute.xlu0 %4423  ;;  %4643 = vrot.lane.b32.xlu2 %v6068_v25, %s5605_s28 }
 0x124   : > { %v6350_v18 = vpop.permute.xlu2 %4478 }
 0x125   : > { %8846 = vst [vmem:[#allocation43_spill] sm:$0xff] %v6350_v18  ;;  %4638 = vrot.lane.b32.xlu1 %v6060_v40, %s5605_s28 }
 0x127   : > { %v6356_v35 = vpop.permute.xlu1 %4428 }
 0x128   : > { %4648 = vrot.lane.b32.xlu0 %v6076_v61, %s5605_s28 }
 0x12a   : > { %v6358_v28 = vpop.permute.xlu0 %4438  ;;  %4658 = vrot.lane.b32.xlu2 %v6080_v62, %s5605_s28 }
 0x12c   : > { %v6362_v32 = vpop.permute.xlu2 %4493 }
 0x12d   : > { %8847 = vst [vmem:[#allocation44_spill] sm:$0xff] %v6362_v32  ;;  %4653 = vrot.lane.b32.xlu1 %v6072_v0, %s5605_s28 }
 0x12f   : > { %v6368_v25 = vpop.permute.xlu1 %4443 }
 0x130   : > { %4663 = vrot.lane.b32.xlu0 %v6088_v27, %s5605_s28  ;;  %8848 = vst [vmem:[#allocation45_spill] sm:$0xff] %v6368_v25 }
 0x132   : > { %v6370_v40 = vpop.permute.xlu0 %4453  ;;  %4673 = vrot.lane.b32.xlu2 %v6092_v58, %s5605_s28  ;;  %v602_v58 = vld [vmem:[#allocation2 + $0x182] sm:$0xff] }
 0x133   : > { %v6396_v32 = vpack.i.bf16 %v603_v63, %v602_v58 }
 0x134   : > { %v6374_v61 = vpop.permute.xlu2 %4508 }
 0x135   : > { %4668 = vrot.lane.b32.xlu1 %v6084_v19, %s5605_s28 }
 0x137   : > { %v6380_v62 = vpop.permute.xlu1 %4458 }
 0x138   : > { %4678 = vrot.lane.b32.xlu0 %v6100_v31, %s5605_s28 }
 0x13a   : > { %v6382_v0 = vpop.permute.xlu0 %4468  ;;  %4688 = vrot.lane.b32.xlu2 %v6108_v56, %s5605_s28 }
 0x13c   : > { %v6386_v27 = vpop.permute.xlu2 %4523 }
 0x13d   : > { %8849 = vst [vmem:[#allocation46_spill] sm:$0xff] %v6386_v27  ;;  %4683 = vrot.lane.b32.xlu1 %v6096_v16, %s5605_s28 }
 0x13f   : > { %v6392_v19 = vpop.permute.xlu1 %4473 }
 0x140   : > { %4693 = vrot.lane.b32.xlu0 %v6120_v47, %s5605_s28 }
 0x142   : > { %v6394_v31 = vpop.permute.xlu0 %4483  ;;  %4703 = vrot.lane.b32.xlu2 %v6132_v44, %s5606_s29 }
 0x144   : > { %v6400_v56 = vpop.permute.xlu2 %4538 }
 0x145   : > { %4698 = vrot.lane.b32.xlu1 %v6396_v32, %s5605_s28 }
 0x147   : > { %v6406_v16 = vpop.permute.xlu1 %4488 }
 0x148   : > { %4708 = vrot.lane.b32.xlu0 %v6160_v14, %s5606_s29 }
 0x14a   : > { %v6408_v47 = vpop.permute.xlu0 %4498  ;;  %4718 = vrot.lane.b32.xlu2 %v6168_v53, %s5606_s29 }
 0x14b   : > { %8850 = vst [vmem:[#allocation47_spill] sm:$0xff] %v6408_v47  ;;  %v636_v47 = vld [vmem:[#allocation2 + $0x1a0] sm:$0xff] }
 0x14c   : > { %v6412_v58 = vpop.permute.xlu2 %4553 }
 0x14d   : > { %8851 = vst [vmem:[#allocation48_spill] sm:$0xff] %v6412_v58  ;;  %4713 = vrot.lane.b32.xlu1 %v6140_v22, %s5606_s29 }
 0x14f   : > { %v6418_v44 = vpop.permute.xlu1 %4503 }
 0x150   : > { %4723 = vrot.lane.b32.xlu0 %v6180_v20, %s5606_s29  ;;  %8852 = vst [vmem:[#allocation49_spill] sm:$0xff] %v6418_v44  ;;  %v686_v44 = vld [vmem:[#allocation2 + $0xfa] sm:$0xff] }
 0x152   : > { %v6420_v63 = vpop.permute.xlu0 %4513  ;;  %4733 = vrot.lane.b32.xlu2 %v6190_v12, %s5606_s29 }
 0x153   : > { %8853 = vst [vmem:[#allocation50_spill] sm:$0xff] %v6420_v63 }
 0x154   : > { %v6424_v14 = vpop.permute.xlu2 %4568 }
 0x155   : > { %8854 = vst [vmem:[#allocation51_spill] sm:$0xff] %v6424_v14  ;;  %4728 = vrot.lane.b32.xlu1 %v6172_v38, %s5606_s29 }
 0x157   : > { %v6430_v53 = vpop.permute.xlu1 %4518 }
 0x158   : > { %4738 = vrot.lane.b32.xlu0 %v6212_v15, %s5606_s29  ;;  %8855 = vst [vmem:[#allocation52_spill] sm:$0xff] %v6430_v53  ;;  %v635_v15 = vld [vmem:[#allocation2 + $0x198] sm:$0xff] }
 0x159   : > { %v662_v53 = vld [vmem:[#allocation2 + $0x159] sm:$0xff] }
 0x15a   : > { %v6432_v22 = vpop.permute.xlu0 %4528  ;;  %4748 = vrot.lane.b32.xlu2 %v6218_v42, %s5606_s29  ;;  %v4777_v42 = vpack.i.bf16 %v636_v47, %v635_v15  ;;  %v639_v47 = vld [vmem:[#allocation2 + $0x49] sm:$0xff]  ;;  %v640_v15 = vld [vmem:[#allocation2 + $0x51] sm:$0xff] }
 0x15b   : > { %8856 = vst [vmem:[#allocation53_spill] sm:$0xff] %v6432_v22 }
 0x15c   : > { %v6436_v20 = vpop.permute.xlu2 %4583 }
 0x15d   : > { %8857 = vst [vmem:[#allocation54_spill] sm:$0xff] %v6436_v20  ;;  %4743 = vrot.lane.b32.xlu1 %v6198_v21, %s5606_s29  ;;  %v650_v20 = vld [vmem:[#allocation2 + $0xc9] sm:$0xff] }
 0x15f   : > { %v6442_v12 = vpop.permute.xlu1 %4533 }
 0x160   : > { %4753 = vrot.lane.b32.xlu0 %v6234_v29, %s5606_s29  ;;  %v637_v29 = vld [vmem:[#allocation2 + $0x31] sm:$0xff] }
 0x161   : > { %v4782_v27 = vpack.i.bf16 %v638_v46, %v637_v29  ;;  %v647_v46 = vld [vmem:[#allocation2 + $0xa9] sm:$0xff]  ;;  %v648_v29 = vld [vmem:[#allocation2 + $0xb1] sm:$0xff] }
 0x162   : > { %v6444_v38 = vpop.permute.xlu0 %4543  ;;  %4763 = vrot.lane.b32.xlu2 %v6240_v7, %s5606_s29  ;;  %v641_v7 = vld [vmem:[#allocation2 + $0x61] sm:$0xff] }
 0x163   : > { %8858 = vst [vmem:[#allocation55_spill] sm:$0xff] %v6444_v38 }
 0x164   : > { %v6448_v22 = vpop.permute.xlu2 %4598 }
 0x165   : > { %8859 = vst [vmem:[#allocation56_spill] sm:$0xff] %v6448_v22  ;;  %4758 = vrot.lane.b32.xlu1 %v6224_v30, %s5606_s29  ;;  %v4792_v30 = vpack.i.bf16 %v642_v6, %v641_v7  ;;  %v645_v6 = vld [vmem:[#allocation2 + $0x91] sm:$0xff]  ;;  %v646_v7 = vld [vmem:[#allocation2 + $0x99] sm:$0xff] }
 0x167   : > { %v6454_v21 = vpop.permute.xlu1 %4548 }
 0x168   : > { %4768 = vrot.lane.b32.xlu0 %v6260_v60, %s5606_s29  ;;  %8860 = vst [vmem:[#allocation57_spill] sm:$0xff] %v6454_v21  ;;  %v649_v21 = vld [vmem:[#allocation2 + $0xc1] sm:$0xff] }
 0x16a   : > { %v6456_v43 = vpop.permute.xlu0 %4558  ;;  %4778 = vrot.lane.b32.xlu2 %v4777_v42, %s5606_s29  ;;  %v4787_v42 = vpack.i.bf16 %v640_v15, %v639_v47  ;;  %v4802_v47 = vpack.i.bf16 %v646_v7, %v645_v6 }
 0x16b   : > { %8861 = vst [vmem:[#allocation58_spill] sm:$0xff] %v6456_v43  ;;  %v644_v43 = vld [vmem:[#allocation2 + $0x81] sm:$0xff] }
 0x16c   : > { %v6459_v25 = vpop.permute.xlu2 %4613  ;;  %v4797_v18 = vpack.i.bf16 %v644_v43, %v643_v33  ;;  %v654_v33 = vld [vmem:[#allocation2 + $0xf9] sm:$0xff]  ;;  %v4812_v43 = vpack.i.bf16 %v650_v20, %v649_v21  ;;  %v660_v20 = vld [vmem:[#allocation2 + $0x141] sm:$0xff] }
 0x16d   : > { %4773 = vrot.lane.b32.xlu1 %v6246_v24, %s5606_s29  ;;  %v4807_v24 = vpack.i.bf16 %v648_v29, %v647_v46  ;;  %v651_v46 = vld [vmem:[#allocation2 + $0xd9] sm:$0xff]  ;;  %v652_v29 = vld [vmem:[#allocation2 + $0xe1] sm:$0xff] }
 0x16e   : > { %v4817_v6 = vpack.i.bf16 %v652_v29, %v651_v46  ;;  %v664_v29 = vld [vmem:[#allocation2 + $0x171] sm:$0xff] }
 0x16f   : > { %v6464_v60 = vpop.permute.xlu1 %4563 }
 0x170   : > { %4783 = vrot.lane.b32.xlu0 %v4782_v27, %s5607_s30 }
 0x172   : > { %v6466_v63 = vpop.permute.xlu0 %4573  ;;  %4793 = vrot.lane.b32.xlu2 %v4792_v30, %s5607_s30  ;;  %v653_v30 = vld [vmem:[#allocation2 + $0xf1] sm:$0xff] }
 0x173   : > { %8862 = vst [vmem:[#allocation59_spill] sm:$0xff] %v6466_v63 }
 0x174   : > { %v6469_v22 = vpop.permute.xlu2 %4628 }
 0x175   : > { %8863 = vst [vmem:[#allocation60_spill] sm:$0xff] %v6469_v22  ;;  %4788 = vrot.lane.b32.xlu1 %v4787_v42, %s5607_s30  ;;  %v4822_v42 = vpack.i.bf16 %v654_v33, %v653_v30  ;;  %v656_v22 = vld [vmem:[#allocation2 + $0x111] sm:$0xff]  ;;  %v657_v30 = vld [vmem:[#allocation2 + $0x121] sm:$0xff]  ;;  %v658_v33 = vld [vmem:[#allocation2 + $0x129] sm:$0xff] }
 0x176   : > { %v4832_v46 = vpack.i.bf16 %v658_v33, %v657_v30 }
 0x177   : > { %v6473_v27 = vpop.permute.xlu1 %4578 }
 0x178   : > { %4798 = vrot.lane.b32.xlu0 %v4797_v18, %s5607_s30  ;;  %8864 = vst [vmem:[#allocation61_spill] sm:$0xff] %v6473_v27  ;;  %v655_v27 = vld [vmem:[#allocation2 + $0x109] sm:$0xff] }
 0x179   : > { %v4827_v21 = vpack.i.bf16 %v656_v22, %v655_v27  ;;  %v663_v27 = vld [vmem:[#allocation2 + $0x169] sm:$0xff] }
 0x17a   : > { %v6475_v63 = vpop.permute.xlu0 %4588  ;;  %4808 = vrot.lane.b32.xlu2 %v4807_v24, %s5607_s30  ;;  %v659_v24 = vld [vmem:[#allocation2 + $0x139] sm:$0xff] }
 0x17b   : > { %8865 = vst [vmem:[#allocation62_spill] sm:$0xff] %v6475_v63 }
 0x17c   : > { %v6478_v15 = vpop.permute.xlu2 %4643 }
 0x17d   : > { %4803 = vrot.lane.b32.xlu1 %v4802_v47, %s5607_s30  ;;  %v4837_v47 = vpack.i.bf16 %v660_v20, %v659_v24  ;;  %v667_v24 = vld [vmem:[#allocation2 + $0x199] sm:$0xff]  ;;  %v668_v20 = vld [vmem:[#allocation2 + $0x1a1] sm:$0xff] }
 0x17f   : > { %v6482_v18 = vpop.permute.xlu1 %4593 }
 0x180   : > { %4813 = vrot.lane.b32.xlu0 %v4812_v43, %s5607_s30  ;;  %8866 = vst [vmem:[#allocation63_spill] sm:$0xff] %v6482_v18  ;;  %v661_v18 = vld [vmem:[#allocation2 + $0x151] sm:$0xff] }
 0x182   : > { %v6484_v63 = vpop.permute.xlu0 %4603  ;;  %4823 = vrot.lane.b32.xlu2 %v4822_v42, %s5607_s30  ;;  %v4842_v42 = vpack.i.bf16 %v662_v53, %v661_v18  ;;  %v672_v53 = vld [vmem:[#allocation2 + $0x52] sm:$0xff]  ;;  %v4857_v18 = vpack.i.bf16 %v668_v20, %v667_v24  ;;  %v678_v24 = vld [vmem:[#allocation2 + $0x9a] sm:$0xff] }
 0x183   : > { %8867 = vst [vmem:[#allocation64_spill] sm:$0xff] %v6484_v63 }
 0x184   : > { %v6487_v7 = vpop.permute.xlu2 %4658 }
 0x185   : > { %8868 = vst [vmem:[#allocation65_spill] sm:$0xff] %v6487_v7  ;;  %4818 = vrot.lane.b32.xlu1 %v4817_v6, %s5607_s30  ;;  %v4847_v7 = vpack.i.bf16 %v664_v29, %v663_v27 }
 0x187   : > { %v6491_v43 = vpop.permute.xlu1 %4608 }
 0x188   : > { %4828 = vrot.lane.b32.xlu0 %v4827_v21, %s5607_s30  ;;  %8869 = vst [vmem:[#allocation66_spill] sm:$0xff] %v6491_v43 }
 0x18a   : > { %v6493_v63 = vpop.permute.xlu0 %4618  ;;  %4838 = vrot.lane.b32.xlu2 %v4837_v47, %s5607_s30  ;;  %v671_v47 = vld [vmem:[#allocation2 + $0x4a] sm:$0xff] }
 0x18b   : > { %v4867_v33 = vpack.i.bf16 %v672_v53, %v671_v47  ;;  %v675_v47 = vld [vmem:[#allocation2 + $0x7a] sm:$0xff]  ;;  %v676_v53 = vld [vmem:[#allocation2 + $0x82] sm:$0xff] }
 0x18c   : > { %v6496_v22 = vpop.permute.xlu2 %4673 }
 0x18d   : > { %8870 = vst [vmem:[#allocation67_spill] sm:$0xff] %v6496_v22  ;;  %4833 = vrot.lane.b32.xlu1 %v4832_v46, %s5607_s30  ;;  %v669_v46 = vld [vmem:[#allocation2 + $0x32] sm:$0xff]  ;;  %v673_v22 = vld [vmem:[#allocation2 + $0x62] sm:$0xff] }
 0x18f   : > { %v6500_v6 = vpop.permute.xlu1 %4623 }
 0x190   : > { %4843 = vrot.lane.b32.xlu0 %v4842_v42, %s5607_s30  ;;  %8871 = vst [vmem:[#allocation68_spill] sm:$0xff] %v6500_v6  ;;  %v670_v42 = vld [vmem:[#allocation2 + $0x3a] sm:$0xff]  ;;  %v8907_v6 = vld [vmem:[#allocation33_spill] sm:$0xff] }
 0x191   : > { %v4862_v29 = vpack.i.bf16 %v670_v42, %v669_v46  ;;  %v4877_v42 = vpack.i.bf16 %v676_v53, %v675_v47 }
 0x192   : > { %v6502_v21 = vpop.permute.xlu0 %4633  ;;  %4853 = vrot.lane.b32.xlu2 %v6324_v11, %s5607_s30  ;;  %v677_v11 = vld [vmem:[#allocation2 + $0x92] sm:$0xff] }
 0x193   : > { %8872 = vst [vmem:[#allocation69_spill] sm:$0xff] %v6502_v21  ;;  %v674_v21 = vld [vmem:[#allocation2 + $0x6a] sm:$0xff] }
 0x194   : > { %v6506_v30 = vpop.permute.xlu2 %4688  ;;  %v4872_v20 = vpack.i.bf16 %v674_v21, %v673_v22  ;;  %v684_v22 = vld [vmem:[#allocation2 + $0xe2] sm:$0xff] }
 0x195   : > { %8873 = vst [vmem:[#allocation70_spill] sm:$0xff] %v6506_v30  ;;  %4848 = vrot.lane.b32.xlu1 %v4847_v7, %s5607_s30  ;;  %v4882_v7 = vpack.i.bf16 %v678_v24, %v677_v11  ;;  %v681_v11 = vld [vmem:[#allocation2 + $0xc2] sm:$0xff]  ;;  %v682_v24 = vld [vmem:[#allocation2 + $0xca] sm:$0xff] }
 0x196   : > { %v4892_v47 = vpack.i.bf16 %v682_v24, %v681_v11 }
 0x197   : > { %v6510_v43 = vpop.permute.xlu1 %4638 }
 0x198   : > { %4858 = vrot.lane.b32.xlu0 %v4857_v18, %s5607_s30  ;;  %8874 = vst [vmem:[#allocation71_spill] sm:$0xff] %v6510_v43  ;;  %v679_v43 = vld [vmem:[#allocation2 + $0xaa] sm:$0xff] }
 0x19a   : > { %v6512_v27 = vpop.permute.xlu0 %4648  ;;  %4868 = vrot.lane.b32.xlu2 %v4867_v33, %s5608_s6  ;;  %v683_v33 = vld [vmem:[#allocation2 + $0xda] sm:$0xff] }
 0x19b   : > { %8875 = vst [vmem:[#allocation72_spill] sm:$0xff] %v6512_v27  ;;  %v680_v27 = vld [vmem:[#allocation2 + $0xb2] sm:$0xff] }
 0x19c   : > { %v6515_v30 = vpop.permute.xlu2 %4703  ;;  %v4887_v21 = vpack.i.bf16 %v680_v27, %v679_v43  ;;  %v690_v43 = vld [vmem:[#allocation2 + $0x12a] sm:$0xff] }
 0x19d   : > { %8876 = vst [vmem:[#allocation73_spill] sm:$0xff] %v6515_v30  ;;  %4863 = vrot.lane.b32.xlu1 %v4862_v29, %s5608_s6  ;;  %v4897_v29 = vpack.i.bf16 %v684_v22, %v683_v33  ;;  %v687_v33 = vld [vmem:[#allocation2 + $0x10a] sm:$0xff]  ;;  %v688_v22 = vld [vmem:[#allocation2 + $0x112] sm:$0xff] }
 0x19e   : > { %v4907_v11 = vpack.i.bf16 %v688_v22, %v687_v33 }
 0x19f   : > { %v6519_v18 = vpop.permute.xlu1 %4653 }
 0x1a0   : > { %4873 = vrot.lane.b32.xlu0 %v4872_v20, %s5608_s6  ;;  %8877 = vst [vmem:[#allocation74_spill] sm:$0xff] %v6519_v18  ;;  %v685_v18 = vld [vmem:[#allocation2 + $0xf2] sm:$0xff] }
 0x1a1   : > { %v4902_v27 = vpack.i.bf16 %v686_v44, %v685_v18  ;;  %v696_v44 = vld [vmem:[#allocation2 + $0x172] sm:$0xff] }
 0x1a2   : > { %v6521_v46 = vpop.permute.xlu0 %4663  ;;  %4883 = vrot.lane.b32.xlu2 %v4882_v7, %s5608_s6  ;;  %v689_v7 = vld [vmem:[#allocation2 + $0x122] sm:$0xff] }
 0x1a3   : > { %8878 = vst [vmem:[#allocation75_spill] sm:$0xff] %v6521_v46 }
 0x1a4   : > { %v6524_v14 = vpop.permute.xlu2 %4718 }
 0x1a5   : > { %8879 = vst [vmem:[#allocation76_spill] sm:$0xff] %v6524_v14  ;;  %4878 = vrot.lane.b32.xlu1 %v4877_v42, %s5608_s6  ;;  %v4912_v42 = vpack.i.bf16 %v690_v43, %v689_v7  ;;  %v691_v14 = vld [vmem:[#allocation2 + $0x13a] sm:$0xff]  ;;  %v693_v7 = vld [vmem:[#allocation2 + $0x152] sm:$0xff] }
 0x1a6   : > { %v694_v43 = vld [vmem:[#allocation2 + $0x15a] sm:$0xff] }
 0x1a7   : > { %v6528_v20 = vpop.permute.xlu1 %4668 }
 0x1a8   : > { %4888 = vrot.lane.b32.xlu0 %v4887_v21, %s5608_s6  ;;  %8880 = vst [vmem:[#allocation77_spill] sm:$0xff] %v6528_v20  ;;  %v692_v20 = vld [vmem:[#allocation2 + $0x142] sm:$0xff] }
 0x1a9   : > { %v4917_v18 = vpack.i.bf16 %v692_v20, %v691_v14  ;;  %v699_v14 = vld [vmem:[#allocation2 + $0x19a] sm:$0xff]  ;;  %v700_v20 = vld [vmem:[#allocation2 + $0x1a2] sm:$0xff] }
 0x1aa   : > { %v6530_v46 = vpop.permute.xlu0 %4678  ;;  %4898 = vrot.lane.b32.xlu2 %v4897_v29, %s5608_s6  ;;  %v695_v29 = vld [vmem:[#allocation2 + $0x16a] sm:$0xff] }
 0x1ab   : > { %8881 = vst [vmem:[#allocation78_spill] sm:$0xff] %v6530_v46 }
 0x1ac   : > { %v6533_v53 = vpop.permute.xlu2 %4733 }
 0x1ad   : > { %8882 = vst [vmem:[#allocation79_spill] sm:$0xff] %v6533_v53  ;;  %4893 = vrot.lane.b32.xlu1 %v4892_v47, %s5608_s6  ;;  %v4927_v47 = vpack.i.bf16 %v696_v44, %v695_v29 }
 0x1af   : > { %v6537_v21 = vpop.permute.xlu1 %4683 }
 0x1b0   : > { %4903 = vrot.lane.b32.xlu0 %v4902_v27, %s5608_s6  ;;  %8883 = vst [vmem:[#allocation80_spill] sm:$0xff] %v6537_v21  ;;  %v4922_v21 = vpack.i.bf16 %v694_v43, %v693_v7 }
 0x1b2   : > { %v6539_v46 = vpop.permute.xlu0 %4693  ;;  %4913 = vrot.lane.b32.xlu2 %v4912_v42, %s5608_s6 }
 0x1b4   : > { %v6542_v24 = vpop.permute.xlu2 %4748 }
 0x1b5   : > { %8884 = vst [vmem:[#allocation81_spill] sm:$0xff] %v6542_v24  ;;  %4908 = vrot.lane.b32.xlu1 %v4907_v11, %s5608_s6  ;;  %v4937_v11 = vpack.i.bf16 %v700_v20, %v699_v14  ;;  %v4306_v14 = vunpack.i.h.bf16 %v6228_v23 }
 0x1b7   : > { %v6546_v27 = vpop.permute.xlu1 %4698 }
 0x1b8   : > { %4918 = vrot.lane.b32.xlu0 %v4917_v18, %s5608_s6  ;;  %8885 = vst [vmem:[#allocation82_spill] sm:$0xff] %v6546_v27 }
 0x1ba   : > { %v6548_v53 = vpop.permute.xlu0 %4708  ;;  %4928 = vrot.lane.b32.xlu2 %v4927_v47, %s5608_s6 }
 0x1bb   : > { %8886 = vst [vmem:[#allocation83_spill] sm:$0xff] %v6548_v53 }
 0x1bc   : > { %v6551_v42 = vpop.permute.xlu2 %4763 }
 0x1bd   : > { %8887 = vst [vmem:[#allocation84_spill] sm:$0xff] %v6551_v42  ;;  %4923 = vrot.lane.b32.xlu1 %v4922_v21, %s5608_s6  ;;  %v413_v42 = vld [vmem:[#allocation2 + $0x8] sm:$0xff] }
 0x1bf   : > { %v6556_v33 = vpop.permute.xlu1 %4713 }
 0x1c0   : > { %4933 = vrot.lane.b32.xlu0 %v6396_v32, %s5608_s6  ;;  %8888 = vst [vmem:[#allocation85_spill] sm:$0xff] %v6556_v33  ;;  %v412_v33 = vld [vmem:[#allocation2] sm:$0xff] }
 0x1c2   : > { %v6558_v22 = vpop.permute.xlu0 %4723 }
 0x1c4   : > { %v6560_v29 = vpop.permute.xlu2 %4778 }
 0x1c5   : > { %8889 = vst [vmem:[#allocation86_spill] sm:$0xff] %v6560_v29  ;;  %4938 = vrot.lane.b32.xlu1 %v4937_v11, %s5608_s6  ;;  %v4305_v11 = vunpack.i.l.bf16 %v6228_v23  ;;  %v4345_v23 = vunpack.i.l.bf16 %v6220_v8 }
 0x1c7   : > { %v6563_v44 = vpop.permute.xlu1 %4728  ;;  %v6591_v53 = vsel %vm226_vm0, %v412_v33, %v4305_v11  ;;  %v4311_v33 = vunpack.i.h.bf16 %v6256_v4 }
 0x1c8   : > { %8890 = vst [vmem:[#allocation87_spill] sm:$0xff] %v6563_v44  ;;  %v4315_v44 = vunpack.i.l.bf16 %v6254_v54 }
 0x1ca   : > { %v6565_v18 = vpop.permute.xlu0 %4738 }
 0x1cb   : > { %8891 = vst [vmem:[#allocation88_spill] sm:$0xff] %v6565_v18  ;;  %v4325_v18 = vunpack.i.l.bf16 %v6164_v10 }
 0x1cc   : > { %v6567_v47 = vpop.permute.xlu2 %4793 }
 0x1cd   : > { %8892 = vst [vmem:[#allocation89_spill] sm:$0xff] %v6567_v47  ;;  %v4326_v47 = vunpack.i.h.bf16 %v6164_v10  ;;  %v4316_v10 = vunpack.i.h.bf16 %v6254_v54 }
 0x1cf   : > { %v6569_v21 = vpop.permute.xlu1 %4743 }
 0x1d0   : > { %8893 = vst [vmem:[#allocation90_spill] sm:$0xff] %v6569_v21  ;;  %v4330_v21 = vunpack.i.l.bf16 %v6192_v41 }
 0x1d2   : > { %v6571_v7 = vpop.permute.xlu0 %4753  ;;  %v6619_v11 = vsel %vm226_vm0, %v6154_v9, %v4330_v21  ;;  %v8902_v21 = vld [vmem:[#allocation21_spill] sm:$0xff] }
 0x1d3   : > { %8894 = vst [vmem:[#allocation91_spill] sm:$0xff] %v6571_v7  ;;  %v4331_v7 = vunpack.i.h.bf16 %v6192_v41  ;;  %v4310_v41 = vunpack.i.l.bf16 %v6256_v4 }
 0x1d4   : > { %v6573_v32 = vpop.permute.xlu2 %4808 }
 0x1d5   : > { %8895 = vst [vmem:[#allocation92_spill] sm:$0xff] %v6573_v32  ;;  %v4360_v32 = vunpack.i.l.bf16 %v6242_v36  ;;  %v6615_v54 = vsel %vm226_vm0, %v6156_v50, %v4331_v7  ;;  %v6642_v7 = vsel %vm226_vm0, %v8902_v21, %v4315_v44  ;;  %v4456_v44 = vunpack.i.h.bf16 %v6370_v40  ;;  %v8909_v21 = vld [vmem:[#allocation25_spill] sm:$0xff] }
 0x1d7   : > { %v6575_v43 = vpop.permute.xlu1 %4758 }
 0x1d8   : > { %8896 = vst [vmem:[#allocation93_spill] sm:$0xff] %v6575_v43  ;;  %v6588_v43 = vsel %vm226_vm0, %v413_v42, %v4306_v14  ;;  %v6604_v42 = vsel %vm226_vm0, %v6123_v5, %v4325_v18  ;;  %v4375_v14 = vunpack.i.l.bf16 %v6264_v13  ;;  %v4321_v5 = vunpack.i.h.bf16 %v6270_v34 }
 0x1da   : > { %v6578_v20 = vpop.permute.xlu0 %4768 }
 0x1db   : > { %8897 = vst [vmem:[#allocation94_spill] sm:$0xff] %v6578_v20  ;;  %v4346_v20 = vunpack.i.h.bf16 %v6220_v8  ;;  %v4376_v8 = vunpack.i.h.bf16 %v6264_v13  ;;  %v8900_v13 = vld [vmem:[#allocation31_spill] sm:$0xff] }
 0x1dc   : > { %v6581_v24 = vpop.permute.xlu2 %4823 }
 0x1dd   : > { %8898 = vst [vmem:[#allocation95_spill] sm:$0xff] %v6581_v24  ;;  %v4361_v24 = vunpack.i.h.bf16 %v6242_v36  ;;  %v6611_v36 = vsel %vm226_vm0, %v6125_v17, %v4326_v47  ;;  %v6626_v4 = vsel %vm226_vm0, %v6178_v1, %v4346_v20  ;;  %v6630_v17 = vsel %vm226_vm0, %v6176_v26, %v4345_v23  ;;  %v8901_v47 = vld [vmem:[#allocation30_spill] sm:$0xff]  ;;  %v8904_v20 = vld [vmem:[#allocation19_spill] sm:$0xff] }
 0x1de   : > { %v6638_v9 = vsel %vm226_vm0, %v8901_v47, %v4360_v32  ;;  %v1727_v26 = vsel %vm226_vm0, %v8904_v20, %v4310_v41  ;;  %v1754_v32 = vsel %vm226_vm0, %v8907_v6, %v4376_v8  ;;  %v8908_v47 = vld [vmem:[#allocation32_spill] sm:$0xff]  ;;  %v4391_v41 = vunpack.i.h.bf16 %v6276_v59 }
 0x1df   : > { %v6600_v30 = vpop.permute.xlu1 %4773  ;;  %v6634_v50 = vsel %vm226_vm0, %v8900_v13, %v4361_v24  ;;  %v8906_v24 = vld [vmem:[#allocation20_spill] sm:$0xff]  ;;  %v1753_v38 = vsel %vm226_vm0, %v8908_v47, %v4375_v14  ;;  %v4455_v20 = vunpack.i.l.bf16 %v6370_v40  ;;  %v4536_v6 = vunpack.i.h.bf16 %v6442_v12  ;;  %v2008_v14 = vld [vmem:[%s8636_s1 + $0x10] sm:$0x3] }
 0x1e0   : > { %v1728_v13 = vsel %vm226_vm0, %v8906_v24, %v4311_v33  ;;  %v4390_v33 = vunpack.i.l.bf16 %v6276_v59  ;;  %v4351_v24 = vunpack.i.h.bf16 %v6284_v48  ;;  %v4535_v8 = vunpack.i.l.bf16 %v6442_v12 }
 0x1e1   : > { %v2022_v40 = vunpack.c.l.b16 %v2008_v14  ;;  %v1787_v59 = vsel %vm1757_vm3, %v1754_v32, %v4456_v44  ;;  %v1786_v12 = vsel %vm1757_vm3, %v1753_v38, %v4455_v20  ;;  %v4775_v58 = vunpack.i.l.bf16 %v6600_v30 }
 0x1e2   : > { %v6622_v18 = vpop.permute.xlu0 %4783  ;;  %v1820_v14 = vsel %vm1790_vm4, %v1787_v59, %v4536_v6  ;;  %v4197_v6 = vld [vmem:[%s8636_s1 + $0x8] sm:$0xff] }
 0x1e3   : > { %8899 = vst [vmem:[#allocation96_spill] sm:$0xff] %v6622_v18  ;;  %v8903_v18 = vld [vmem:[#allocation22_spill] sm:$0xff]  ;;  %v2025_v27 = vpack.c.b16 %v2022_v40, %v2022_v40 }
 0x1e4   : > { %v6646_v1 = vsel %vm226_vm0, %v8903_v18, %v4316_v10  ;;  %v6650_v23 = vpop.permute.xlu2 %4838  ;;  %v6661_v10 = vsel %vm226_vm0, %v8909_v21, %v4321_v5  ;;  %v4320_v18 = vunpack.i.l.bf16 %v6270_v34  ;;  %v4616_v5 = vunpack.i.h.bf16 %v6459_v25 }
 0x1e5   : > { %8905 = vst [vmem:[#allocation31_spill] sm:$0xff] %v6650_v23  ;;  %v4615_v34 = vunpack.i.l.bf16 %v6459_v25  ;;  %v4696_v21 = vunpack.i.h.bf16 %v6539_v46  ;;  %v4776_v23 = vunpack.i.h.bf16 %v6600_v30  ;;  %v1819_v25 = vsel %vm1790_vm4, %v1786_v12, %v4535_v8 }
 0x1e6   : > { %8910 = vst [vmem:[#allocation30_spill] sm:$0xff] %v6661_v10  ;;  %v4695_v10 = vunpack.i.l.bf16 %v6539_v46  ;;  %v1853_v44 = vsel %vm1823_vm5, %v1820_v14, %v4616_v5  ;;  %v2079_v38 = vsel %vm2077_vm7, %v2025_v27, 0  ;;  %v4350_v8 = vunpack.i.l.bf16 %v6284_v48  ;;  %v8912_v14 = vld [vmem:[#allocation24_spill] sm:$0xff] }
 0x1e7   : > { %v6675_v47 = vpop.permute.xlu1 %4788  ;;  %v1852_v32 = vsel %vm1823_vm5, %v1819_v25, %v4615_v34  ;;  %v1886_v30 = vsel %vm1856_vm6, %v1853_v44, %v4696_v21  ;;  %2086 = vmatpush.bf16.msra.mxu0 %v2079_v38  ;;  %4279 = vmatpush.bf16.msra.mxu2 %v2079_v38  ;;  %v4406_v27 = vunpack.i.h.bf16 %v6288_v39  ;;  %v4356_v12 = vunpack.i.h.bf16 %v6294_v51  ;;  %v8913_v44 = vld [vmem:[#allocation29_spill] sm:$0xff] }
 0x1e8   : > { %v1885_v20 = vsel %vm1856_vm6, %v1852_v32, %v4695_v10  ;;  %v1919_v34 = vsel %vm1889_vm8, %v1886_v30, %v4776_v23  ;;  %v4405_v10 = vunpack.i.l.bf16 %v6288_v39  ;;  %v4355_v25 = vunpack.i.l.bf16 %v6294_v51  ;;  %v8915_v30 = vld [vmem:[#allocation27_spill] sm:$0xff] }
 0x1e9   : > { %v1918_v5 = vsel %vm1889_vm8, %v1885_v20, %v4775_v58  ;;  %v4381_v48 = vunpack.i.h.bf16 %v6308_v45  ;;  %v4380_v58 = vunpack.i.l.bf16 %v6308_v45  ;;  %v6714_v32 = vsel %vm226_vm0, %v8912_v14, %v4320_v18 }
 0x1ea   : > { %v6683_v29 = vpop.permute.xlu0 %4798  ;;  %v6717_v39 = vsel %vm1757_vm3, %v1727_v26, %v4390_v33  ;;  %v6724_v51 = vsel %vm226_vm0, %v8913_v44, %v4351_v24  ;;  %v4386_v38 = vunpack.i.h.bf16 %v6318_v49  ;;  %v4385_v18 = vunpack.i.l.bf16 %v6318_v49  ;;  %v4196_v24 = vld [vmem:[%s8636_s1] sm:$0xff]  ;;  %v8916_v49 = vld [vmem:[#allocation26_spill] sm:$0xff] }
 0x1eb   : > { %8911 = vst [vmem:[#allocation21_spill] sm:$0xff] %v6683_v29  ;;  %2087 = vmatpush.bf16.msra.mxu0 %v4197_v6  ;;  %4280 = vmatpush.bf16.msra.mxu2 %v4197_v6  ;;  %v1767_v26 = vsel %vm1757_vm3, %v6611_v36, %v4406_v27  ;;  %v4395_v33 = vunpack.i.l.bf16 %v6320_v3  ;;  %v6749_v6 = vsel %vm226_vm0, %v8916_v49, %v4355_v25  ;;  %v8917_v36 = vld [vmem:[#allocation35_spill] sm:$0xff]  ;;  %v4485_v14 = vunpack.i.l.bf16 %v6394_v31 }
 0x1ec   : > { %v4854_v46 = vpop.permute.xlu2 %4853  ;;  %v1759_v25 = vsel %vm1757_vm3, %v6588_v43, %v4386_v38  ;;  %v4401_v43 = vunpack.i.h.bf16 %v6332_v52  ;;  %v4646_v38 = vunpack.i.h.bf16 %v6478_v15 }
 0x1ed   : > { %v4856_v29 = vunpack.i.h.bf16 %v4854_v46  ;;  %v4855_v40 = vunpack.i.l.bf16 %v4854_v46  ;;  %v8914_v46 = vld [vmem:[#allocation28_spill] sm:$0xff] }
 0x1ee   : > { %v6728_v45 = vsel %vm226_vm0, %v8914_v46, %v4350_v8  ;;  %v6753_v8 = vsel %vm226_vm0, %v8917_v36, %v4381_v48  ;;  %v1758_v48 = vsel %vm1757_vm3, %v6591_v53, %v4385_v18  ;;  %v6777_v46 = vsel %vm1757_vm3, %v6642_v7, %v4395_v33 }
 0x1ef   : > { %v6701_v59 = vsel %vm1922_vm9, %v1918_v5, %v4855_v40  ;;  %v6704_v21 = vsel %vm1922_vm9, %v1919_v34, %v4856_v29  ;;  %v6710_v23 = vpop.permute.xlu1 %4803  ;;  %v6720_v29 = vsel %vm1757_vm3, %v1728_v13, %v4391_v41  ;;  %v1766_v13 = vsel %vm1757_vm3, %v6604_v42, %v4405_v10  ;;  %v8918_v42 = vld [vmem:[#allocation34_spill] sm:$0xff]  ;;  %2088 = vmatpush.bf16.msra.mxu0 %v4196_v24 }
 0x1f0   : > { %v4396_v41 = vunpack.i.h.bf16 %v6320_v3  ;;  %v6745_v40 = vsel %vm226_vm0, %v8915_v30, %v4356_v12  ;;  %v6757_v5 = vsel %vm226_vm0, %v8918_v42, %v4380_v58  ;;  %v4436_v34 = vunpack.i.h.bf16 %v6312_v37  ;;  %4281 = vmatpush.bf16.msra.mxu2 %v4196_v24 }
 0x1f1   : > { %v4411_v10 = vunpack.i.h.bf16 %v6334_v55  ;;  %v4410_v12 = vunpack.i.l.bf16 %v6334_v55  ;;  %v4486_v58 = vunpack.i.h.bf16 %v6394_v31  ;;  %v4566_v55 = vunpack.i.h.bf16 %v6464_v60 }
 0x1f2   : > { %v6732_v20 = vpop.permute.xlu0 %4813  ;;  %v6773_v44 = vsel %vm1757_vm3, %v6646_v1, %v4396_v41  ;;  %v4565_v24 = vunpack.i.l.bf16 %v6464_v60  ;;  %v4645_v31 = vunpack.i.l.bf16 %v6478_v15  ;;  %v4726_v60 = vunpack.i.h.bf16 %v6558_v22 }
 0x1f3   : > { %v6789_v1 = vsel %vm1757_vm3, %v6615_v54, %v4411_v10  ;;  %v6793_v7 = vsel %vm1757_vm3, %v6619_v11, %v4410_v12  ;;  %v4725_v41 = vunpack.i.l.bf16 %v6558_v22  ;;  %v1800_v33 = vsel %vm1790_vm4, %v1767_v26, %v4486_v58 }
 0x1f4   : > { %v6759_v3 = vpop.permute.xlu2 %4868  ;;  %v1799_v30 = vsel %vm1790_vm4, %v1766_v13, %v4485_v14  ;;  %v4806_v15 = vunpack.i.h.bf16 %v6710_v23  ;;  %v4805_v49 = vunpack.i.l.bf16 %v6710_v23  ;;  %v4466_v54 = vunpack.i.h.bf16 %v6338_v57 }
 0x1f5   : > { %v4465_v42 = vunpack.i.l.bf16 %v6338_v57  ;;  %v1832_v11 = vsel %vm1823_vm5, %v1799_v30, %v4565_v24  ;;  %v1833_v10 = vsel %vm1823_vm5, %v1800_v33, %v4566_v55  ;;  %v4426_v22 = vunpack.i.h.bf16 %v6346_v2 }
 0x1f6   : > { %v4425_v26 = vunpack.i.l.bf16 %v6346_v2  ;;  %v1865_v13 = vsel %vm1856_vm6, %v1832_v11, %v4645_v31  ;;  %v1866_v12 = vsel %vm1856_vm6, %v1833_v10, %v4646_v38  ;;  %v4430_v57 = vunpack.i.l.bf16 %v6356_v35 }
 0x1f7   : > { %v6785_v18 = vpop.permute.xlu1 %4818  ;;  %v1898_v23 = vsel %vm1889_vm8, %v1865_v13, %v4725_v41  ;;  %v1899_v14 = vsel %vm1889_vm8, %v1866_v12, %v4726_v60  ;;  %v4431_v2 = vunpack.i.h.bf16 %v6356_v35  ;;  %v4441_v31 = vunpack.i.h.bf16 %v6358_v28 }
 0x1f8   : > { %v1931_v55 = vsel %vm1922_vm9, %v1898_v23, %v4805_v49  ;;  %v1932_v24 = vsel %vm1922_vm9, %v1899_v14, %v4806_v15  ;;  %v6825_v60 = vsel %vm1790_vm4, %v1759_v25, %v4466_v54  ;;  %v4440_v33 = vunpack.i.l.bf16 %v6358_v28  ;;  %v8919_v14 = vld [vmem:[#allocation82_spill] sm:$0xff] }
 0x1f9   : > { %v4510_v30 = vunpack.i.l.bf16 %v6374_v61  ;;  %v6834_v15 = vsel %vm1790_vm4, %v1758_v48, %v4465_v42  ;;  %v4511_v25 = vunpack.i.h.bf16 %v6374_v61  ;;  %v6844_v28 = vsel %vm1757_vm3, %v6630_v17, %v4425_v26 }
 0x1fa   : > { %v6801_v36 = vpop.permute.xlu0 %4828  ;;  %v1776_v54 = vsel %vm1757_vm3, %v6728_v45, %v4430_v57  ;;  %v4461_v11 = vunpack.i.h.bf16 %v6380_v62  ;;  %v4470_v48 = vunpack.i.l.bf16 %v6382_v0  ;;  %v6856_v10 = vsel %vm1757_vm3, %v6634_v50, %v4441_v31 }
 0x1fb   : > { %v4471_v61 = vunpack.i.h.bf16 %v6382_v0  ;;  %v4475_v17 = vunpack.i.l.bf16 %v6392_v19  ;;  %v6862_v45 = vsel %vm1757_vm3, %v6638_v9, %v4440_v33  ;;  %v4540_v26 = vunpack.i.l.bf16 %v6400_v56  ;;  %v8921_v33 = vld [vmem:[#allocation48_spill] sm:$0xff] }
 0x1fc   : > { %v4884_v58 = vpop.permute.xlu2 %4883  ;;  %v4490_v0 = vunpack.i.l.bf16 %v6406_v16  ;;  %v4541_v13 = vunpack.i.h.bf16 %v6400_v56  ;;  %v1789_v9 = vsel %vm1757_vm3, %v6753_v8, %v4461_v11  ;;  %v6880_v12 = vsel %vm1790_vm4, %v6717_v39, %v4470_v48 }
 0x1fd   : > { %v4886_v53 = vunpack.i.h.bf16 %v4884_v58  ;;  %v4885_v27 = vunpack.i.l.bf16 %v4884_v58  ;;  %v4620_v58 = vunpack.i.l.bf16 %v6493_v63  ;;  %v1795_v23 = vsel %vm1790_vm4, %v6777_v46, %v4475_v17 }
 0x1fe   : > { %v4701_v56 = vunpack.i.h.bf16 %v8919_v14  ;;  %v4700_v57 = vunpack.i.l.bf16 %v8919_v14  ;;  %v1801_v46 = vsel %vm1790_vm4, %v6793_v7, %v4490_v0  ;;  %v1822_v31 = vsel %vm1790_vm4, %v1789_v9, %v4541_v13  ;;  %v8923_v7 = vld [vmem:[#allocation68_spill] sm:$0xff]  ;;  %v8924_v13 = vld [vmem:[#allocation73_spill] sm:$0xff] }
 0x1ff   : > { %v6819_v38 = vsel %vm1955_vm10, %v1931_v55, %v4885_v27  ;;  %v6822_v41 = vsel %vm1955_vm10, %v1932_v24, %v4886_v53  ;;  %v6829_v49 = vpop.permute.xlu1 %4833  ;;  %v6838_v27 = vsel %vm1757_vm3, %v6626_v4, %v4426_v22  ;;  %v4460_v53 = vunpack.i.l.bf16 %v6380_v62  ;;  %v8920_v55 = vld [vmem:[#allocation86_spill] sm:$0xff] }
 0x200   : > { %v1992_v35 = vpack.c.bf16 %v6822_v41, %v6819_v38  ;;  %v1777_v4 = vsel %vm1757_vm3, %v6724_v51, %v4431_v2  ;;  %v6865_v62 = vsel %vm1790_vm4, %v1776_v54, %v4510_v30  ;;  %v4476_v22 = vunpack.i.h.bf16 %v6392_v19  ;;  %v8964_v38 = vld [vmem:[#allocation36_spill] sm:$0xff] }
 0x201   : > { %v1788_v51 = vsel %vm1757_vm3, %v6757_v5, %v4460_v53  ;;  %v6872_v50 = vsel %vm1790_vm4, %v1777_v4, %v4511_v25  ;;  %v4621_v19 = vunpack.i.h.bf16 %v6493_v63  ;;  %v6886_v5 = vsel %vm1790_vm4, %v6720_v29, %v4471_v61  ;;  %v8922_v53 = vld [vmem:[#allocation55_spill] sm:$0xff] }
 0x202   : > { %v6850_v42 = vpop.permute.xlu0 %4843  ;;  %v6894_v8 = vsel %vm1790_vm4, %v6773_v44, %v4476_v22  ;;  %v1821_v39 = vsel %vm1790_vm4, %v1788_v51, %v4540_v26  ;;  %v4781_v24 = vunpack.i.h.bf16 %v8920_v55  ;;  %v4780_v63 = vunpack.i.l.bf16 %v8920_v55 }
 0x203   : > { %v4491_v29 = vunpack.i.h.bf16 %v6406_v16  ;;  %v4555_v30 = vunpack.i.l.bf16 %v8921_v33  ;;  %v4546_v44 = vunpack.i.h.bf16 %v8922_v53  ;;  %v4545_v25 = vunpack.i.l.bf16 %v8922_v53 }
 0x204   : > { %v1854_v54 = vsel %vm1823_vm5, %v1821_v39, %v4620_v58  ;;  %v1855_v11 = vsel %vm1823_vm5, %v1822_v31, %v4621_v19  ;;  %v4626_v22 = vunpack.i.h.bf16 %v8923_v7  ;;  %v4625_v26 = vunpack.i.l.bf16 %v8923_v7  ;;  %v8925_v39 = vld [vmem:[#allocation96_spill] sm:$0xff] }
 0x205   : > { %v1887_v4 = vsel %vm1856_vm6, %v1854_v54, %v4700_v57  ;;  %v1888_v16 = vsel %vm1856_vm6, %v1855_v11, %v4701_v56  ;;  %v4706_v9 = vunpack.i.h.bf16 %v8924_v13  ;;  %v4705_v58 = vunpack.i.l.bf16 %v8924_v13 }
 0x206   : > { %v1920_v51 = vsel %vm1889_vm8, %v1887_v4, %v4780_v63  ;;  %v1921_v0 = vsel %vm1889_vm8, %v1888_v16, %v4781_v24  ;;  %v1802_v56 = vsel %vm1790_vm4, %v6789_v1, %v4491_v29  ;;  %v4556_v57 = vunpack.i.h.bf16 %v8921_v33  ;;  %v8926_v24 = vld [vmem:[#allocation49_spill] sm:$0xff]  ;;  %v8927_v1 = vld [vmem:[#allocation51_spill] sm:$0xff] }
 0x207   : > { %v6899_v2 = vpop.permute.xlu1 %4848  ;;  %v4786_v55 = vunpack.i.h.bf16 %v8925_v39  ;;  %v4785_v63 = vunpack.i.l.bf16 %v8925_v39  ;;  %v4506_v31 = vunpack.i.h.bf16 %v8926_v24  ;;  %v6931_v53 = vsel %vm1823_vm5, %v1795_v23, %v4555_v30 }
 0x208   : > { %v1825_v54 = vsel %vm1823_vm5, %v6825_v60, %v4546_v44  ;;  %v1824_v11 = vsel %vm1823_vm5, %v6834_v15, %v4545_v25  ;;  %v4571_v29 = vunpack.i.h.bf16 %v8927_v1  ;;  %v4570_v44 = vunpack.i.l.bf16 %v8927_v1 }
 0x209   : > { %v1857_v4 = vsel %vm1856_vm6, %v1824_v11, %v4625_v26  ;;  %v1858_v16 = vsel %vm1856_vm6, %v1825_v54, %v4626_v22  ;;  %v4336_v41 = vunpack.i.h.bf16 %v8964_v38 }
 0x20a   : > { %v4859_v48 = vpop.permute.xlu0 %4858  ;;  %v1891_v23 = vsel %vm1889_vm8, %v1858_v16, %v4706_v9 }
 0x20b   : > { %v4861_v61 = vunpack.i.h.bf16 %v4859_v48  ;;  %v4860_v17 = vunpack.i.l.bf16 %v4859_v48  ;;  %v4505_v48 = vunpack.i.l.bf16 %v8926_v24  ;;  %v8930_v24 = vld [vmem:[#allocation57_spill] sm:$0xff] }
 0x20c   : > { %v4550_v54 = vunpack.i.l.bf16 %v8930_v24  ;;  %v4551_v1 = vunpack.i.h.bf16 %v8930_v24 }
 0x20d   : > { %v6919_v19 = vsel %vm1922_vm9, %v1920_v51, %v4860_v17  ;;  %v6922_v14 = vsel %vm1922_vm9, %v1921_v0, %v4861_v61  ;;  %v1890_v17 = vsel %vm1889_vm8, %v1857_v4, %v4705_v58  ;;  %v8928_v51 = vld [vmem:[#allocation52_spill] sm:$0xff]  ;;  %v1924_v0 = vsel %vm1922_vm9, %v1891_v23, %v4786_v55  ;;  %v8929_v58 = vld [vmem:[#allocation54_spill] sm:$0xff] }
 0x20e   : > { %v4521_v60 = vunpack.i.h.bf16 %v8928_v51  ;;  %v1923_v25 = vsel %vm1922_vm9, %v1890_v17, %v4785_v63  ;;  %v4520_v26 = vunpack.i.l.bf16 %v8928_v51  ;;  %v1807_v9 = vsel %vm1790_vm4, %v6844_v28, %v4505_v48  ;;  %v8931_v4 = vld [vmem:[#allocation60_spill] sm:$0xff] }
 0x20f   : > { %v4864_v61 = vpop.permute.xlu1 %4863  ;;  %v4585_v39 = vunpack.i.l.bf16 %v8929_v58  ;;  %v1808_v63 = vsel %vm1790_vm4, %v6838_v27, %v4506_v31  ;;  %v4586_v55 = vunpack.i.h.bf16 %v8929_v58  ;;  %v4630_v16 = vunpack.i.l.bf16 %v8931_v4  ;;  %v8932_v23 = vld [vmem:[#allocation72_spill] sm:$0xff]  ;;  %v8933_v31 = vld [vmem:[#allocation87_spill] sm:$0xff] }
 0x210   : > { %v4866_v30 = vunpack.i.h.bf16 %v4864_v61  ;;  %v4865_v7 = vunpack.i.l.bf16 %v4864_v61  ;;  %v1834_v61 = vsel %vm1823_vm5, %v1801_v46, %v4570_v44  ;;  %v1835_v17 = vsel %vm1823_vm5, %v1802_v56, %v4571_v29  ;;  %v8934_v51 = vld [vmem:[#allocation92_spill] sm:$0xff] }
 0x211   : > { %v4651_v28 = vunpack.i.h.bf16 %v8932_v23  ;;  %v4650_v48 = vunpack.i.l.bf16 %v8932_v23  ;;  %v6972_v27 = vsel %vm1790_vm4, %v6856_v10, %v4521_v60  ;;  %v4730_v46 = vunpack.i.l.bf16 %v8933_v31 }
 0x212   : > { %v6945_v15 = vpop.permute.xlu0 %4873  ;;  %v1956_v22 = vsel %vm1955_vm10, %v1923_v25, %v4865_v7  ;;  %v1957_v13 = vsel %vm1955_vm10, %v1924_v0, %v4866_v30  ;;  %v6968_v30 = vsel %vm1790_vm4, %v6862_v45, %v4520_v26  ;;  %v4731_v7 = vunpack.i.h.bf16 %v8933_v31 }
 0x213   : > { %v1988_v11 = vpack.c.bf16 %v1957_v13, %v1956_v22  ;;  %v1840_v56 = vsel %vm1823_vm5, %v1807_v9, %v4585_v39  ;;  %v1826_v29 = vsel %vm1823_vm5, %v6880_v12, %v4550_v54  ;;  %v4811_v44 = vunpack.i.h.bf16 %v8934_v51  ;;  %v8935_v12 = vld [vmem:[#allocation83_spill] sm:$0xff] }
 0x214   : > { %v4810_v25 = vunpack.i.l.bf16 %v8934_v51  ;;  %v1841_v45 = vsel %vm1823_vm5, %v1808_v63, %v4586_v55  ;;  %v1827_v10 = vsel %vm1823_vm5, %v6886_v5, %v4551_v1  ;;  %v4631_v60 = vunpack.i.h.bf16 %v8931_v4 }
 0x215   : > { %4152 = vmatmul.msk.bf16.vlgmr.msra.gmra.mxu0 %vm2028_vm11, %v1988_v11  ;;  %v1859_v26 = vsel %vm1856_vm6, %v1826_v29, %v4630_v16  ;;  %v1867_v22 = vsel %vm1856_vm6, %v1834_v61, %v4650_v48  ;;  %v1868_v13 = vsel %vm1856_vm6, %v1835_v17, %v4651_v28  ;;  %v4711_v9 = vunpack.i.h.bf16 %v8935_v12  ;;  %v8936_v48 = vld [vmem:[#allocation75_spill] sm:$0xff] }
 0x216   : > { %v4710_v58 = vunpack.i.l.bf16 %v8935_v12  ;;  %v1900_v24 = vsel %vm1889_vm8, %v1867_v22, %v4730_v46  ;;  %v1901_v54 = vsel %vm1889_vm8, %v1868_v13, %v4731_v7  ;;  %v4791_v5 = vunpack.i.h.bf16 %v6675_v47 }
 0x217   : > { %v6981_v0 = vpop.permute.xlu1 %4878  ;;  %v4790_v55 = vunpack.i.l.bf16 %v6675_v47  ;;  %v1933_v1 = vsel %vm1922_vm9, %v1900_v24, %v4810_v25  ;;  %v1934_v4 = vsel %vm1922_vm9, %v1901_v54, %v4811_v44  ;;  %v4871_v16 = vunpack.i.h.bf16 %v6759_v3  ;;  %v8938_v25 = vld [vmem:[#allocation95_spill] sm:$0xff]  ;;  %v8940_v54 = vld [vmem:[#allocation62_spill] sm:$0xff] }
 0x218   : > { %v4870_v61 = vunpack.i.l.bf16 %v6759_v3  ;;  %v1860_v28 = vsel %vm1856_vm6, %v1827_v10, %v4631_v60  ;;  %v4666_v31 = vunpack.i.h.bf16 %v8936_v48  ;;  %v4665_v47 = vunpack.i.l.bf16 %v8936_v48  ;;  %v8937_v3 = vld [vmem:[#allocation90_spill] sm:$0xff] }
 0x219   : > { %v1892_v46 = vsel %vm1889_vm8, %v1859_v26, %v4710_v58  ;;  %v1893_v29 = vsel %vm1889_vm8, %v1860_v28, %v4711_v9  ;;  %v4746_v51 = vunpack.i.h.bf16 %v8937_v3  ;;  %v4745_v44 = vunpack.i.l.bf16 %v8937_v3 }
 0x21a   : > { %v4889_v39 = vpop.permute.xlu0 %4888  ;;  %v4826_v22 = vunpack.i.h.bf16 %v8938_v25  ;;  %v4825_v13 = vunpack.i.l.bf16 %v8938_v25  ;;  %v1925_v60 = vsel %vm1922_vm9, %v1892_v46, %v4790_v55  ;;  %v1926_v12 = vsel %vm1922_vm9, %v1893_v29, %v4791_v5  ;;  %v8941_v29 = vld [vmem:[#allocation69_spill] sm:$0xff] }
 0x21b   : > { %v4891_v11 = vunpack.i.h.bf16 %v4889_v39  ;;  %v4890_v63 = vunpack.i.l.bf16 %v4889_v39  ;;  %v8939_v39 = vld [vmem:[#allocation56_spill] sm:$0xff]  ;;  %v1958_v9 = vsel %vm1955_vm10, %v1925_v60, %v4870_v61  ;;  %v1959_v58 = vsel %vm1955_vm10, %v1926_v12, %v4871_v16  ;;  %v8942_v60 = vld [vmem:[#allocation78_spill] sm:$0xff] }
 0x21c   : > { %v4601_v24 = vunpack.i.h.bf16 %v8939_v39  ;;  %v4600_v26 = vunpack.i.l.bf16 %v8939_v39  ;;  %v4635_v3 = vunpack.i.l.bf16 %v8941_v29  ;;  %v1989_v61 = vpack.c.bf16 %v1959_v58, %v1958_v9  ;;  %v8943_v9 = vld [vmem:[#allocation93_spill] sm:$0xff] }
 0x21d   : > { %v7001_v17 = vsel %vm1955_vm10, %v1933_v1, %v4890_v63  ;;  %v7004_v23 = vsel %vm1955_vm10, %v1934_v4, %v4891_v11  ;;  %v4591_v11 = vunpack.i.h.bf16 %v8940_v54  ;;  %v4590_v63 = vunpack.i.l.bf16 %v8940_v54 }
 0x21e   : > { %v1993_v7 = vpack.c.bf16 %v7004_v23, %v7001_v17  ;;  %v1873_v1 = vsel %vm1856_vm6, %v1840_v56, %v4665_v47  ;;  %v1874_v4 = vsel %vm1856_vm6, %v1841_v45, %v4666_v31  ;;  %v4681_v12 = vunpack.i.h.bf16 %v8942_v60 }
 0x21f   : > { %v7017_v10 = vpop.permute.xlu1 %4893  ;;  %v1906_v55 = vsel %vm1889_vm8, %v1873_v1, %v4745_v44  ;;  %v1907_v5 = vsel %vm1889_vm8, %v1874_v4, %v4746_v51  ;;  %v4680_v56 = vunpack.i.l.bf16 %v8942_v60  ;;  %v1829_v47 = vsel %vm1823_vm5, %v6894_v8, %v4556_v57  ;;  %v8946_v1 = vld [vmem:[#allocation81_spill] sm:$0xff] }
 0x220   : > { %v1939_v16 = vsel %vm1922_vm9, %v1906_v55, %v4825_v13  ;;  %v1940_v25 = vsel %vm1922_vm9, %v1907_v5, %v4826_v22  ;;  %v1846_v51 = vsel %vm1823_vm5, %v6968_v30, %v4600_v26  ;;  %v1847_v44 = vsel %vm1823_vm5, %v6972_v27, %v4601_v24  ;;  %v8944_v30 = vld [vmem:[#allocation31_spill] sm:$0xff] }
 0x221   : > { %v1842_v13 = vsel %vm1823_vm5, %v6865_v62, %v4590_v63  ;;  %v1843_v39 = vsel %vm1823_vm5, %v6872_v50, %v4591_v11  ;;  %v4761_v33 = vunpack.i.h.bf16 %v8943_v9  ;;  %v4760_v58 = vunpack.i.l.bf16 %v8943_v9  ;;  %v8945_v62 = vld [vmem:[#allocation77_spill] sm:$0xff] }
 0x222   : > { %v4904_v28 = vpop.permute.xlu0 %4903  ;;  %v4636_v8 = vunpack.i.h.bf16 %v8941_v29  ;;  %v1861_v57 = vsel %vm1856_vm6, %v6931_v53, %v4635_v3  ;;  %v4841_v27 = vunpack.i.h.bf16 %v8944_v30  ;;  %v4840_v24 = vunpack.i.l.bf16 %v8944_v30  ;;  %v8947_v53 = vld [vmem:[#allocation85_spill] sm:$0xff] }
 0x223   : > { %v4906_v48 = vunpack.i.h.bf16 %v4904_v28  ;;  %v4905_v46 = vunpack.i.l.bf16 %v4904_v28  ;;  %v4671_v54 = vunpack.i.h.bf16 %v8945_v62  ;;  %v4670_v50 = vunpack.i.l.bf16 %v8945_v62 }
 0x224   : > { %v1879_v11 = vsel %vm1856_vm6, %v1846_v51, %v4680_v56  ;;  %v1880_v63 = vsel %vm1856_vm6, %v1847_v44, %v4681_v12  ;;  %v4751_v4 = vunpack.i.h.bf16 %v8946_v1  ;;  %v4750_v28 = vunpack.i.l.bf16 %v8946_v1 }
 0x225   : > { %v1972_v45 = vsel %vm1955_vm10, %v1939_v16, %v4905_v46  ;;  %v1973_v31 = vsel %vm1955_vm10, %v1940_v25, %v4906_v48  ;;  %4153 = vmatmul.msk.bf16.gmra.mxu0 %vm2028_vm11, %v1989_v61  ;;  %v4716_v55 = vunpack.i.h.bf16 %v8947_v53  ;;  %v4715_v5 = vunpack.i.l.bf16 %v8947_v53  ;;  %v8948_v16 = vld [vmem:[#allocation89_spill] sm:$0xff] }
 0x226   : > { %v1996_v22 = vpack.c.bf16 %v1973_v31, %v1972_v45  ;;  %v1912_v46 = vsel %vm1889_vm8, %v1879_v11, %v4760_v58  ;;  %v1913_v29 = vsel %vm1889_vm8, %v1880_v63, %v4761_v33  ;;  %v4796_v25 = vunpack.i.h.bf16 %v8948_v16 }
 0x227   : > { %v4909_v26 = vpop.permute.xlu1 %4908  ;;  %v4795_v60 = vunpack.i.l.bf16 %v8948_v16  ;;  %v1945_v12 = vsel %vm1922_vm9, %v1912_v46, %v4840_v24  ;;  %v1946_v56 = vsel %vm1922_vm9, %v1913_v29, %v4841_v27  ;;  %v4876_v45 = vunpack.i.h.bf16 %v6945_v15  ;;  %v8950_v29 = vld [vmem:[#allocation50_spill] sm:$0xff] }
 0x228   : > { %4160 = vmatmul.msk.bf16.vlgmr.msra.gmra.mxu2 %vm2028_vm11, %v1996_v22  ;;  %v4875_v31 = vunpack.i.l.bf16 %v6945_v15  ;;  %v1862_v22 = vsel %vm1856_vm6, %v1829_v47, %v4636_v8  ;;  %v4831_v9 = vunpack.i.h.bf16 %v6801_v36  ;;  %v4830_v33 = vunpack.i.l.bf16 %v6801_v36  ;;  %v8951_v16 = vld [vmem:[#allocation58_spill] sm:$0xff] }
 0x229   : > { %v1894_v30 = vsel %vm1889_vm8, %v1861_v57, %v4715_v5  ;;  %v1895_v27 = vsel %vm1889_vm8, %v1862_v22, %v4716_v55  ;;  %v4911_v15 = vunpack.i.h.bf16 %v4909_v26  ;;  %v4910_v24 = vunpack.i.l.bf16 %v4909_v26  ;;  %v8949_v55 = vld [vmem:[#allocation43_spill] sm:$0xff] }
 0x22a   : > { %v4919_v48 = vpop.permute.xlu0 %4918  ;;  %v1875_v62 = vsel %vm1856_vm6, %v1842_v13, %v4670_v50  ;;  %v1876_v11 = vsel %vm1856_vm6, %v1843_v39, %v4671_v54  ;;  %v1927_v47 = vsel %vm1922_vm9, %v1894_v30, %v4795_v60  ;;  %v1928_v8 = vsel %vm1922_vm9, %v1895_v27, %v4796_v25  ;;  %v7100_v50 = vpop.permute.xlu2 %4898 }
 0x22b   : > { %v4921_v3 = vunpack.i.h.bf16 %v4919_v48  ;;  %v4920_v61 = vunpack.i.l.bf16 %v4919_v48  ;;  %v1908_v36 = vsel %vm1889_vm8, %v1875_v62, %v4750_v28  ;;  %v1909_v1 = vsel %vm1889_vm8, %v1876_v11, %v4751_v4 }
 0x22c   : > { %v1960_v57 = vsel %vm1955_vm10, %v1927_v47, %v4875_v31  ;;  %v1961_v53 = vsel %vm1955_vm10, %v1928_v8, %v4876_v45  ;;  %v4481_v26 = vunpack.i.h.bf16 %v8949_v55  ;;  %v4480_v13 = vunpack.i.l.bf16 %v8949_v55  ;;  %v8957_v55 = vld [vmem:[#allocation71_spill] sm:$0xff] }
 0x22d   : > { %v7076_v51 = vsel %vm1955_vm10, %v1945_v12, %v4920_v61  ;;  %v7079_v44 = vsel %vm1955_vm10, %v1946_v56, %v4921_v3  ;;  %v1941_v54 = vsel %vm1922_vm9, %v1908_v36, %v4830_v33  ;;  %v1942_v5 = vsel %vm1922_vm9, %v1909_v1, %v4831_v9  ;;  %v8952_v56 = vld [vmem:[#allocation63_spill] sm:$0xff]  ;;  %v8953_v9 = vld [vmem:[#allocation30_spill] sm:$0xff] }
 0x22e   : > { %v1999_v58 = vpack.c.bf16 %v7079_v44, %v7076_v51  ;;  %v1974_v28 = vsel %vm1955_vm10, %v1941_v54, %v4910_v24  ;;  %v1975_v4 = vsel %vm1955_vm10, %v1942_v5, %v4911_v15  ;;  %v4516_v3 = vunpack.i.h.bf16 %v8950_v29  ;;  %v5585_v51 = vld [vmem:[#allocation2 + $0x120] sm:$0xff] }
 0x22f   : > { %v7090_v63 = vpop.permute.xlu1 %4923  ;;  %v4515_v61 = vunpack.i.l.bf16 %v8950_v29  ;;  %v4561_v25 = vunpack.i.h.bf16 %v8951_v16  ;;  %v1990_v60 = vpack.c.bf16 %v1961_v53, %v1960_v57  ;;  %v4560_v12 = vunpack.i.l.bf16 %v8951_v16  ;;  %v8956_v57 = vld [vmem:[#allocation67_spill] sm:$0xff] }
 0x230   : > { %v4595_v45 = vunpack.i.l.bf16 %v8952_v56  ;;  %v1765_v33 = vsel %vm1757_vm3, %v8953_v9, %v4401_v43  ;;  %v4596_v30 = vunpack.i.h.bf16 %v8952_v56  ;;  %v1997_v27 = vpack.c.bf16 %v1975_v4, %v1974_v28  ;;  %v8959_v4 = vld [vmem:[#allocation21_spill] sm:$0xff] }
 0x231   : > { %v8955_v43 = vunpack.i.l.bf16 %v6332_v52  ;;  %v1798_v11 = vsel %vm1790_vm4, %v1765_v33, %v4481_v26  ;;  %v4676_v53 = vunpack.i.h.bf16 %v8956_v57  ;;  %v4641_v26 = vunpack.i.h.bf16 %v8957_v55 }
 0x232   : > { %v4934_v39 = vpop.permute.xlu0 %4933  ;;  %v4675_v28 = vunpack.i.l.bf16 %v8956_v57  ;;  %v4801_v29 = vunpack.i.h.bf16 %v8959_v4  ;;  %v4880_v56 = vunpack.i.l.bf16 %v6981_v0  ;;  %v4836_v9 = vunpack.i.h.bf16 %v6829_v49 }
 0x233   : > { %v4936_v48 = vunpack.i.h.bf16 %v4934_v39  ;;  %v4935_v46 = vunpack.i.l.bf16 %v4934_v39  ;;  %v1764_v62 = vsel %vm1757_vm3, %v6714_v32, %v8955_v43  ;;  %v8958_v39 = vld [vmem:[#allocation76_spill] sm:$0xff]  ;;  %v4835_v33 = vunpack.i.l.bf16 %v6829_v49 }
 0x234   : > { %v1797_v47 = vsel %vm1790_vm4, %v1764_v62, %v4480_v13  ;;  %v4640_v13 = vunpack.i.l.bf16 %v8957_v55  ;;  %v4721_v54 = vunpack.i.h.bf16 %v8958_v39  ;;  %v4720_v5 = vunpack.i.l.bf16 %v8958_v39 }
 0x235   : > { %v7113_v31 = vsel %vm1955_vm10, %v6701_v59, %v4935_v46  ;;  %v7117_v22 = vsel %vm1955_vm10, %v6704_v21, %v4936_v48  ;;  %4154 = vmatmul.msk.bf16.gmra.mxu0 %vm2028_vm11, %v1990_v60  ;;  %v1779_v59 = vsel %vm1757_vm3, %v6745_v40, %v4436_v34  ;;  %v8954_v21 = vunpack.i.l.bf16 %v6312_v37 }
 0x236   : > { %v2002_v15 = vpack.c.bf16 %v7117_v22, %v7113_v31  ;;  %v1812_v8 = vsel %vm1790_vm4, %v1779_v59, %v4516_v3  ;;  %v1831_v40 = vsel %vm1823_vm5, %v1798_v11, %v4561_v25  ;;  %v4800_v3 = vunpack.i.l.bf16 %v8959_v4  ;;  %v8960_v25 = vld [vmem:[#allocation91_spill] sm:$0xff]  ;;  %v5584_v4 = vld [vmem:[#allocation2 + $0x128] sm:$0xff] }
 0x237   : > { %v1778_v24 = vsel %vm1757_vm3, %v6749_v6, %v8954_v21  ;;  %v4939_v37 = vpop.permute.xlu1 %4938  ;;  %v1830_v6 = vsel %vm1823_vm5, %v1797_v47, %v4560_v12  ;;  %v1845_v32 = vsel %vm1823_vm5, %v1812_v8, %v4596_v30  ;;  %v4756_v60 = vunpack.i.h.bf16 %v8960_v25 }
 0x238   : > { %v1811_v36 = vsel %vm1790_vm4, %v1778_v24, %v4515_v61  ;;  %4161 = vmatmul.msk.bf16.gmra.mxu2 %vm2028_vm11, %v1997_v27  ;;  %v4941_v34 = vunpack.i.h.bf16 %v4939_v37  ;;  %v4940_v1 = vunpack.i.l.bf16 %v4939_v37  ;;  %v4914_v61 = vpop.permute.xlu2 %4913  ;;  %v4755_v12 = vunpack.i.l.bf16 %v8960_v25 }
 0x239   : > { %v1844_v52 = vsel %vm1823_vm5, %v1811_v36, %v4595_v45  ;;  %v1864_v45 = vsel %vm1856_vm6, %v1831_v40, %v4641_v26  ;;  %v4916_v59 = vunpack.i.h.bf16 %v4914_v61  ;;  %v4915_v21 = vunpack.i.l.bf16 %v4914_v61 }
 0x23a   : > { %v7155_v48 = vsel %vm1955_vm10, %v6919_v19, %v4940_v1  ;;  %v7159_v46 = vsel %vm1955_vm10, %v6922_v14, %v4941_v34  ;;  %v4881_v19 = vunpack.i.h.bf16 %v6981_v0  ;;  %v1863_v14 = vsel %vm1856_vm6, %v1830_v6, %v4640_v13  ;;  %v8961_v1 = vld [vmem:[#allocation38_spill] sm:$0xff] }
 0x23b   : > { %v2003_v16 = vpack.c.bf16 %v7159_v46, %v7155_v48  ;;  %v1896_v30 = vsel %vm1889_vm8, %v1863_v14, %v4720_v5  ;;  %v1897_v27 = vsel %vm1889_vm8, %v1864_v45, %v4721_v54  ;;  %v1877_v24 = vsel %vm1856_vm6, %v1844_v52, %v4675_v28  ;;  %v8963_v13 = vld [vmem:[#allocation46_spill] sm:$0xff] }
 0x23c   : > { %v1878_v43 = vsel %vm1856_vm6, %v1845_v32, %v4676_v53  ;;  %v1929_v0 = vsel %vm1922_vm9, %v1896_v30, %v4800_v3  ;;  %v1930_v62 = vsel %vm1922_vm9, %v1897_v27, %v4801_v29  ;;  %v1910_v11 = vsel %vm1889_vm8, %v1877_v24, %v4755_v12  ;;  %v8962_v53 = vld [vmem:[#allocation45_spill] sm:$0xff]  ;;  %v8967_v12 = vld [vmem:[#allocation84_spill] sm:$0xff] }
 0x23d   : > { %v1911_v47 = vsel %vm1889_vm8, %v1878_v43, %v4756_v60  ;;  %v1962_v49 = vsel %vm1955_vm10, %v1929_v0, %v4880_v56  ;;  %v1963_v8 = vsel %vm1955_vm10, %v1930_v62, %v4881_v19  ;;  %v1943_v36 = vsel %vm1922_vm9, %v1910_v11, %v4835_v33  ;;  %v5586_v11 = vld [vmem:[#allocation2 + $0x98] sm:$0xff] }
 0x23e   : > { %v1944_v40 = vsel %vm1922_vm9, %v1911_v47, %v4836_v9  ;;  %v1976_v37 = vsel %vm1955_vm10, %v1943_v36, %v4915_v21  ;;  %v1991_v52 = vpack.c.bf16 %v1963_v8, %v1962_v49  ;;  %v4366_v32 = vunpack.i.h.bf16 %v8961_v1  ;;  %v8968_v36 = vld [vmem:[#allocation40_spill] sm:$0xff] }
 0x23f   : > { %v1977_v6 = vsel %vm1955_vm10, %v1944_v40, %v4916_v59  ;;  %v4365_v57 = vunpack.i.l.bf16 %v8961_v1  ;;  %v4446_v55 = vunpack.i.h.bf16 %v8962_v53  ;;  %v4445_v26 = vunpack.i.l.bf16 %v8962_v53 }
 0x240   : > { %v1998_v34 = vpack.c.bf16 %v1977_v6, %v1976_v37  ;;  %v4526_v39 = vunpack.i.h.bf16 %v8963_v13  ;;  %v4525_v54 = vunpack.i.l.bf16 %v8963_v13  ;;  %v1750_v29 = vsel %vm226_vm0, %v5584_v4, %v4366_v32  ;;  %v8970_v32 = vld [vmem:[#allocation42_spill] sm:$0xff] }
 0x241   : > { %v1749_v44 = vsel %vm226_vm0, %v5585_v51, %v4365_v57  ;;  %v1783_v60 = vsel %vm1757_vm3, %v1750_v29, %v4446_v55  ;;  %v4766_v19 = vunpack.i.h.bf16 %v8967_v12  ;;  %v4765_v56 = vunpack.i.l.bf16 %v8967_v12  ;;  %v8971_v55 = vld [vmem:[#allocation44_spill] sm:$0xff] }
 0x242   : > { %v1782_v25 = vsel %vm1757_vm3, %v1749_v44, %v4445_v26  ;;  %v1816_v45 = vsel %vm1790_vm4, %v1783_v60, %v4526_v39  ;;  %v4846_v9 = vunpack.i.h.bf16 %v6850_v42  ;;  %v4845_v33 = vunpack.i.l.bf16 %v6850_v42  ;;  %v8972_v39 = vld [vmem:[#allocation53_spill] sm:$0xff]  ;;  %v5588_v51 = vld [vmem:[#allocation2 + $0x140] sm:$0xff] }
 0x243   : > { %v1815_v14 = vsel %vm1790_vm4, %v1782_v25, %v4525_v54  ;;  %v4926_v59 = vunpack.i.h.bf16 %v7090_v63  ;;  %v4925_v21 = vunpack.i.l.bf16 %v7090_v63  ;;  %v1738_v47 = vsel %vm226_vm0, %v5586_v11, %v4336_v41  ;;  %v5587_v41 = vld [vmem:[#allocation2 + $0x90] sm:$0xff] }
 0x244   : > { %v4335_v42 = vunpack.i.l.bf16 %v8964_v38  ;;  %v4371_v40 = vunpack.i.h.bf16 %v8968_v36  ;;  %v4370_v63 = vunpack.i.l.bf16 %v8968_v36  ;;  %v4416_v57 = vunpack.i.h.bf16 %v8970_v32  ;;  %v8977_v11 = vld [vmem:[#allocation70_spill] sm:$0xff]  ;;  %v4929_v36 = vpop.permute.xlu2 %4928 }
 0x245   : > { %4155 = vmatmul.msk.bf16.gmra.mxu0 %vm2028_vm11, %v1991_v52  ;;  %v8969_v52 = vld [vmem:[#allocation41_spill] sm:$0xff]  ;;  %v4415_v53 = vunpack.i.l.bf16 %v8970_v32  ;;  %v4496_v26 = vunpack.i.h.bf16 %v8971_v55  ;;  %v4495_v13 = vunpack.i.l.bf16 %v8971_v55  ;;  %v4531_v54 = vunpack.i.h.bf16 %v8972_v39 }
 0x246   : > { %v4450_v1 = vunpack.i.l.bf16 %v8969_v52  ;;  %v4530_v38 = vunpack.i.l.bf16 %v8972_v39  ;;  %v1752_v44 = vsel %vm226_vm0, %v5588_v51, %v4371_v40  ;;  %v1771_v17 = vsel %vm1757_vm3, %v1738_v47, %v4416_v57  ;;  %v8978_v40 = vld [vmem:[#allocation94_spill] sm:$0xff] }
 0x247   : > { %v4691_v47 = vunpack.i.h.bf16 %v8977_v11  ;;  %v4851_v32 = vunpack.i.h.bf16 %v6899_v2  ;;  %v4850_v57 = vunpack.i.l.bf16 %v6899_v2  ;;  %v4931_v55 = vunpack.i.h.bf16 %v4929_v36 }
 0x248   : > { %4162 = vmatmul.msk.bf16.gmra.mxu2 %vm2028_vm11, %v1998_v34  ;;  %v4451_v34 = vunpack.i.h.bf16 %v8969_v52  ;;  %v4895_v52 = vunpack.i.l.bf16 %v7017_v10 }
 0x24a   : > { %v1785_v12 = vsel %vm1757_vm3, %v1752_v44, %v4451_v34  ;;  %v8979_v44 = vld [vmem:[#allocation37_spill] sm:$0xff] }
 0x255   : > { %4156 = vmatmul.msk.bf16.gmra.mxu0 %vm2028_vm11, %v1992_v35  ;;  %v8965_v35 = vld [vmem:[#allocation64_spill] sm:$0xff] }
 0x256   : > { %v4606_v5 = vunpack.i.h.bf16 %v8965_v35  ;;  %v4605_v28 = vunpack.i.l.bf16 %v8965_v35  ;;  %v1737_v35 = vsel %vm226_vm0, %v5587_v41, %v4335_v42  ;;  %v4690_v42 = vunpack.i.l.bf16 %v8977_v11 }
 0x258   : > { %4163 = vmatmul.msk.bf16.gmra.mxu2 %vm2028_vm11, %v1999_v58  ;;  %v8966_v58 = vld [vmem:[#allocation80_spill] sm:$0xff]  ;;  %v1848_v30 = vsel %vm1823_vm5, %v1815_v14, %v4605_v28  ;;  %v1849_v27 = vsel %vm1823_vm5, %v1816_v45, %v4606_v5  ;;  %v8973_v5 = vld [vmem:[#allocation59_spill] sm:$0xff]  ;;  %v1818_v14 = vsel %vm1790_vm4, %v1785_v12, %v4531_v54 }
 0x259   : > { %v4686_v3 = vunpack.i.h.bf16 %v8966_v58  ;;  %v4685_v61 = vunpack.i.l.bf16 %v8966_v58  ;;  %v4576_v28 = vunpack.i.h.bf16 %v8973_v5  ;;  %v4575_v4 = vunpack.i.l.bf16 %v8973_v5  ;;  %v5589_v58 = vld [vmem:[#allocation2 + $0x138] sm:$0xff] }
 0x25b   : > { %v1881_v24 = vsel %vm1856_vm6, %v1848_v30, %v4685_v61  ;;  %v1882_v43 = vsel %vm1856_vm6, %v1849_v27, %v4686_v3  ;;  %v1751_v3 = vsel %vm226_vm0, %v5589_v58, %v4370_v63  ;;  %v8974_v61 = vld [vmem:[#allocation66_spill] sm:$0xff]  ;;  %v4771_v63 = vunpack.i.h.bf16 %v8978_v40 }
 0x25c   : > { %v1914_v0 = vsel %vm1889_vm8, %v1881_v24, %v4765_v56  ;;  %v1915_v62 = vsel %vm1889_vm8, %v1882_v43, %v4766_v19  ;;  %v4611_v25 = vunpack.i.h.bf16 %v8974_v61  ;;  %v4610_v60 = vunpack.i.l.bf16 %v8974_v61  ;;  %v8975_v30 = vld [vmem:[#allocation74_spill] sm:$0xff]  ;;  %v8976_v43 = vld [vmem:[#allocation79_spill] sm:$0xff] }
 0x25d   : > { %v1947_v49 = vsel %vm1922_vm9, %v1914_v0, %v4845_v33  ;;  %v1948_v8 = vsel %vm1922_vm9, %v1915_v62, %v4846_v9  ;;  %v1784_v19 = vsel %vm1757_vm3, %v1751_v3, %v4450_v1  ;;  %v1770_v56 = vsel %vm1757_vm3, %v1737_v35, %v4415_v53 }
 0x25e   : > { %v1980_v37 = vsel %vm1955_vm10, %v1947_v49, %v4925_v21  ;;  %v1981_v6 = vsel %vm1955_vm10, %v1948_v8, %v4926_v59  ;;  %v1803_v23 = vsel %vm1790_vm4, %v1770_v56, %v4495_v13  ;;  %v1817_v45 = vsel %vm1790_vm4, %v1784_v19, %v4530_v38  ;;  %v8981_v19 = vld [vmem:[#allocation47_spill] sm:$0xff] }
 0x25f   : > { %v2000_v29 = vpack.c.bf16 %v1981_v6, %v1980_v37  ;;  %v1836_v9 = vsel %vm1823_vm5, %v1803_v23, %v4575_v4  ;;  %v4656_v27 = vunpack.i.h.bf16 %v8975_v30  ;;  %v4655_v59 = vunpack.i.l.bf16 %v8975_v30  ;;  %v8982_v23 = vld [vmem:[#allocation61_spill] sm:$0xff] }
 0x260   : > { %v1850_v21 = vsel %vm1823_vm5, %v1817_v45, %v4610_v60  ;;  %v1851_v24 = vsel %vm1823_vm5, %v1818_v14, %v4611_v25  ;;  %v4736_v0 = vunpack.i.h.bf16 %v8976_v43  ;;  %v4735_v62 = vunpack.i.l.bf16 %v8976_v43  ;;  %v8980_v25 = vld [vmem:[#allocation39_spill] sm:$0xff]  ;;  %v5590_v45 = vld [vmem:[#allocation2 + $0xb0] sm:$0xff] }
 0x261   : > { %v4816_v49 = vunpack.i.h.bf16 %v6732_v20  ;;  %v4815_v8 = vunpack.i.l.bf16 %v6732_v20  ;;  %v4770_v37 = vunpack.i.l.bf16 %v8978_v40  ;;  %v4896_v6 = vunpack.i.h.bf16 %v7017_v10 }
 0x262   : > { %v1869_v34 = vsel %vm1856_vm6, %v1836_v9, %v4655_v59  ;;  %v1883_v13 = vsel %vm1856_vm6, %v1850_v21, %v4690_v42  ;;  %v1884_v39 = vsel %vm1856_vm6, %v1851_v24, %v4691_v47  ;;  %v4341_v58 = vunpack.i.h.bf16 %v8979_v44 }
 0x263   : > { %v1902_v53 = vsel %vm1889_vm8, %v1869_v34, %v4735_v62  ;;  %v1916_v38 = vsel %vm1889_vm8, %v1883_v13, %v4770_v37  ;;  %v1917_v41 = vsel %vm1889_vm8, %v1884_v39, %v4771_v63  ;;  %v4340_v3 = vunpack.i.l.bf16 %v8979_v44 }
 0x264   : > { %v1935_v10 = vsel %vm1922_vm9, %v1902_v53, %v4815_v8  ;;  %v1949_v5 = vsel %vm1922_vm9, %v1916_v38, %v4850_v57  ;;  %v4421_v60 = vunpack.i.h.bf16 %v8980_v25  ;;  %v4420_v12 = vunpack.i.l.bf16 %v8980_v25 }
 0x265   : > { %4157 = vmatmul.msk.bf16.gmra.mxu0 %vm2028_vm11, %v1993_v7  ;;  %v1804_v7 = vsel %vm1790_vm4, %v1771_v17, %v4496_v26  ;;  %v4930_v26 = vunpack.i.l.bf16 %v4929_v36  ;;  %v1968_v2 = vsel %vm1955_vm10, %v1935_v10, %v4895_v52  ;;  %v4501_v56 = vunpack.i.h.bf16 %v8981_v19  ;;  %v2268_v10 = vld [vmem:[#allocation3 + $0x9] sm:$0xff] }
 0x266   : > { %v1837_v33 = vsel %vm1823_vm5, %v1804_v7, %v4576_v28  ;;  %v1950_v28 = vsel %vm1922_vm9, %v1917_v41, %v4851_v32  ;;  %v4500_v17 = vunpack.i.l.bf16 %v8981_v19  ;;  %v4581_v7 = vunpack.i.h.bf16 %v8982_v23 }
 0x267   : > { %v1870_v1 = vsel %vm1856_vm6, %v1837_v33, %v4656_v27  ;;  %v1982_v4 = vsel %vm1955_vm10, %v1949_v5, %v4930_v26  ;;  %v4580_v14 = vunpack.i.l.bf16 %v8982_v23  ;;  %v1740_v9 = vsel %vm226_vm0, %v5590_v45, %v4341_v58  ;;  %v5591_v33 = vld [vmem:[#allocation2 + $0xa8] sm:$0xff] }
 0x268   : > { %4164 = vmatmul.msk.bf16.gmra.mxu2 %vm2028_vm11, %v2000_v29  ;;  %v1903_v20 = vsel %vm1889_vm8, %v1870_v1, %v4736_v0  ;;  %v1983_v29 = vsel %vm1955_vm10, %v1950_v28, %v4931_v55  ;;  %v1739_v30 = vsel %vm226_vm0, %v5591_v33, %v4340_v3  ;;  %v8983_v27 = vld [vmem:[#allocation65_spill] sm:$0xff]  ;;  %v1773_v24 = vsel %vm1757_vm3, %v1740_v9, %v4421_v60  ;;  %v8984_v0 = vld [vmem:[#allocation88_spill] sm:$0xff] }
 0x269   : > { %v1936_v54 = vsel %vm1922_vm9, %v1903_v20, %v4816_v49  ;;  %v2001_v61 = vpack.c.bf16 %v1983_v29, %v1982_v4  ;;  %v4661_v59 = vunpack.i.h.bf16 %v8983_v27  ;;  %v4660_v21 = vunpack.i.l.bf16 %v8983_v27 }
 0x26a   : > { %v1969_v35 = vsel %vm1955_vm10, %v1936_v54, %v4896_v6  ;;  %v1772_v43 = vsel %vm1757_vm3, %v1739_v30, %v4420_v12  ;;  %v4741_v62 = vunpack.i.h.bf16 %v8984_v0  ;;  %v4740_v11 = vunpack.i.l.bf16 %v8984_v0 }
 0x26b   : > { %v1994_v51 = vpack.c.bf16 %v1969_v35, %v1968_v2  ;;  %v1806_v47 = vsel %vm1790_vm4, %v1773_v24, %v4501_v56  ;;  %v1805_v42 = vsel %vm1790_vm4, %v1772_v43, %v4500_v17  ;;  %v4821_v49 = vunpack.i.h.bf16 %v6785_v18 }
 0x26c   : > { %v4820_v8 = vunpack.i.l.bf16 %v6785_v18  ;;  %v1838_v36 = vsel %vm1823_vm5, %v1805_v42, %v4580_v14  ;;  %v1839_v40 = vsel %vm1823_vm5, %v1806_v47, %v4581_v7  ;;  %v4901_v63 = vunpack.i.h.bf16 %v7100_v50 }
 0x26d   : > { %v4900_v37 = vunpack.i.l.bf16 %v7100_v50  ;;  %v1871_v6 = vsel %vm1856_vm6, %v1838_v36, %v4660_v21  ;;  %v1872_v52 = vsel %vm1856_vm6, %v1839_v40, %v4661_v59  ;;  %v7339_v50 = vld [vmem:[%s8637_s2] ss:$0 sm:$0xff] }
 0x26e   : > { %v1904_v34 = vsel %vm1889_vm8, %v1871_v6, %v4740_v11  ;;  %v1905_v1 = vsel %vm1889_vm8, %v1872_v52, %v4741_v62 }
 0x26f   : > { %v1937_v32 = vsel %vm1922_vm9, %v1904_v34, %v4820_v8  ;;  %v1938_v18 = vsel %vm1922_vm9, %v1905_v1, %v4821_v49 }
 0x270   : > { %v1970_v57 = vsel %vm1955_vm10, %v1937_v32, %v4900_v37  ;;  %v1971_v53 = vsel %vm1955_vm10, %v1938_v18, %v4901_v63 }
 0x271   : > { %v1995_v20 = vpack.c.bf16 %v1971_v53, %v1970_v57 }
 0x275   : > { %4158 = vmatmul.msk.bf16.gmra.mxu0 %vm2028_vm11, %v1994_v51 }
 0x278   : > { %4165 = vmatmul.msk.bf16.gmra.mxu2 %vm2028_vm11, %v2001_v61 }
 0x285   : > { %4159 = vmatmul.msk.bf16.gmra.mxu0 %vm2028_vm11, %v1995_v20 }
 0x288   : > { %4166 = vmatmul.msk.bf16.gmra.mxu2 %vm2028_vm11, %v2002_v15  ;;  %v2267_v15 = vld [vmem:[#allocation3 + $0x1] sm:$0xff] }
 0x289   : > { %v4942_v54 = vpack.i.bf16 %v2268_v10, %v2267_v15 }
 0x28b   : > { %4943 = vrot.lane.b32.xlu2 %v4942_v54, %s5601_s20 }
 0x292   : > { %v2090_v55 = vpop.f32.mrf.mxu0 }
 0x293   : > { %v2091_v26 = vadd.f32 %v7339_v50, %v2090_v55 }
 0x295   : > { %v2170_v13 = vmax.f32 %v2091_v26, 0.0 }
 0x297   : > { %2203 = vst.msk [vmem:[#allocation3 + $0x19] sm:$0xff] %vm226_vm0, %v2170_v13 }
 0x298   : > { %4167 = vmatmul.msk.bf16.gmra.mxu2 %vm2028_vm11, %v2003_v16 }
 0x29a   : > { %v2092_v39 = vpop.f32.mrf.mxu0 }
 0x29b   : > { %v2093_v31 = vadd.f32 %v7339_v50, %v2092_v39 }
 0x29d   : > { %v2171_v22 = vmax.f32 %v2093_v31, 0.0 }
 0x29e   : > { %v2269_v35 = vld [vmem:[#allocation3 + $0x19] sm:$0xff] }
 0x29f   : > { %2204 = vst.msk [vmem:[#allocation3 + $0x21] sm:$0xff] %vm226_vm0, %v2171_v22 }
 0x2a2   : > { %v2095_v38 = vpop.f32.mrf.mxu0 }
 0x2a3   : > { %v2096_v41 = vadd.f32 %v7339_v50, %v2095_v38 }
 0x2a5   : > { %v2172_v2 = vmax.f32 %v2096_v41, 0.0 }
 0x2a6   : > { %v2270_v5 = vld [vmem:[#allocation3 + $0x21] sm:$0xff] }
 0x2a7   : > { %2205 = vst.msk [vmem:[#allocation3 + $0x31] sm:$0xff] %vm226_vm0, %v2172_v2  ;;  %v7352_v48 = vpack.i.bf16 %v2270_v5, %v2269_v35 }
 0x2a9   : > { %4948 = vrot.lane.b32.xlu0 %v7352_v48, %s5601_s20 }
 0x2aa   : > { %v2097_v16 = vpop.f32.mrf.mxu0 }
 0x2ab   : > { %v2130_v46 = vpop.f32.mrf.mxu2  ;;  %v2098_v4 = vadd.f32 %v7339_v50, %v2097_v16 }
 0x2ac   : > { %v2131_v28 = vadd.f32 %v7339_v50, %v2130_v46 }
 0x2ad   : > { %v2173_v51 = vmax.f32 %v2098_v4, 0.0 }
 0x2ae   : > { %v2186_v29 = vmax.f32 %v2131_v28, 0.0  ;;  %v2271_v12 = vld [vmem:[#allocation3 + $0x31] sm:$0xff] }
 0x2af   : > { %2206 = vst.msk [vmem:[#allocation3 + $0x39] sm:$0xff] %vm226_vm0, %v2173_v51 }
 0x2b0   : > { %2219 = vst.msk [vmem:[#allocation3 + $0xd9] sm:$0xff] %vm226_vm0, %v2186_v29 }
 0x2b2   : > { %v2100_v58 = vpop.f32.mrf.mxu0 }
 0x2b3   : > { %v2132_v44 = vpop.f32.mrf.mxu2  ;;  %v2101_v61 = vadd.f32 %v7339_v50, %v2100_v58 }
 0x2b4   : > { %v2133_v3 = vadd.f32 %v7339_v50, %v2132_v44 }
 0x2b5   : > { %v2174_v60 = vmax.f32 %v2101_v61, 0.0 }
 0x2b6   : > { %v2187_v25 = vmax.f32 %v2133_v3, 0.0  ;;  %v2272_v19 = vld [vmem:[#allocation3 + $0x39] sm:$0xff] }
 0x2b7   : > { %2207 = vst.msk [vmem:[#allocation3 + $0x49] sm:$0xff] %vm226_vm0, %v2174_v60  ;;  %v7364_v56 = vpack.i.bf16 %v2272_v19, %v2271_v12  ;;  %v2285_v63 = vld [vmem:[#allocation3 + $0xd9] sm:$0xff] }
 0x2b8   : > { %2220 = vst.msk [vmem:[#allocation3 + $0xe1] sm:$0xff] %vm226_vm0, %v2187_v25 }
 0x2b9   : > { %4953 = vrot.lane.b32.xlu1 %v7364_v56, %s5601_s20 }
 0x2ba   : > { %v2102_v23 = vpop.f32.mrf.mxu0 }
 0x2bb   : > { %v2135_v17 = vpop.f32.mrf.mxu2  ;;  %v2103_v14 = vadd.f32 %v7339_v50, %v2102_v23 }
 0x2bc   : > { %v2136_v7 = vadd.f32 %v7339_v50, %v2135_v17 }
 0x2bd   : > { %v2175_v9 = vmax.f32 %v2103_v14, 0.0 }
 0x2be   : > { %v2188_v45 = vmax.f32 %v2136_v7, 0.0  ;;  %v2273_v43 = vld [vmem:[#allocation3 + $0x49] sm:$0xff] }
 0x2bf   : > { %2208 = vst.msk [vmem:[#allocation3 + $0x51] sm:$0xff] %vm226_vm0, %v2175_v9  ;;  %v2286_v40 = vld [vmem:[#allocation3 + $0xe1] sm:$0xff] }
 0x2c0   : > { %2221 = vst.msk [vmem:[#allocation3 + $0xf1] sm:$0xff] %vm226_vm0, %v2188_v45  ;;  %v7384_v37 = vpack.i.bf16 %v2286_v40, %v2285_v63 }
 0x2c2   : > { %v2105_v30 = vpop.f32.mrf.mxu0 }
 0x2c3   : > { %v2137_v33 = vpop.f32.mrf.mxu2  ;;  %v2106_v59 = vadd.f32 %v7339_v50, %v2105_v30 }
 0x2c4   : > { %v2138_v27 = vadd.f32 %v7339_v50, %v2137_v33 }
 0x2c5   : > { %v2176_v24 = vmax.f32 %v2106_v59, 0.0 }
 0x2c6   : > { %v2189_v21 = vmax.f32 %v2138_v27, 0.0  ;;  %v2274_v0 = vld [vmem:[#allocation3 + $0x51] sm:$0xff] }
 0x2c7   : > { %2209 = vst.msk [vmem:[#allocation3 + $0x61] sm:$0xff] %vm226_vm0, %v2176_v24  ;;  %v7376_v62 = vpack.i.bf16 %v2274_v0, %v2273_v43  ;;  %v2287_v10 = vld [vmem:[#allocation3 + $0xf1] sm:$0xff] }
 0x2c8   : > { %2222 = vst.msk [vmem:[#allocation3 + $0xf9] sm:$0xff] %vm226_vm0, %v2189_v21 }
 0x2c9   : > { %4958 = vrot.lane.b32.xlu2 %v7376_v62, %s5601_s20 }
 0x2ca   : > { %v2107_v47 = vpop.f32.mrf.mxu0 }
 0x2cb   : > { %v2140_v11 = vpop.f32.mrf.mxu2  ;;  %v2108_v49 = vadd.f32 %v7339_v50, %v2107_v47 }
 0x2cc   : > { %v2141_v42 = vadd.f32 %v7339_v50, %v2140_v11 }
 0x2cd   : > { %v2177_v36 = vmax.f32 %v2108_v49, 0.0 }
 0x2ce   : > { %v2190_v8 = vmax.f32 %v2141_v42, 0.0  ;;  %v2275_v57 = vld [vmem:[#allocation3 + $0x61] sm:$0xff] }
 0x2cf   : > { %2210 = vst.msk [vmem:[#allocation3 + $0x69] sm:$0xff] %vm226_vm0, %v2177_v36  ;;  %v2288_v15 = vld [vmem:[#allocation3 + $0xf9] sm:$0xff] }
 0x2d0   : > { %2223 = vst.msk [vmem:[#allocation3 + $0x109] sm:$0xff] %vm226_vm0, %v2190_v8  ;;  %v7400_v54 = vpack.i.bf16 %v2288_v15, %v2287_v10  ;;  %v2299_v15 = vld [vmem:[#allocation3 + $0x2] sm:$0xff]  ;;  %v2300_v10 = vld [vmem:[#allocation3 + $0xa] sm:$0xff] }
 0x2d1   : > { %4973 = vrot.lane.b32.xlu2 %v7384_v37, %s5601_s20 }
 0x2d2   : > { %v2110_v52 = vpop.f32.mrf.mxu0 }
 0x2d3   : > { %v2142_v6 = vpop.f32.mrf.mxu2  ;;  %v2111_v1 = vadd.f32 %v7339_v50, %v2110_v52 }
 0x2d4   : > { %v2143_v34 = vadd.f32 %v7339_v50, %v2142_v6 }
 0x2d5   : > { %v2178_v18 = vmax.f32 %v2111_v1, 0.0 }
 0x2d6   : > { %v2191_v32 = vmax.f32 %v2143_v34, 0.0  ;;  %v2276_v53 = vld [vmem:[#allocation3 + $0x69] sm:$0xff] }
 0x2d7   : > { %2211 = vst.msk [vmem:[#allocation3 + $0x79] sm:$0xff] %vm226_vm0, %v2178_v18  ;;  %v7392_v20 = vpack.i.bf16 %v2276_v53, %v2275_v57  ;;  %v2289_v60 = vld [vmem:[#allocation3 + $0x109] sm:$0xff]  ;;  %v2304_v18 = vld [vmem:[#allocation3 + $0x3a] sm:$0xff] }
 0x2d8   : > { %2224 = vst.msk [vmem:[#allocation3 + $0x111] sm:$0xff] %vm226_vm0, %v2191_v32  ;;  %v2303_v32 = vld [vmem:[#allocation3 + $0x32] sm:$0xff] }
 0x2d9   : > { %4963 = vrot.lane.b32.xlu0 %v7392_v20, %s5601_s20 }
 0x2da   : > { %v2112_v26 = vpop.f32.mrf.mxu0 }
 0x2db   : > { %v2145_v55 = vpop.f32.mrf.mxu2  ;;  %v2113_v39 = vadd.f32 %v7339_v50, %v2112_v26  ;;  %v7446_v26 = vpack.i.bf16 %v2304_v18, %v2303_v32 }
 0x2dc   : > { %v2146_v13 = vadd.f32 %v7339_v50, %v2145_v55 }
 0x2dd   : > { %v2179_v22 = vmax.f32 %v2113_v39, 0.0 }
 0x2de   : > { %v2192_v31 = vmax.f32 %v2146_v13, 0.0  ;;  %v2277_v16 = vld [vmem:[#allocation3 + $0x79] sm:$0xff] }
 0x2df   : > { %2212 = vst.msk [vmem:[#allocation3 + $0x81] sm:$0xff] %vm226_vm0, %v2179_v22  ;;  %v2290_v25 = vld [vmem:[#allocation3 + $0x111] sm:$0xff] }
 0x2e0   : > { %2225 = vst.msk [vmem:[#allocation3 + $0x121] sm:$0xff] %vm226_vm0, %v2192_v31  ;;  %v7416_v12 = vpack.i.bf16 %v2290_v25, %v2289_v60 }
 0x2e1   : > { %4978 = vrot.lane.b32.xlu0 %v7400_v54, %s5601_s20 }
 0x2e2   : > { %v2115_v41 = vpop.f32.mrf.mxu0 }
 0x2e3   : > { %v2147_v38 = vpop.f32.mrf.mxu2  ;;  %v2116_v35 = vadd.f32 %v7339_v50, %v2115_v41 }
 0x2e4   : > { %v2148_v2 = vadd.f32 %v7339_v50, %v2147_v38 }
 0x2e5   : > { %v2180_v46 = vmax.f32 %v2116_v35, 0.0 }
 0x2e6   : > { %v2193_v5 = vmax.f32 %v2148_v2, 0.0  ;;  %v2278_v28 = vld [vmem:[#allocation3 + $0x81] sm:$0xff] }
 0x2e7   : > { %2213 = vst.msk [vmem:[#allocation3 + $0x91] sm:$0xff] %vm226_vm0, %v2180_v46  ;;  %v7408_v4 = vpack.i.bf16 %v2278_v28, %v2277_v16  ;;  %v2291_v8 = vld [vmem:[#allocation3 + $0x121] sm:$0xff] }
 0x2e8   : > { %2226 = vst.msk [vmem:[#allocation3 + $0x129] sm:$0xff] %vm226_vm0, %v2193_v5  ;;  %v5012_v5 = vpack.i.bf16 %v2300_v10, %v2299_v15  ;;  %v2321_v15 = vld [vmem:[#allocation3 + $0x10a] sm:$0xff]  ;;  %v2322_v10 = vld [vmem:[#allocation3 + $0x112] sm:$0xff] }
 0x2e9   : > { %4968 = vrot.lane.b32.xlu1 %v7408_v4, %s5601_s20 }
 0x2ea   : > { %v2117_v51 = vpop.f32.mrf.mxu0 }
 0x2eb   : > { %v2150_v29 = vpop.f32.mrf.mxu2  ;;  %v2118_v58 = vadd.f32 %v7339_v50, %v2117_v51  ;;  %v2302_v51 = vld [vmem:[#allocation3 + $0x22] sm:$0xff] }
 0x2ec   : > { %v2151_v44 = vadd.f32 %v7339_v50, %v2150_v29  ;;  %v2301_v29 = vld [vmem:[#allocation3 + $0x1a] sm:$0xff] }
 0x2ed   : > { %v2181_v61 = vmax.f32 %v2118_v58, 0.0  ;;  %v2305_v58 = vld [vmem:[#allocation3 + $0x4a] sm:$0xff] }
 0x2ee   : > { %v2194_v3 = vmax.f32 %v2151_v44, 0.0  ;;  %v2279_v9 = vld [vmem:[#allocation3 + $0x91] sm:$0xff] }
 0x2ef   : > { %2214 = vst.msk [vmem:[#allocation3 + $0x99] sm:$0xff] %vm226_vm0, %v2181_v61  ;;  %v2292_v11 = vld [vmem:[#allocation3 + $0x129] sm:$0xff]  ;;  %v7463_v61 = vpack.i.bf16 %v2302_v51, %v2301_v29 }
 0x2f0   : > { %2227 = vst.msk [vmem:[#allocation3 + $0x139] sm:$0xff] %vm226_vm0, %v2194_v3  ;;  %v7434_v36 = vpack.i.bf16 %v2292_v11, %v2291_v8  ;;  %v2306_v3 = vld [vmem:[#allocation3 + $0x52] sm:$0xff]  ;;  %v2310_v11 = vld [vmem:[#allocation3 + $0x82] sm:$0xff]  ;;  %v2317_v8 = vld [vmem:[#allocation3 + $0xda] sm:$0xff] }
 0x2f1   : > { %4983 = vrot.lane.b32.xlu1 %v7416_v12, %s5601_s20  ;;  %v7465_v25 = vpack.i.bf16 %v2306_v3, %v2305_v58  ;;  %v7522_v3 = vld [vmem:[#allocation3 + $0x50] sm:$0xff] }
 0x2f2   : > { %v2120_v17 = vpop.f32.mrf.mxu0 }
 0x2f3   : > { %v2152_v19 = vpop.f32.mrf.mxu2  ;;  %v2121_v7 = vadd.f32 %v7339_v50, %v2120_v17  ;;  %v2307_v17 = vld [vmem:[#allocation3 + $0x62] sm:$0xff] }
 0x2f4   : > { %v2153_v23 = vadd.f32 %v7339_v50, %v2152_v19 }
 0x2f5   : > { %v2182_v45 = vmax.f32 %v2121_v7, 0.0 }
 0x2f6   : > { %v2195_v14 = vmax.f32 %v2153_v23, 0.0  ;;  %v2280_v33 = vld [vmem:[#allocation3 + $0x99] sm:$0xff]  ;;  %v2308_v23 = vld [vmem:[#allocation3 + $0x6a] sm:$0xff] }
 0x2f7   : > { %2215 = vst.msk [vmem:[#allocation3 + $0xa9] sm:$0xff] %vm226_vm0, %v2182_v45  ;;  %v7424_v30 = vpack.i.bf16 %v2280_v33, %v2279_v9  ;;  %v2293_v47 = vld [vmem:[#allocation3 + $0x139] sm:$0xff] }
 0x2f8   : > { %2228 = vst.msk [vmem:[#allocation3 + $0x141] sm:$0xff] %vm226_vm0, %v2195_v14  ;;  %v2311_v14 = vld [vmem:[#allocation3 + $0x92] sm:$0xff]  ;;  %v2312_v45 = vld [vmem:[#allocation3 + $0x9a] sm:$0xff] }
 0x2f9   : > { %4988 = vrot.lane.b32.xlu2 %v7424_v30, %s5601_s20 }
 0x2fa   : > { %v2122_v59 = vpop.f32.mrf.mxu0 }
 0x2fb   : > { %v2155_v27 = vpop.f32.mrf.mxu2  ;;  %v2123_v24 = vadd.f32 %v7339_v50, %v2122_v59  ;;  %v7475_v59 = vpack.i.bf16 %v2308_v23, %v2307_v17 }
 0x2fc   : > { %v2156_v21 = vadd.f32 %v7339_v50, %v2155_v27 }
 0x2fd   : > { %v2183_v0 = vmax.f32 %v2123_v24, 0.0 }
 0x2fe   : > { %v2196_v43 = vmax.f32 %v2156_v21, 0.0  ;;  %v2281_v57 = vld [vmem:[#allocation3 + $0xa9] sm:$0xff]  ;;  %v7477_v21 = vpack.i.bf16 %v2312_v45, %v2311_v14  ;;  %v7539_v14 = vld [vmem:[#allocation3 + $0x20] sm:$0xff]  ;;  %v2240_v45 = vld [vmem:[#allocation3 + $0x38] sm:$0xff] }
 0x2ff   : > { %v2294_v42 = vld [vmem:[#allocation3 + $0x141] sm:$0xff]  ;;  %2216 = vst.msk [vmem:[#allocation3 + $0xb1] sm:$0xff] %vm226_vm0, %v2183_v0 }
 0x300   : > { %2229 = vst.msk [vmem:[#allocation3 + $0x151] sm:$0xff] %vm226_vm0, %v2196_v43  ;;  %v7431_v49 = vpack.i.bf16 %v2294_v42, %v2293_v47  ;;  %v2309_v0 = vld [vmem:[#allocation3 + $0x7a] sm:$0xff]  ;;  %v2326_v58 = vld [vmem:[#allocation3 + $0x142] sm:$0xff] }
 0x301   : > { %4993 = vrot.lane.b32.xlu2 %v7434_v36, %s5601_s20  ;;  %v2325_v29 = vld [vmem:[#allocation3 + $0x13a] sm:$0xff] }
 0x302   : > { %4998 = vrot.lane.b32.xlu0 %v7431_v49, %s5601_s20  ;;  %v2125_v63 = vpop.f32.mrf.mxu0  ;;  %v7528_v17 = vpack.i.bf16 %v2326_v58, %v2325_v29 }
 0x303   : > { %v2157_v40 = vpop.f32.mrf.mxu2  ;;  %v2126_v52 = vadd.f32 %v7339_v50, %v2125_v63 }
 0x304   : > { %v2158_v6 = vadd.f32 %v7339_v50, %v2157_v40  ;;  %v2318_v40 = vld [vmem:[#allocation3 + $0xe2] sm:$0xff]  ;;  %8992 = vst [vmem:[#allocation29_spill] sm:$0xff] %v7528_v17 }
 0x305   : > { %v2184_v1 = vmax.f32 %v2126_v52, 0.0 }
 0x306   : > { %v2197_v34 = vmax.f32 %v2158_v6, 0.0  ;;  %v2282_v53 = vld [vmem:[#allocation3 + $0xb1] sm:$0xff]  ;;  %v7487_v6 = vpack.i.bf16 %v2310_v11, %v2309_v0 }
 0x307   : > { %2217 = vst.msk [vmem:[#allocation3 + $0xc1] sm:$0xff] %vm226_vm0, %v2184_v1  ;;  %v7444_v55 = vpack.i.bf16 %v2282_v53, %v2281_v57  ;;  %v2295_v2 = vld [vmem:[#allocation3 + $0x151] sm:$0xff]  ;;  %v2323_v57 = vld [vmem:[#allocation3 + $0x122] sm:$0xff] }
 0x308   : > { %2230 = vst.msk [vmem:[#allocation3 + $0x159] sm:$0xff] %vm226_vm0, %v2197_v34  ;;  %v7491_v34 = vpack.i.bf16 %v2318_v40, %v2317_v8  ;;  %v2314_v18 = vld [vmem:[#allocation3 + $0xb2] sm:$0xff]  ;;  %v2324_v53 = vld [vmem:[#allocation3 + $0x12a] sm:$0xff]  ;;  %v7561_v40 = vld [vmem:[#allocation3 + $0x80] sm:$0xff] }
 0x309   : > { %5023 = vrot.lane.b32.xlu2 %v7446_v26, %s5602_s25  ;;  %8985 = vst [vmem:[#allocation22_spill] sm:$0xff] %v7487_v6  ;;  %v7549_v11 = vld [vmem:[#allocation3 + $0x90] sm:$0xff]  ;;  %v7559_v8 = vld [vmem:[#allocation3 + $0x68] sm:$0xff] }
 0x30a   : > { %5008 = vrot.lane.b32.xlu0 %v7444_v55, %s5601_s20  ;;  %v2127_v39 = vpop.f32.mrf.mxu0  ;;  %8986 = vst [vmem:[#allocation19_spill] sm:$0xff] %v7491_v34 }
 0x30b   : > { %v2160_v13 = vpop.f32.mrf.mxu2  ;;  %v2128_v22 = vadd.f32 %v7339_v50, %v2127_v39 }
 0x30c   : > { %v2161_v31 = vadd.f32 %v7339_v50, %v2160_v13 }
 0x30d   : > { %v2185_v41 = vmax.f32 %v2128_v22, 0.0  ;;  %v2319_v22 = vld [vmem:[#allocation3 + $0xf2] sm:$0xff] }
 0x30e   : > { %v2198_v38 = vmax.f32 %v2161_v31, 0.0  ;;  %v2283_v63 = vld [vmem:[#allocation3 + $0xc1] sm:$0xff]  ;;  %v7503_v31 = vpack.i.bf16 %v2324_v53, %v2323_v57 }
 0x30f   : > { %v2296_v35 = vld [vmem:[#allocation3 + $0x159] sm:$0xff]  ;;  %2218 = vst.msk [vmem:[#allocation3 + $0xc9] sm:$0xff] %vm226_vm0, %v2185_v41 }
 0x310   : > { %2231 = vst.msk [vmem:[#allocation3 + $0x169] sm:$0xff] %vm226_vm0, %v2198_v38  ;;  %v7455_v46 = vpack.i.bf16 %v2296_v35, %v2295_v2  ;;  %v2320_v38 = vld [vmem:[#allocation3 + $0xfa] sm:$0xff]  ;;  %v7511_v35 = vpack.i.bf16 %v2322_v10, %v2321_v15  ;;  %v2327_v51 = vld [vmem:[#allocation3 + $0x152] sm:$0xff] }
 0x311   : > { %8988 = vst [vmem:[#allocation33_spill] sm:$0xff] %v7503_v31  ;;  %v7587_v10 = vld [vmem:[#allocation3 + $0xb0] sm:$0xff] }
 0x312   : > { %5003 = vrot.lane.b32.xlu1 %v7455_v46, %s5601_s20  ;;  %5013 = vrot.lane.b32.xlu0 %v5012_v5, %s5602_s25  ;;  %8989 = vst [vmem:[#allocation32_spill] sm:$0xff] %v7511_v35  ;;  %v7513_v5 = vpack.i.bf16 %v2320_v38, %v2319_v22  ;;  %v7589_v38 = vld [vmem:[#allocation3 + $0x128] sm:$0xff] }
 0x313   : > { %v2162_v16 = vpop.f32.mrf.mxu2 }
 0x314   : > { %v2163_v28 = vadd.f32 %v7339_v50, %v2162_v16  ;;  %8990 = vst [vmem:[#allocation25_spill] sm:$0xff] %v7513_v5  ;;  %v7515_v16 = vpop.permute.xlu2 %4943 }
 0x316   : > { %v2199_v44 = vmax.f32 %v2163_v28, 0.0  ;;  %v2284_v47 = vld [vmem:[#allocation3 + $0xc9] sm:$0xff] }
 0x317   : > { %v2297_v9 = vld [vmem:[#allocation3 + $0x169] sm:$0xff]  ;;  %v7489_v52 = vpack.i.bf16 %v2284_v47, %v2283_v63  ;;  %v7563_v63 = vld [vmem:[#allocation3 + $0xe0] sm:$0xff] }
 0x318   : > { %2232 = vst.msk [vmem:[#allocation3 + $0x171] sm:$0xff] %vm226_vm0, %v2199_v44  ;;  %v2315_v1 = vld [vmem:[#allocation3 + $0xc2] sm:$0xff]  ;;  %v2316_v32 = vld [vmem:[#allocation3 + $0xca] sm:$0xff]  ;;  %v2328_v44 = vld [vmem:[#allocation3 + $0x15a] sm:$0xff] }
 0x319   : > { %v7499_v13 = vpack.i.bf16 %v2316_v32, %v2315_v1  ;;  %v7567_v1 = vld [vmem:[#allocation3 + $0x78] sm:$0xff]  ;;  %v7585_v15 = vld [vmem:[#allocation3 + $0xc8] sm:$0xff] }
 0x31a   : > { %5018 = vrot.lane.b32.xlu1 %v7463_v61, %s5602_s25  ;;  %5028 = vrot.lane.b32.xlu0 %v7465_v25, %s5602_s25  ;;  %v7569_v32 = vld [vmem:[#allocation3 + $0xd8] sm:$0xff] }
 0x31b   : > { %v2165_v60 = vpop.f32.mrf.mxu2  ;;  %8987 = vst [vmem:[#allocation20_spill] sm:$0xff] %v7499_v13  ;;  %v5142_v53 = vpack.i.bf16 %v7563_v63, %v7569_v32  ;;  %v7607_v58 = vpop.permute.xlu0 %4948 }
 0x31c   : > { %v2166_v19 = vadd.f32 %v7339_v50, %v2165_v60  ;;  %v7524_v60 = vld [vmem:[#allocation3 + $0x48] sm:$0xff] }
 0x31d   : > { %v5112_v23 = vpack.i.bf16 %v7522_v3, %v7524_v60 }
 0x31e   : > { %v2200_v7 = vmax.f32 %v2166_v19, 0.0  ;;  %v7526_v19 = vpack.i.bf16 %v2328_v44, %v2327_v51  ;;  %v7599_v51 = vld [vmem:[#allocation3 + $0x120] sm:$0xff] }
 0x31f   : > { %v2298_v33 = vld [vmem:[#allocation3 + $0x171] sm:$0xff]  ;;  %v7603_v44 = vpack.i.bf16 %v7589_v38, %v7599_v51 }
 0x320   : > { %2233 = vst.msk [vmem:[#allocation3 + $0x181] sm:$0xff] %vm226_vm0, %v2200_v7  ;;  %v7473_v27 = vpack.i.bf16 %v2298_v33, %v2297_v9  ;;  %v2329_v41 = vld [vmem:[#allocation3 + $0x16a] sm:$0xff]  ;;  %v2330_v2 = vld [vmem:[#allocation3 + $0x172] sm:$0xff] }
 0x321   : > { %v5097_v28 = vpack.i.bf16 %v2330_v2, %v2329_v41  ;;  %8991 = vst [vmem:[#allocation24_spill] sm:$0xff] %v7526_v19  ;;  %v7541_v9 = vld [vmem:[#allocation3 + $0x98] sm:$0xff]  ;;  %v7591_v41 = vld [vmem:[#allocation3 + $0xc0] sm:$0xff]  ;;  %v7593_v2 = vld [vmem:[#allocation3 + $0xa8] sm:$0xff] }
 0x322   : > { %5038 = vrot.lane.b32.xlu2 %v7473_v27, %s5601_s20  ;;  %5033 = vrot.lane.b32.xlu1 %v7475_v59, %s5602_s25  ;;  %v7543_v33 = vld [vmem:[#allocation3 + $0x18] sm:$0xff]  ;;  %v5127_v47 = vpack.i.bf16 %v7541_v9, %v7549_v11  ;;  %v5132_v29 = vpack.i.bf16 %v7587_v10, %v7593_v2  ;;  %8995 = vst [vmem:[#allocation26_spill] sm:$0xff] %v7603_v44 }
 0x323   : > { %v2167_v24 = vpop.f32.mrf.mxu2  ;;  %5048 = vrot.lane.b32.xlu0 %v7477_v21, %s5602_s25  ;;  %v7536_v7 = vpop.permute.xlu2 %4958  ;;  %v5102_v0 = vpack.i.bf16 %v7539_v14, %v7543_v33 }
 0x324   : > { %v2168_v43 = vadd.f32 %v7339_v50, %v2167_v24  ;;  %v2313_v50 = vld [vmem:[#allocation3 + $0xaa] sm:$0xff] }
 0x325   : > { %v7501_v39 = vpack.i.bf16 %v2314_v18, %v2313_v50  ;;  %v2239_v24 = vld [vmem:[#allocation3 + $0x30] sm:$0xff]  ;;  %v7565_v50 = vld [vmem:[#allocation3 + $0x60] sm:$0xff]  ;;  %v5122_v18 = vpack.i.bf16 %v7561_v40, %v7567_v1 }
 0x326   : > { %v2201_v42 = vmax.f32 %v2168_v43, 0.0  ;;  %v7545_v43 = vpack.i.bf16 %v2240_v45, %v2239_v24  ;;  %v7575_v57 = vpack.i.bf16 %v7559_v8, %v7565_v50 }
 0x328   : > { %2234 = vst.msk [vmem:[#allocation3 + $0x189] sm:$0xff] %vm226_vm0, %v2201_v42 }
 0x329   : > { %8993 = vst [vmem:[#allocation28_spill] sm:$0xff] %v7545_v43 }
 0x32a   : > { %5043 = vrot.lane.b32.xlu2 %v7487_v6, %s5602_s25  ;;  %5053 = vrot.lane.b32.xlu1 %v7489_v52, %s5601_s20  ;;  %8994 = vst [vmem:[#allocation27_spill] sm:$0xff] %v7575_v57 }
 0x32b   : > { %5068 = vrot.lane.b32.xlu0 %v7491_v34, %s5602_s25  ;;  %v7557_v42 = vpop.permute.xlu2 %4973  ;;  %v7642_v34 = vld [vmem:[#allocation3 + $0x158] sm:$0xff] }
 0x332   : > { %5063 = vrot.lane.b32.xlu2 %v7499_v13, %s5602_s25  ;;  %5058 = vrot.lane.b32.xlu1 %v7501_v39, %s5602_s25 }
 0x333   : > { %5083 = vrot.lane.b32.xlu0 %v7503_v31, %s5602_s25 }
 0x33a   : > { %5078 = vrot.lane.b32.xlu2 %v7511_v35, %s5602_s25  ;;  %5073 = vrot.lane.b32.xlu1 %v7513_v5, %s5602_s25 }
 0x33b   : > { %5098 = vrot.lane.b32.xlu0 %v5097_v28, %s5602_s25  ;;  %v5137_v28 = vpack.i.bf16 %v7585_v15, %v7591_v41 }
 0x342   : > { %5093 = vrot.lane.b32.xlu2 %v7526_v19, %s5602_s25  ;;  %5088 = vrot.lane.b32.xlu1 %v7528_v17, %s5602_s25  ;;  %s4195_s25 = sshll.u32 %s9080_s19, 8 }
 0x343   : > { %5113 = vrot.lane.b32.xlu0 %v5112_v23, %s5603_s26  ;;  %v7611_v23 = vld [vmem:[#allocation3 + $0xf8] sm:$0xff] }
 0x344   : > { %8996 = vst [vmem:[#allocation35_spill] sm:$0xff] %v7611_v23 }
 0x34a   : > { %5108 = vrot.lane.b32.xlu2 %v7545_v43, %s5603_s26  ;;  %5103 = vrot.lane.b32.xlu1 %v5102_v0, %s5603_s26  ;;  %v7631_v43 = vld [vmem:[#allocation3 + $0x168] sm:$0xff] }
 0x34b   : > { %5128 = vrot.lane.b32.xlu0 %v5127_v47, %s5603_s26  ;;  %v7615_v47 = vld [vmem:[#allocation3 + $0x110] sm:$0xff]  ;;  %9001 = vst [vmem:[#allocation55_spill] sm:$0xff] %v7631_v43  ;;  %v7639_v17 = vpop.permute.xlu0 %4963 }
 0x352   : > { %5123 = vrot.lane.b32.xlu2 %v5122_v18, %s5603_s26  ;;  %5118 = vrot.lane.b32.xlu1 %v7575_v57, %s5603_s26  ;;  %v7617_v18 = vld [vmem:[#allocation3 + $0x170] sm:$0xff]  ;;  %v7621_v57 = vld [vmem:[#allocation3 + $0x108] sm:$0xff] }
 0x353   : > { %5143 = vrot.lane.b32.xlu0 %v5142_v53, %s5603_s26  ;;  %v7583_v22 = vpop.permute.xlu2 %4988  ;;  %8997 = vst [vmem:[#allocation34_spill] sm:$0xff] %v7617_v18  ;;  %v7619_v53 = vld [vmem:[#allocation3 + $0xf0] sm:$0xff]  ;;  %v5172_v19 = vpack.i.bf16 %v7617_v18, %v7631_v43 }
 0x354   : > { %8998 = vst [vmem:[#allocation82_spill] sm:$0xff] %v7619_v53  ;;  %v7648_v18 = vld [vmem:[#allocation3 + $0x150] sm:$0xff] }
 0x355   : > { %v7660_v6 = vpack.i.bf16 %v7642_v34, %v7648_v18 }
 0x357   : > { %9006 = vst [vmem:[#allocation51_spill] sm:$0xff] %v7660_v6 }
 0x35a   : > { %5138 = vrot.lane.b32.xlu2 %v5137_v28, %s5603_s26  ;;  %5133 = vrot.lane.b32.xlu1 %v5132_v29, %s5603_s26  ;;  %v4954_v28 = vpop.permute.xlu1 %4953  ;;  %v7625_v29 = vpack.i.bf16 %v7615_v47, %v7621_v57 }
 0x35b   : > { %5158 = vrot.lane.b32.xlu0 %v7603_v44, %s5603_s26  ;;  %v7613_v0 = vpop.permute.xlu2 %4993  ;;  %v7629_v44 = vpack.i.bf16 %v7611_v23, %v7619_v53  ;;  %v4956_v35 = vunpack.i.h.bf16 %v4954_v28  ;;  %v4955_v31 = vunpack.i.l.bf16 %v4954_v28  ;;  %v7644_v53 = vld [vmem:[#allocation3 + $0x140] sm:$0xff] }
 0x35c   : > { %8999 = vst [vmem:[#allocation86_spill] sm:$0xff] %v7625_v29 }
 0x35d   : > { %9000 = vst [vmem:[#allocation48_spill] sm:$0xff] %v7629_v44  ;;  %v3552_v43 = vsel %vm226_vm0, %v2239_v24, %v4955_v31  ;;  %v7672_v31 = vpop.permute.xlu0 %4978 }
 0x35e   : > { %9002 = vst [vmem:[#allocation68_spill] sm:$0xff] %v7644_v53 }
 0x362   : > { %5153 = vrot.lane.b32.xlu2 %v7625_v29, %s5603_s26  ;;  %5148 = vrot.lane.b32.xlu1 %v7629_v44, %s5603_s26  ;;  %v3553_v29 = vsel %vm226_vm0, %v2240_v45, %v4956_v35  ;;  %v7650_v44 = vld [vmem:[#allocation3 + $0x138] sm:$0xff]  ;;  %v2362_v35 = vld [vmem:[#allocation3 + $0x188] sm:$0xff]  ;;  %v4969_v24 = vpop.permute.xlu1 %4968 }
 0x363   : > { %5173 = vrot.lane.b32.xlu0 %v5172_v19, %s5603_s26  ;;  %v5024_v13 = vpop.permute.xlu2 %5023  ;;  %9003 = vst [vmem:[#allocation73_spill] sm:$0xff] %v7650_v44 }
 0x364   : > { %v5026_v23 = vunpack.i.h.bf16 %v5024_v13  ;;  %v5025_v5 = vunpack.i.l.bf16 %v5024_v13  ;;  %v7664_v13 = vpack.i.bf16 %v7644_v53, %v7650_v44 }
 0x366   : > { %v7653_v28 = vsel %vm1757_vm3, %v3552_v43, %v5025_v5  ;;  %v7656_v19 = vsel %vm1757_vm3, %v3553_v29, %v5026_v23  ;;  %9007 = vst [vmem:[#allocation52_spill] sm:$0xff] %v7664_v13  ;;  %v2361_v5 = vld [vmem:[#allocation3 + $0x180] sm:$0xff]  ;;  %v4971_v29 = vunpack.i.h.bf16 %v4969_v24 }
 0x367   : > { %9004 = vst [vmem:[#allocation96_spill] sm:$0xff] %v7653_v28  ;;  %v5177_v45 = vpack.i.bf16 %v2362_v35, %v2361_v5  ;;  %v4970_v35 = vunpack.i.l.bf16 %v4969_v24 }
 0x368   : > { %9005 = vst [vmem:[#allocation49_spill] sm:$0xff] %v7656_v19 }
 0x36a   : > { %5168 = vrot.lane.b32.xlu2 %v7660_v6, %s5603_s26  ;;  %5163 = vrot.lane.b32.xlu1 %v7664_v13, %s5603_s26 }
 0x36b   : > { %5188 = vrot.lane.b32.xlu0 %v7364_v56, %s5604_s27  ;;  %v7687_v56 = vpop.permute.xlu1 %4983 }
 0x372   : > { %5183 = vrot.lane.b32.xlu2 %v7352_v48, %s5604_s27  ;;  %5178 = vrot.lane.b32.xlu1 %v5177_v45, %s5603_s26 }
 0x373   : > { %5203 = vrot.lane.b32.xlu0 %v7408_v4, %s5604_s27  ;;  %v2235_v4 = vld [vmem:[#allocation3] sm:$0xff] }
 0x374   : > { %v7679_v43 = vpop.permute.xlu0 %4998 }
 0x37a   : > { %5198 = vrot.lane.b32.xlu2 %v7392_v20, %s5604_s27  ;;  %5193 = vrot.lane.b32.xlu1 %v7376_v62, %s5604_s27  ;;  %v4946_v20 = vunpack.i.h.bf16 %v7515_v16  ;;  %v4945_v62 = vunpack.i.l.bf16 %v7515_v16 }
 0x37b   : > { %5218 = vrot.lane.b32.xlu0 %v7489_v52, %s5604_s27  ;;  %v2236_v52 = vld [vmem:[#allocation3 + $0x8] sm:$0xff] }
 0x37c   : > { %v7689_v23 = vpop.permute.xlu2 %5038  ;;  %v7691_v48 = vpop.permute.xlu0 %5008  ;;  %v3549_v16 = vsel %vm226_vm0, %v2236_v52, %v4946_v20  ;;  %v4966_v52 = vunpack.i.h.bf16 %v7639_v17 }
 0x382   : > { %5213 = vrot.lane.b32.xlu2 %v7444_v55, %s5604_s27  ;;  %5208 = vrot.lane.b32.xlu1 %v7424_v30, %s5604_s27  ;;  %v3559_v55 = vsel %vm226_vm0, %v7561_v40, %v4971_v29  ;;  %v3558_v30 = vsel %vm226_vm0, %v7567_v1, %v4970_v35  ;;  %v4951_v1 = vunpack.i.h.bf16 %v7607_v58  ;;  %v4961_v29 = vunpack.i.h.bf16 %v7536_v7 }
 0x383   : > { %5233 = vrot.lane.b32.xlu0 %v7416_v12, %s5604_s27  ;;  %v3548_v12 = vsel %vm226_vm0, %v2235_v4, %v4945_v62  ;;  %v4960_v35 = vunpack.i.l.bf16 %v7536_v7 }
 0x384   : > { %v5044_v5 = vpop.permute.xlu2 %5043  ;;  %v7701_v45 = vpop.permute.xlu1 %5003 }
 0x385   : > { %v5046_v6 = vunpack.i.h.bf16 %v5044_v5  ;;  %v5045_v24 = vunpack.i.l.bf16 %v5044_v5  ;;  %v5014_v13 = vpop.permute.xlu0 %5013 }
 0x386   : > { %v5016_v19 = vunpack.i.h.bf16 %v5014_v13  ;;  %v5015_v28 = vunpack.i.l.bf16 %v5014_v13  ;;  %v4950_v13 = vunpack.i.l.bf16 %v7607_v58  ;;  %v3551_v58 = vsel %vm226_vm0, %v7539_v14, %v4951_v1  ;;  %v2393_v1 = vld [vmem:[#allocation3 + $0x181] sm:$0xff] }
 0x387   : > { %v7710_v44 = vsel %vm1757_vm3, %v3558_v30, %v5045_v24  ;;  %v7713_v53 = vsel %vm1757_vm3, %v3559_v55, %v5046_v6  ;;  %v4965_v24 = vunpack.i.l.bf16 %v7639_v17  ;;  %v4991_v55 = vunpack.i.h.bf16 %v7583_v22 }
 0x388   : > { %v7716_v5 = vsel %vm1757_vm3, %v3549_v16, %v5016_v19  ;;  %v7719_v40 = vsel %vm1757_vm3, %v3548_v12, %v5015_v28  ;;  %v3550_v19 = vsel %vm226_vm0, %v7543_v33, %v4950_v13  ;;  %v4990_v30 = vunpack.i.l.bf16 %v7583_v22  ;;  %v2394_v16 = vld [vmem:[#allocation3 + $0x189] sm:$0xff] }
 0x389   : > { %v4986_v12 = vunpack.i.h.bf16 %v7687_v56  ;;  %v4985_v17 = vunpack.i.l.bf16 %v7687_v56  ;;  %v4976_v22 = vunpack.i.h.bf16 %v7557_v42  ;;  %v4975_v13 = vunpack.i.l.bf16 %v7557_v42 }
 0x38a   : > { %5228 = vrot.lane.b32.xlu2 %v7400_v54, %s5604_s27  ;;  %5223 = vrot.lane.b32.xlu1 %v7384_v37, %s5604_s27  ;;  %v3554_v54 = vsel %vm226_vm0, %v7524_v60, %v4960_v35  ;;  %v3555_v37 = vsel %vm226_vm0, %v7522_v3, %v4961_v29  ;;  %v7767_v29 = vpack.i.bf16 %v2394_v16, %v2393_v1 }
 0x38b   : > { %5248 = vrot.lane.b32.xlu0 %v7455_v46, %s5604_s27  ;;  %v3556_v35 = vsel %vm226_vm0, %v7565_v50, %v4965_v24  ;;  %v3557_v56 = vsel %vm226_vm0, %v7559_v8, %v4966_v52  ;;  %v3570_v50 = vsel %vm226_vm0, %v7621_v57, %v4985_v17  ;;  %v3567_v24 = vsel %vm226_vm0, %v7563_v63, %v4976_v22 }
 0x38c   : > { %v7731_v6 = vpop.permute.xlu2 %5063  ;;  %v5019_v28 = vpop.permute.xlu1 %5018 }
 0x38d   : > { %v5021_v20 = vunpack.i.h.bf16 %v5019_v28  ;;  %v5020_v7 = vunpack.i.l.bf16 %v5019_v28  ;;  %v5029_v62 = vpop.permute.xlu0 %5028 }
 0x38e   : > { %v5031_v4 = vunpack.i.h.bf16 %v5029_v62  ;;  %v5030_v46 = vunpack.i.l.bf16 %v5029_v62  ;;  %v3571_v62 = vsel %vm226_vm0, %v7615_v47, %v4986_v12  ;;  %v5005_v47 = vunpack.i.l.bf16 %v7701_v45 }
 0x38f   : > { %v7744_v33 = vsel %vm1757_vm3, %v3551_v58, %v5021_v20  ;;  %v7747_v14 = vsel %vm1757_vm3, %v3550_v19, %v5020_v7 }
 0x390   : > { %v7752_v60 = vsel %vm1757_vm3, %v3554_v54, %v5030_v46  ;;  %v7755_v3 = vsel %vm1757_vm3, %v3555_v37, %v5031_v4  ;;  %v5006_v46 = vunpack.i.h.bf16 %v7701_v45  ;;  %v4996_v45 = vunpack.i.h.bf16 %v7613_v0 }
 0x391   : > { %v3576_v12 = vsel %vm226_vm0, %v7648_v18, %v5005_v47 }
 0x392   : > { %5243 = vrot.lane.b32.xlu2 %v7431_v49, %s5604_s27  ;;  %5238 = vrot.lane.b32.xlu1 %v7434_v36, %s5604_s27  ;;  %v3561_v49 = vsel %vm226_vm0, %v7541_v9, %v4991_v55  ;;  %v3560_v36 = vsel %vm226_vm0, %v7549_v11, %v4990_v30  ;;  %v3566_v55 = vsel %vm226_vm0, %v7569_v32, %v4975_v13  ;;  %v4995_v30 = vunpack.i.l.bf16 %v7613_v0 }
 0x393   : > { %5263 = vrot.lane.b32.xlu0 %v7463_v61, %s5605_s28  ;;  %v3577_v16 = vsel %vm226_vm0, %v7642_v34, %v5006_v46  ;;  %v5066_v13 = vunpack.i.h.bf16 %v7731_v6 }
 0x394   : > { %v5079_v28 = vpop.permute.xlu2 %5078  ;;  %v5034_v19 = vpop.permute.xlu1 %5033 }
 0x395   : > { %v5081_v42 = vunpack.i.h.bf16 %v5079_v28  ;;  %v5080_v58 = vunpack.i.l.bf16 %v5079_v28  ;;  %v5036_v20 = vunpack.i.h.bf16 %v5034_v19  ;;  %v5035_v61 = vunpack.i.l.bf16 %v5034_v19  ;;  %v5049_v7 = vpop.permute.xlu0 %5048 }
 0x396   : > { %v5051_v8 = vunpack.i.h.bf16 %v5049_v7  ;;  %v5050_v54 = vunpack.i.l.bf16 %v5049_v7 }
 0x397   : > { %v7782_v9 = vsel %vm1757_vm3, %v3570_v50, %v5080_v58  ;;  %v7785_v11 = vsel %vm1757_vm3, %v3571_v62, %v5081_v42  ;;  %v7788_v37 = vsel %vm1757_vm3, %v3557_v56, %v5036_v20  ;;  %v7791_v4 = vsel %vm1757_vm3, %v3556_v35, %v5035_v61 }
 0x398   : > { %v7796_v57 = vsel %vm1757_vm3, %v3560_v36, %v5050_v54  ;;  %v7799_v52 = vsel %vm1757_vm3, %v3561_v49, %v5051_v8  ;;  %v5011_v58 = vunpack.i.h.bf16 %v7691_v48  ;;  %v5010_v20 = vunpack.i.l.bf16 %v7691_v48 }
 0x39a   : > { %5258 = vrot.lane.b32.xlu2 %v7767_v29, %s5604_s27  ;;  %5253 = vrot.lane.b32.xlu1 %v7473_v27, %s5604_s27 }
 0x39b   : > { %5278 = vrot.lane.b32.xlu0 %v7475_v59, %s5605_s28  ;;  %v5065_v59 = vunpack.i.l.bf16 %v7731_v6 }
 0x39c   : > { %v5094_v27 = vpop.permute.xlu2 %5093  ;;  %v5054_v17 = vpop.permute.xlu1 %5053 }
 0x39d   : > { %v5096_v1 = vunpack.i.h.bf16 %v5094_v27  ;;  %v5095_v63 = vunpack.i.l.bf16 %v5094_v27  ;;  %v5056_v22 = vunpack.i.h.bf16 %v5054_v17  ;;  %v5055_v35 = vunpack.i.l.bf16 %v5054_v17  ;;  %v5069_v32 = vpop.permute.xlu0 %5068  ;;  %v9011_v27 = vld [vmem:[#allocation82_spill] sm:$0xff] }
 0x39e   : > { %v5071_v56 = vunpack.i.h.bf16 %v5069_v32  ;;  %v5070_v49 = vunpack.i.l.bf16 %v5069_v32 }
 0x39f   : > { %v7820_v0 = vsel %vm1757_vm3, %v3576_v12, %v5095_v63  ;;  %v7823_v34 = vsel %vm1757_vm3, %v3577_v16, %v5096_v1  ;;  %v3565_v18 = vsel %vm226_vm0, %v7585_v15, %v5056_v22  ;;  %v3564_v36 = vsel %vm226_vm0, %v7591_v41, %v5055_v35  ;;  %v9009_v16 = vld [vmem:[#allocation25_spill] sm:$0xff] }
 0x3a0   : > { %v7830_v28 = vsel %vm1757_vm3, %v3566_v55, %v5070_v49  ;;  %v7833_v19 = vsel %vm1757_vm3, %v3567_v24, %v5071_v56  ;;  %v7836_v6 = vsel %vm1757_vm3, %v3564_v36, %v5065_v59  ;;  %v7839_v42 = vsel %vm1757_vm3, %v3565_v18, %v5066_v13  ;;  %v9013_v56 = vld [vmem:[#allocation55_spill] sm:$0xff] }
 0x3a1   : > { %v3573_v15 = vsel %vm226_vm0, %v7589_v38, %v4996_v45  ;;  %v3572_v41 = vsel %vm226_vm0, %v7599_v51, %v4995_v30  ;;  %v4981_v55 = vunpack.i.h.bf16 %v7672_v31  ;;  %v5040_v30 = vunpack.i.l.bf16 %v7689_v23 }
 0x3a2   : > { %5273 = vrot.lane.b32.xlu2 %v7465_v25, %s5605_s28  ;;  %5268 = vrot.lane.b32.xlu1 %v7446_v26, %s5605_s28  ;;  %v3563_v25 = vsel %vm226_vm0, %v7587_v10, %v5011_v58  ;;  %v3562_v26 = vsel %vm226_vm0, %v7593_v2, %v5010_v20  ;;  %v4980_v10 = vunpack.i.l.bf16 %v7672_v31  ;;  %v9010_v31 = vld [vmem:[#allocation35_spill] sm:$0xff] }
 0x3a3   : > { %5293 = vrot.lane.b32.xlu0 %v7501_v39, %s5605_s28  ;;  %v3569_v12 = vsel %vm226_vm0, %v9010_v31, %v4981_v55  ;;  %v3578_v49 = vsel %vm226_vm0, %v9013_v56, %v5040_v30 }
 0x3a4   : > { %v5109_v61 = vpop.permute.xlu2 %5108  ;;  %v5059_v7 = vpop.permute.xlu1 %5058  ;;  %v3568_v17 = vsel %vm226_vm0, %v9011_v27, %v4980_v10  ;;  %v9017_v10 = vld [vmem:[#allocation68_spill] sm:$0xff] }
 0x3a5   : > { %v5111_v62 = vunpack.i.h.bf16 %v5109_v61  ;;  %v5110_v50 = vunpack.i.l.bf16 %v5109_v61  ;;  %v5061_v48 = vunpack.i.h.bf16 %v5059_v7  ;;  %v5060_v8 = vunpack.i.l.bf16 %v5059_v7  ;;  %v5084_v54 = vpop.permute.xlu0 %5083 }
 0x3a6   : > { %v5086_v39 = vunpack.i.h.bf16 %v5084_v54  ;;  %v5085_v46 = vunpack.i.l.bf16 %v5084_v54 }
 0x3a7   : > { %v7859_v38 = vsel %vm1790_vm4, %v7747_v14, %v5110_v50  ;;  %v7863_v51 = vsel %vm1790_vm4, %v7744_v33, %v5111_v62  ;;  %v3595_v47 = vsel %vm1757_vm3, %v3563_v25, %v5061_v48  ;;  %v3594_v24 = vsel %vm1757_vm3, %v3562_v26, %v5060_v8  ;;  %v9008_v33 = vld [vmem:[#allocation22_spill] sm:$0xff]  ;;  %v9016_v48 = vld [vmem:[#allocation29_spill] sm:$0xff] }
 0x3a8   : > { %v7870_v2 = vsel %vm1757_vm3, %v3572_v41, %v5085_v46  ;;  %v7873_v45 = vsel %vm1757_vm3, %v3573_v15, %v5086_v39  ;;  %v5041_v14 = vunpack.i.h.bf16 %v7689_v23  ;;  %v5001_v62 = vunpack.i.h.bf16 %v7679_v43 }
 0x3a9   : > { %v5000_v50 = vunpack.i.l.bf16 %v7679_v43  ;;  %v9018_v43 = vld [vmem:[#allocation73_spill] sm:$0xff] }
 0x3aa   : > { %5288 = vrot.lane.b32.xlu2 %v7477_v21, %s5605_s28  ;;  %5283 = vrot.lane.b32.xlu1 %v9008_v33, %s5605_s28  ;;  %v9012_v21 = vld [vmem:[#allocation34_spill] sm:$0xff] }
 0x3ab   : > { %5308 = vrot.lane.b32.xlu0 %v9009_v16, %s5605_s28  ;;  %v3579_v59 = vsel %vm226_vm0, %v9012_v21, %v5041_v14  ;;  %v3575_v14 = vsel %vm226_vm0, %v9017_v10, %v5001_v62  ;;  %v3574_v30 = vsel %vm226_vm0, %v9018_v43, %v5000_v50  ;;  %v9023_v10 = vld [vmem:[#allocation48_spill] sm:$0xff] }
 0x3ac   : > { %v5124_v1 = vpop.permute.xlu2 %5123  ;;  %v5074_v63 = vpop.permute.xlu1 %5073 }
 0x3ad   : > { %v5126_v22 = vunpack.i.h.bf16 %v5124_v1  ;;  %v5125_v35 = vunpack.i.l.bf16 %v5124_v1  ;;  %v5076_v23 = vunpack.i.h.bf16 %v5074_v63  ;;  %v5075_v32 = vunpack.i.l.bf16 %v5074_v63  ;;  %v5099_v13 = vpop.permute.xlu0 %5098 }
 0x3ae   : > { %v5101_v18 = vunpack.i.h.bf16 %v5099_v13  ;;  %v5100_v36 = vunpack.i.l.bf16 %v5099_v13  ;;  %v2476_v13 = vld [vmem:[#allocation3 + $0xf1] sm:$0xff] }
 0x3af   : > { %v7893_v58 = vsel %vm1790_vm4, %v7791_v4, %v5125_v35  ;;  %v7897_v20 = vsel %vm1790_vm4, %v7788_v37, %v5126_v22  ;;  %v3601_v15 = vsel %vm1757_vm3, %v3569_v12, %v5076_v23  ;;  %v3600_v41 = vsel %vm1757_vm3, %v3568_v17, %v5075_v32  ;;  %v9014_v4 = vld [vmem:[#allocation19_spill] sm:$0xff]  ;;  %v9015_v37 = vld [vmem:[#allocation20_spill] sm:$0xff]  ;;  %v2477_v12 = vld [vmem:[#allocation3 + $0xf9] sm:$0xff] }
 0x3b0   : > { %v7902_v61 = vsel %vm1757_vm3, %v3578_v49, %v5100_v36  ;;  %v7905_v7 = vsel %vm1757_vm3, %v3579_v59, %v5101_v18  ;;  %v9019_v22 = vld [vmem:[#allocation96_spill] sm:$0xff]  ;;  %v9020_v23 = vld [vmem:[#allocation49_spill] sm:$0xff]  ;;  %v5337_v21 = vpack.i.bf16 %v2477_v12, %v2476_v13 }
 0x3b1   : > { %v2479_v12 = vld [vmem:[#allocation3 + $0x111] sm:$0xff] }
 0x3b2   : > { %5303 = vrot.lane.b32.xlu2 %v9014_v4, %s5605_s28  ;;  %5298 = vrot.lane.b32.xlu1 %v9015_v37, %s5605_s28 }
 0x3b3   : > { %5323 = vrot.lane.b32.xlu0 %v9016_v48, %s5605_s28  ;;  %v2461_v48 = vld [vmem:[#allocation3 + $0x39] sm:$0xff] }
 0x3b4   : > { %v5139_v8 = vpop.permute.xlu2 %5138  ;;  %v5089_v54 = vpop.permute.xlu1 %5088 }
 0x3b5   : > { %v5141_v25 = vunpack.i.h.bf16 %v5139_v8  ;;  %v5140_v26 = vunpack.i.l.bf16 %v5139_v8  ;;  %v5091_v39 = vunpack.i.h.bf16 %v5089_v54  ;;  %v5090_v46 = vunpack.i.l.bf16 %v5089_v54  ;;  %v5114_v55 = vpop.permute.xlu0 %5113 }
 0x3b6   : > { %v5116_v33 = vunpack.i.h.bf16 %v5114_v55  ;;  %v5115_v31 = vunpack.i.l.bf16 %v5114_v55  ;;  %v2460_v55 = vld [vmem:[#allocation3 + $0x31] sm:$0xff] }
 0x3b7   : > { %v7920_v27 = vsel %vm1790_vm4, %v3594_v24, %v5140_v26  ;;  %v7923_v17 = vsel %vm1790_vm4, %v3595_v47, %v5141_v25  ;;  %v3607_v1 = vsel %vm1757_vm3, %v3575_v14, %v5091_v39  ;;  %v3606_v63 = vsel %vm1757_vm3, %v3574_v30, %v5090_v46  ;;  %v9021_v24 = vld [vmem:[#allocation33_spill] sm:$0xff]  ;;  %v9022_v47 = vld [vmem:[#allocation32_spill] sm:$0xff] }
 0x3b8   : > { %v7929_v35 = vsel %vm1790_vm4, %v9019_v22, %v5115_v31  ;;  %v7933_v32 = vsel %vm1790_vm4, %v9020_v23, %v5116_v33 }
 0x3ba   : > { %5318 = vrot.lane.b32.xlu2 %v9021_v24, %s5605_s28  ;;  %5313 = vrot.lane.b32.xlu1 %v9022_v47, %s5605_s28 }
 0x3bb   : > { %5338 = vrot.lane.b32.xlu0 %v5337_v21, %s5607_s30 }
 0x3bc   : > { %v5154_v59 = vpop.permute.xlu2 %5153  ;;  %v5104_v56 = vpop.permute.xlu1 %5103 }
 0x3bd   : > { %v5156_v49 = vunpack.i.h.bf16 %v5154_v59  ;;  %v5155_v18 = vunpack.i.l.bf16 %v5154_v59  ;;  %v5106_v36 = vunpack.i.h.bf16 %v5104_v56  ;;  %v5105_v62 = vunpack.i.l.bf16 %v5104_v56  ;;  %v5129_v50 = vpop.permute.xlu0 %5128  ;;  %v2478_v56 = vld [vmem:[#allocation3 + $0x109] sm:$0xff] }
 0x3be   : > { %v5131_v4 = vunpack.i.h.bf16 %v5129_v50  ;;  %v5130_v37 = vunpack.i.l.bf16 %v5129_v50  ;;  %v2492_v50 = vld [vmem:[#allocation3 + $0x32] sm:$0xff] }
 0x3bf   : > { %v7941_v8 = vsel %vm1790_vm4, %v3600_v41, %v5155_v18  ;;  %v7944_v54 = vsel %vm1790_vm4, %v3601_v15, %v5156_v49  ;;  %v3613_v25 = vsel %vm1790_vm4, %v7716_v5, %v5106_v36  ;;  %v3612_v26 = vsel %vm1790_vm4, %v7719_v40, %v5105_v62  ;;  %v9024_v15 = vld [vmem:[#allocation24_spill] sm:$0xff] }
 0x3c0   : > { %v7952_v39 = vsel %vm1790_vm4, %v7710_v44, %v5130_v37  ;;  %v7956_v46 = vsel %vm1790_vm4, %v7713_v53, %v5131_v4  ;;  %v5352_v41 = vpack.i.bf16 %v2461_v48, %v2460_v55  ;;  %v9025_v49 = vld [vmem:[#allocation28_spill] sm:$0xff] }
 0x3c1   : > { %v2463_v48 = vld [vmem:[#allocation3 + $0x51] sm:$0xff] }
 0x3c2   : > { %5333 = vrot.lane.b32.xlu2 %v9023_v10, %s5606_s29  ;;  %5328 = vrot.lane.b32.xlu1 %v9024_v15, %s5605_s28 }
 0x3c3   : > { %5353 = vrot.lane.b32.xlu0 %v5352_v41, %s5607_s30 }
 0x3c4   : > { %v5169_v5 = vpop.permute.xlu2 %5168  ;;  %v5119_v40 = vpop.permute.xlu1 %5118 }
 0x3c5   : > { %v5171_v14 = vunpack.i.h.bf16 %v5169_v5  ;;  %v5170_v43 = vunpack.i.l.bf16 %v5169_v5  ;;  %v5121_v44 = vunpack.i.h.bf16 %v5119_v40  ;;  %v5120_v30 = vunpack.i.l.bf16 %v5119_v40  ;;  %v5144_v33 = vpop.permute.xlu0 %5143 }
 0x3c6   : > { %v5146_v31 = vunpack.i.h.bf16 %v5144_v33  ;;  %v5145_v53 = vunpack.i.l.bf16 %v5144_v33 }
 0x3c7   : > { %v7964_v22 = vsel %vm1790_vm4, %v3606_v63, %v5170_v43  ;;  %v7967_v23 = vsel %vm1790_vm4, %v3607_v1, %v5171_v14  ;;  %v3619_v13 = vsel %vm1790_vm4, %v7755_v3, %v5121_v44  ;;  %v3618_v21 = vsel %vm1790_vm4, %v7752_v60, %v5120_v30 }
 0x3c8   : > { %v7975_v24 = vsel %vm1790_vm4, %v7836_v6, %v5145_v53  ;;  %v7979_v59 = vsel %vm1790_vm4, %v7839_v42, %v5146_v31  ;;  %v5367_v63 = vpack.i.bf16 %v2479_v12, %v2478_v56  ;;  %v2493_v42 = vld [vmem:[#allocation3 + $0x3a] sm:$0xff]  ;;  %v2431_v31 = vld [vmem:[#allocation3 + $0x50] sm:$0xff] }
 0x3c9   : > { %v5357_v40 = vpack.i.bf16 %v2493_v42, %v2492_v50  ;;  %v2481_v12 = vld [vmem:[#allocation3 + $0x129] sm:$0xff] }
 0x3ca   : > { %5348 = vrot.lane.b32.xlu2 %v9025_v49, %s5606_s29  ;;  %5343 = vrot.lane.b32.xlu1 %v9009_v16, %s5608_s6 }
 0x3cb   : > { %5368 = vrot.lane.b32.xlu0 %v5367_v63, %s5607_s30 }
 0x3cc   : > { %v5184_v3 = vpop.permute.xlu2 %5183  ;;  %v5134_v60 = vpop.permute.xlu1 %5133 }
 0x3cd   : > { %v5186_v1 = vunpack.i.h.bf16 %v5184_v3  ;;  %v5185_v18 = vunpack.i.l.bf16 %v5184_v3  ;;  %v5136_v6 = vunpack.i.h.bf16 %v5134_v60  ;;  %v5135_v36 = vunpack.i.l.bf16 %v5134_v60  ;;  %v5159_v62 = vpop.permute.xlu0 %5158  ;;  %v2430_v60 = vld [vmem:[#allocation3 + $0x48] sm:$0xff] }
 0x3ce   : > { %v5161_v4 = vunpack.i.h.bf16 %v5159_v62  ;;  %v5160_v37 = vunpack.i.l.bf16 %v5159_v62 }
 0x3cf   : > { %v7987_v55 = vsel %vm1823_vm5, %v3612_v26, %v5185_v18  ;;  %v7990_v41 = vsel %vm1823_vm5, %v3613_v25, %v5186_v1  ;;  %v3625_v16 = vsel %vm1790_vm4, %v7799_v52, %v5136_v6  ;;  %v3624_v10 = vsel %vm1790_vm4, %v7796_v57, %v5135_v36  ;;  %v2462_v26 = vld [vmem:[#allocation3 + $0x49] sm:$0xff]  ;;  %v9026_v25 = vld [vmem:[#allocation86_spill] sm:$0xff] }
 0x3d0   : > { %v7998_v15 = vsel %vm1790_vm4, %v7782_v9, %v5160_v37  ;;  %v8002_v5 = vsel %vm1790_vm4, %v7785_v11, %v5161_v4  ;;  %v5382_v14 = vpack.i.bf16 %v2463_v48, %v2462_v26  ;;  %v2480_v6 = vld [vmem:[#allocation3 + $0x121] sm:$0xff]  ;;  %v2494_v4 = vld [vmem:[#allocation3 + $0x4a] sm:$0xff] }
 0x3d1   : > { %v5397_v36 = vpack.i.bf16 %v2481_v12, %v2480_v6 }
 0x3d2   : > { %5363 = vrot.lane.b32.xlu2 %v9026_v25, %s5606_s29  ;;  %5358 = vrot.lane.b32.xlu1 %v5357_v40, %s5608_s6  ;;  %v2465_v40 = vld [vmem:[#allocation3 + $0x69] sm:$0xff] }
 0x3d3   : > { %5383 = vrot.lane.b32.xlu0 %v5382_v14, %s5607_s30 }
 0x3d4   : > { %v5199_v52 = vpop.permute.xlu2 %5198  ;;  %v5149_v57 = vpop.permute.xlu1 %5148 }
 0x3d5   : > { %v5201_v43 = vunpack.i.h.bf16 %v5199_v52  ;;  %v5200_v44 = vunpack.i.l.bf16 %v5199_v52  ;;  %v5151_v9 = vunpack.i.h.bf16 %v5149_v57  ;;  %v5150_v30 = vunpack.i.l.bf16 %v5149_v57  ;;  %v5174_v33 = vpop.permute.xlu0 %5173 }
 0x3d6   : > { %v5176_v11 = vunpack.i.h.bf16 %v5174_v33  ;;  %v5175_v53 = vunpack.i.l.bf16 %v5174_v33 }
 0x3d7   : > { %v8009_v56 = vsel %vm1823_vm5, %v3618_v21, %v5200_v44  ;;  %v8012_v63 = vsel %vm1823_vm5, %v3619_v13, %v5201_v43  ;;  %v3631_v49 = vsel %vm1790_vm4, %v7833_v19, %v5151_v9  ;;  %v3630_v3 = vsel %vm1790_vm4, %v7830_v28, %v5150_v30 }
 0x3d8   : > { %v8020_v1 = vsel %vm1790_vm4, %v7820_v0, %v5175_v53  ;;  %v8024_v18 = vsel %vm1790_vm4, %v7823_v34, %v5176_v11  ;;  %v5377_v21 = vpack.i.bf16 %v2431_v31, %v2430_v60  ;;  %v2495_v34 = vld [vmem:[#allocation3 + $0x52] sm:$0xff]  ;;  %v2512_v11 = vld [vmem:[#allocation3 + $0x122] sm:$0xff] }
 0x3d9   : > { %v5387_v43 = vpack.i.bf16 %v2495_v34, %v2494_v4  ;;  %v2483_v60 = vld [vmem:[#allocation3 + $0x141] sm:$0xff] }
 0x3da   : > { %5378 = vrot.lane.b32.xlu2 %v5377_v21, %s5606_s29  ;;  %5373 = vrot.lane.b32.xlu1 %v9022_v47, %s5608_s6 }
 0x3db   : > { %5398 = vrot.lane.b32.xlu0 %v5397_v36, %s5607_s30 }
 0x3dc   : > { %v5214_v28 = vpop.permute.xlu2 %5213  ;;  %v5164_v19 = vpop.permute.xlu1 %5163 }
 0x3dd   : > { %v5216_v13 = vunpack.i.h.bf16 %v5214_v28  ;;  %v5215_v62 = vunpack.i.l.bf16 %v5214_v28  ;;  %v5166_v0 = vunpack.i.h.bf16 %v5164_v19  ;;  %v5165_v50 = vunpack.i.l.bf16 %v5164_v19  ;;  %v5189_v42 = vpop.permute.xlu0 %5188 }
 0x3de   : > { %v5191_v37 = vunpack.i.h.bf16 %v5189_v42  ;;  %v5190_v48 = vunpack.i.l.bf16 %v5189_v42 }
 0x3df   : > { %v8031_v26 = vsel %vm1823_vm5, %v3624_v10, %v5215_v62  ;;  %v8034_v14 = vsel %vm1823_vm5, %v3625_v16, %v5216_v13  ;;  %v3637_v47 = vsel %vm1790_vm4, %v7873_v45, %v5166_v0  ;;  %v3636_v25 = vsel %vm1790_vm4, %v7870_v2, %v5165_v50  ;;  %v2464_v10 = vld [vmem:[#allocation3 + $0x61] sm:$0xff] }
 0x3e0   : > { %v8042_v52 = vsel %vm1823_vm5, %v7859_v38, %v5190_v48  ;;  %v8046_v57 = vsel %vm1823_vm5, %v7863_v51, %v5191_v37  ;;  %v5412_v44 = vpack.i.bf16 %v2465_v40, %v2464_v10  ;;  %v9027_v16 = vld [vmem:[#allocation26_spill] sm:$0xff]  ;;  %v2513_v51 = vld [vmem:[#allocation3 + $0x12a] sm:$0xff] }
 0x3e1   : > { %v5402_v62 = vpack.i.bf16 %v2513_v51, %v2512_v11  ;;  %v2496_v37 = vld [vmem:[#allocation3 + $0x62] sm:$0xff] }
 0x3e2   : > { %5393 = vrot.lane.b32.xlu2 %v9027_v16, %s5606_s29  ;;  %5388 = vrot.lane.b32.xlu1 %v5387_v43, %s5608_s6  ;;  %v2467_v43 = vld [vmem:[#allocation3 + $0x81] sm:$0xff] }
 0x3e3   : > { %5413 = vrot.lane.b32.xlu0 %v5412_v44, %s5607_s30 }
 0x3e4   : > { %v5229_v45 = vpop.permute.xlu2 %5228  ;;  %v5179_v2 = vpop.permute.xlu1 %5178 }
 0x3e5   : > { %v5231_v9 = vunpack.i.h.bf16 %v5229_v45  ;;  %v5230_v30 = vunpack.i.l.bf16 %v5229_v45  ;;  %v5181_v38 = vunpack.i.h.bf16 %v5179_v2  ;;  %v5180_v33 = vunpack.i.l.bf16 %v5179_v2  ;;  %v5204_v31 = vpop.permute.xlu0 %5203 }
 0x3e6   : > { %v5206_v53 = vunpack.i.h.bf16 %v5204_v31  ;;  %v5205_v12 = vunpack.i.l.bf16 %v5204_v31 }
 0x3e7   : > { %v8053_v21 = vsel %vm1823_vm5, %v3630_v3, %v5230_v30  ;;  %v8056_v6 = vsel %vm1823_vm5, %v3631_v49, %v5231_v9  ;;  %v3643_v36 = vsel %vm1790_vm4, %v7905_v7, %v5181_v38  ;;  %v3642_v28 = vsel %vm1790_vm4, %v7902_v61, %v5180_v33  ;;  %v2482_v3 = vld [vmem:[#allocation3 + $0x139] sm:$0xff]  ;;  %v9028_v49 = vld [vmem:[#allocation27_spill] sm:$0xff] }
 0x3e8   : > { %v8064_v19 = vsel %vm1823_vm5, %v7893_v58, %v5205_v12  ;;  %v8068_v13 = vsel %vm1823_vm5, %v7897_v20, %v5206_v53  ;;  %v5427_v0 = vpack.i.bf16 %v2483_v60, %v2482_v3  ;;  %v2497_v20 = vld [vmem:[#allocation3 + $0x6a] sm:$0xff]  ;;  %v2435_v53 = vld [vmem:[#allocation3 + $0x80] sm:$0xff] }
 0x3e9   : > { %v5417_v30 = vpack.i.bf16 %v2497_v20, %v2496_v37  ;;  %v2515_v12 = vld [vmem:[#allocation3 + $0x142] sm:$0xff]  ;;  %v2485_v3 = vld [vmem:[#allocation3 + $0x159] sm:$0xff] }
 0x3ea   : > { %5408 = vrot.lane.b32.xlu2 %v9028_v49, %s5606_s29  ;;  %5403 = vrot.lane.b32.xlu1 %v5402_v62, %s5608_s6 }
 0x3eb   : > { %5428 = vrot.lane.b32.xlu0 %v5427_v0, %s5607_s30 }
 0x3ec   : > { %v5244_v7 = vpop.permute.xlu2 %5243  ;;  %v5194_v61 = vpop.permute.xlu1 %5193 }
 0x3ed   : > { %v5246_v50 = vunpack.i.h.bf16 %v5244_v7  ;;  %v5245_v42 = vunpack.i.l.bf16 %v5244_v7  ;;  %v5196_v58 = vunpack.i.h.bf16 %v5194_v61  ;;  %v5195_v4 = vunpack.i.l.bf16 %v5194_v61  ;;  %v5219_v34 = vpop.permute.xlu0 %5218 }
 0x3ee   : > { %v5221_v48 = vunpack.i.h.bf16 %v5219_v34  ;;  %v5220_v40 = vunpack.i.l.bf16 %v5219_v34  ;;  %v2484_v34 = vld [vmem:[#allocation3 + $0x151] sm:$0xff] }
 0x3ef   : > { %v8075_v10 = vsel %vm1823_vm5, %v3636_v25, %v5245_v42  ;;  %v8078_v44 = vsel %vm1823_vm5, %v3637_v47, %v5246_v50  ;;  %v3648_v16 = vsel %vm1823_vm5, %v7929_v35, %v5195_v4  ;;  %v3649_v45 = vsel %vm1823_vm5, %v7933_v32, %v5196_v58  ;;  %v2466_v25 = vld [vmem:[#allocation3 + $0x79] sm:$0xff]  ;;  %v9029_v47 = vld [vmem:[#allocation52_spill] sm:$0xff] }
 0x3f0   : > { %v8086_v2 = vsel %vm1823_vm5, %v7920_v27, %v5220_v40  ;;  %v8090_v9 = vsel %vm1823_vm5, %v7923_v17, %v5221_v48  ;;  %v5442_v38 = vpack.i.bf16 %v2467_v43, %v2466_v25  ;;  %v2514_v17 = vld [vmem:[#allocation3 + $0x13a] sm:$0xff]  ;;  %v2499_v40 = vld [vmem:[#allocation3 + $0x82] sm:$0xff] }
 0x3f1   : > { %v2434_v50 = vld [vmem:[#allocation3 + $0x78] sm:$0xff]  ;;  %v5432_v4 = vpack.i.bf16 %v2515_v12, %v2514_v17 }
 0x3f2   : > { %5423 = vrot.lane.b32.xlu2 %v9029_v47, %s5606_s29  ;;  %5418 = vrot.lane.b32.xlu1 %v5417_v30, %s5608_s6  ;;  %v2498_v48 = vld [vmem:[#allocation3 + $0x7a] sm:$0xff]  ;;  %v2516_v12 = vld [vmem:[#allocation3 + $0x152] sm:$0xff] }
 0x3f3   : > { %5443 = vrot.lane.b32.xlu0 %v5442_v38, %s5607_s30  ;;  %v2469_v30 = vld [vmem:[#allocation3 + $0x99] sm:$0xff] }
 0x3f4   : > { %v5259_v35 = vpop.permute.xlu2 %5258  ;;  %v5209_v32 = vpop.permute.xlu1 %5208 }
 0x3f5   : > { %v5261_v33 = vunpack.i.h.bf16 %v5259_v35  ;;  %v5260_v31 = vunpack.i.l.bf16 %v5259_v35  ;;  %v5211_v27 = vunpack.i.h.bf16 %v5209_v32  ;;  %v5210_v11 = vunpack.i.l.bf16 %v5209_v32  ;;  %v5234_v51 = vpop.permute.xlu0 %5233 }
 0x3f6   : > { %v5236_v60 = vunpack.i.h.bf16 %v5234_v51  ;;  %v5235_v62 = vunpack.i.l.bf16 %v5234_v51  ;;  %v5447_v32 = vpack.i.bf16 %v2499_v40, %v2498_v48  ;;  %v2455_v40 = vld [vmem:[#allocation3 + $0x170] sm:$0xff] }
 0x3f7   : > { %v8097_v0 = vsel %vm1823_vm5, %v3642_v28, %v5260_v31  ;;  %v8100_v49 = vsel %vm1823_vm5, %v3643_v36, %v5261_v33  ;;  %v3654_v7 = vsel %vm1823_vm5, %v7952_v39, %v5210_v11  ;;  %v3655_v61 = vsel %vm1823_vm5, %v7956_v46, %v5211_v27  ;;  %v2468_v33 = vld [vmem:[#allocation3 + $0x91] sm:$0xff]  ;;  %v9030_v27 = vld [vmem:[#allocation51_spill] sm:$0xff] }
 0x3f8   : > { %v8108_v42 = vsel %vm1823_vm5, %v7941_v8, %v5235_v62  ;;  %v8112_v58 = vsel %vm1823_vm5, %v7944_v54, %v5236_v60  ;;  %v5437_v28 = vpack.i.bf16 %v2435_v53, %v2434_v50  ;;  %v5457_v36 = vpack.i.bf16 %v2485_v3, %v2484_v34  ;;  %v2517_v60 = vld [vmem:[#allocation3 + $0x15a] sm:$0xff]  ;;  %v2487_v62 = vld [vmem:[#allocation3 + $0x171] sm:$0xff] }
 0x3f9   : > { %v5472_v31 = vpack.i.bf16 %v2469_v30, %v2468_v33  ;;  %v2436_v34 = vld [vmem:[#allocation3 + $0x90] sm:$0xff] }
 0x3fa   : > { %5438 = vrot.lane.b32.xlu2 %v5437_v28, %s5606_s29  ;;  %5433 = vrot.lane.b32.xlu1 %v5432_v4, %s5608_s6 }
 0x3fb   : > { %5458 = vrot.lane.b32.xlu0 %v5457_v36, %s5607_s30 }
 0x3fc   : > { %v5274_v39 = vpop.permute.xlu2 %5273  ;;  %v8117_v46 = vpop.permute.xlu1 %5223 }
 0x3fd   : > { %v5276_v37 = vunpack.i.h.bf16 %v5274_v39  ;;  %v5275_v8 = vunpack.i.l.bf16 %v5274_v39  ;;  %v5249_v20 = vpop.permute.xlu0 %5248  ;;  %v5462_v39 = vpack.i.bf16 %v2517_v60, %v2516_v12  ;;  %v2518_v12 = vld [vmem:[#allocation3 + $0x16a] sm:$0xff]  ;;  %v2519_v60 = vld [vmem:[#allocation3 + $0x172] sm:$0xff] }
 0x3fe   : > { %v5251_v54 = vunpack.i.h.bf16 %v5249_v20  ;;  %v5250_v43 = vunpack.i.l.bf16 %v5249_v20 }
 0x3ff   : > { %v8120_v25 = vsel %vm1856_vm6, %v3648_v16, %v5275_v8  ;;  %v8123_v38 = vsel %vm1856_vm6, %v3649_v45, %v5276_v37  ;;  %v2486_v37 = vld [vmem:[#allocation3 + $0x169] sm:$0xff] }
 0x400   : > { %v8127_v47 = vsel %vm1823_vm5, %v7964_v22, %v5250_v43  ;;  %v8131_v35 = vsel %vm1823_vm5, %v7967_v23, %v5251_v54  ;;  %v2437_v23 = vld [vmem:[#allocation3 + $0x98] sm:$0xff]  ;;  %v5487_v8 = vpack.i.bf16 %v2487_v62, %v2486_v37 }
 0x401   : > { %v5467_v36 = vpack.i.bf16 %v2437_v23, %v2436_v34  ;;  %v2501_v54 = vld [vmem:[#allocation3 + $0x9a] sm:$0xff] }
 0x402   : > { %5453 = vrot.lane.b32.xlu2 %v9030_v27, %s5606_s29  ;;  %5448 = vrot.lane.b32.xlu1 %v5447_v32, %s5608_s6  ;;  %v2471_v32 = vld [vmem:[#allocation3 + $0xb1] sm:$0xff]  ;;  %v2454_v27 = vld [vmem:[#allocation3 + $0x168] sm:$0xff] }
 0x403   : > { %5473 = vrot.lane.b32.xlu0 %v5472_v31, %s5607_s30 }
 0x404   : > { %v5289_v16 = vpop.permute.xlu2 %5288  ;;  %v5239_v45 = vpop.permute.xlu1 %5238 }
 0x405   : > { %v5291_v11 = vunpack.i.h.bf16 %v5289_v16  ;;  %v5290_v51 = vunpack.i.l.bf16 %v5289_v16  ;;  %v5241_v22 = vunpack.i.h.bf16 %v5239_v45  ;;  %v5240_v53 = vunpack.i.l.bf16 %v5239_v45  ;;  %v8137_v17 = vpop.permute.xlu0 %5263 }
 0x407   : > { %v8140_v3 = vsel %vm1856_vm6, %v3654_v7, %v5290_v51  ;;  %v8143_v50 = vsel %vm1856_vm6, %v3655_v61, %v5291_v11  ;;  %v8147_v28 = vsel %vm1823_vm5, %v7998_v15, %v5240_v53  ;;  %v8151_v4 = vsel %vm1823_vm5, %v8002_v5, %v5241_v22  ;;  %v2500_v5 = vld [vmem:[#allocation3 + $0x92] sm:$0xff]  ;;  %v2470_v22 = vld [vmem:[#allocation3 + $0xa9] sm:$0xff] }
 0x408   : > { %v5482_v11 = vpack.i.bf16 %v2455_v40, %v2454_v27  ;;  %v5477_v51 = vpack.i.bf16 %v2501_v54, %v2500_v5  ;;  %v5502_v53 = vpack.i.bf16 %v2471_v32, %v2470_v22  ;;  %v2441_v22 = vld [vmem:[#allocation3 + $0xc8] sm:$0xff] }
 0x40a   : > { %5468 = vrot.lane.b32.xlu2 %v5467_v36, %s5606_s29  ;;  %5463 = vrot.lane.b32.xlu1 %v5462_v39, %s5608_s6  ;;  %v2438_v36 = vld [vmem:[#allocation3 + $0xa8] sm:$0xff] }
 0x40b   : > { %5488 = vrot.lane.b32.xlu0 %v5487_v8, %s5607_s30  ;;  %v2457_v39 = vld [vmem:[#allocation3 + $0x188] sm:$0xff] }
 0x40c   : > { %v8156_v7 = vpop.permute.xlu2 %5303  ;;  %v5254_v61 = vpop.permute.xlu1 %5253 }
 0x40d   : > { %v5256_v15 = vunpack.i.h.bf16 %v5254_v61  ;;  %v5255_v20 = vunpack.i.l.bf16 %v5254_v61  ;;  %v5279_v48 = vpop.permute.xlu0 %5278 }
 0x40e   : > { %v5281_v43 = vunpack.i.h.bf16 %v5279_v48  ;;  %v5280_v30 = vunpack.i.l.bf16 %v5279_v48  ;;  %v2456_v48 = vld [vmem:[#allocation3 + $0x180] sm:$0xff] }
 0x40f   : > { %v8160_v33 = vsel %vm1823_vm5, %v8020_v1, %v5255_v20  ;;  %v8164_v31 = vsel %vm1823_vm5, %v8024_v18, %v5256_v15  ;;  %v5492_v20 = vpack.i.bf16 %v2519_v60, %v2518_v12  ;;  %v5517_v5 = vpack.i.bf16 %v2457_v39, %v2456_v48  ;;  %v4198_v12 = vld [vmem:[%s8638_s3] sm:$0xff]  ;;  %v2520_v39 = vld [vmem:[#allocation3 + $0x182] sm:$0xff] }
 0x410   : > { %v8168_v16 = vsel %vm1856_vm6, %v8009_v56, %v5280_v30  ;;  %v8172_v45 = vsel %vm1856_vm6, %v8012_v63, %v5281_v43  ;;  %v2439_v56 = vld [vmem:[#allocation3 + $0xb0] sm:$0xff]  ;;  %v3824_v63 = vld [vmem:[%s8638_s3 + $0x10] sm:$0x3] }
 0x411   : > { %v3838_v37 = vunpack.c.l.b16 %v3824_v63  ;;  %v5497_v8 = vpack.i.bf16 %v2439_v56, %v2438_v36 }
 0x412   : > { %5483 = vrot.lane.b32.xlu2 %v5482_v11, %s5606_s29  ;;  %5478 = vrot.lane.b32.xlu1 %v5477_v51, %s5608_s6  ;;  %v2502_v11 = vld [vmem:[#allocation3 + $0xaa] sm:$0xff]  ;;  %v2503_v51 = vld [vmem:[#allocation3 + $0xb2] sm:$0xff] }
 0x413   : > { %5503 = vrot.lane.b32.xlu0 %v5502_v53, %s5607_s30  ;;  %v3841_v40 = vpack.c.b16 %v3838_v37, %v3838_v37  ;;  %v5507_v63 = vpack.i.bf16 %v2503_v51, %v2502_v11  ;;  %v2521_v37 = vld [vmem:[#allocation3 + $0x18a] sm:$0xff] }
 0x414   : > { %v8177_v1 = vpop.permute.xlu2 %5318  ;;  %v8179_v18 = vpop.permute.xlu1 %5268  ;;  %v2505_v11 = vld [vmem:[#allocation3 + $0xca] sm:$0xff] }
 0x415   : > { %v5294_v23 = vpop.permute.xlu0 %5293  ;;  %v3893_v54 = vsel %vm2077_vm7, %v3841_v40, 0  ;;  %v2473_v51 = vld [vmem:[#allocation3 + $0xc9] sm:$0xff] }
 0x416   : > { %v5296_v62 = vunpack.i.h.bf16 %v5294_v23  ;;  %v5295_v34 = vunpack.i.l.bf16 %v5294_v23  ;;  %4282 = vmatpush.bf16.msra.mxu3 %v3893_v54  ;;  %3900 = vmatpush.bf16.msra.mxu1 %v3893_v54  ;;  %v2440_v23 = vld [vmem:[#allocation3 + $0xc0] sm:$0xff] }
 0x417   : > { %v5532_v60 = vpack.i.bf16 %v2441_v22, %v2440_v23 }
 0x418   : > { %v8186_v61 = vsel %vm1856_vm6, %v8031_v26, %v5295_v34  ;;  %v8190_v15 = vsel %vm1856_vm6, %v8034_v14, %v5296_v62  ;;  %v4199_v26 = vld [vmem:[%s8638_s3 + $0x8] sm:$0xff] }
 0x41a   : > { %5498 = vrot.lane.b32.xlu2 %v5497_v8, %s5606_s29  ;;  %5493 = vrot.lane.b32.xlu1 %v5492_v20, %s5608_s6 }
 0x41b   : > { %5518 = vrot.lane.b32.xlu0 %v5517_v5, %s5606_s29  ;;  %4283 = vmatpush.bf16.msra.mxu3 %v4199_v26 }
 0x41c   : > { %v8199_v43 = vpop.permute.xlu2 %5333  ;;  %v5284_v14 = vpop.permute.xlu1 %5283  ;;  %3901 = vmatpush.bf16.msra.mxu1 %v4199_v26  ;;  %v5527_v26 = vpack.i.bf16 %v2521_v37, %v2520_v39 }
 0x41d   : > { %v5286_v30 = vunpack.i.h.bf16 %v5284_v14  ;;  %v5285_v32 = vunpack.i.l.bf16 %v5284_v14  ;;  %v8201_v27 = vpop.permute.xlu0 %5308  ;;  %v2522_v14 = vld [vmem:[#allocation3 + $0x19a] sm:$0xff] }
 0x41f   : > { %v8205_v53 = vsel %vm1856_vm6, %v8064_v19, %v5285_v32  ;;  %v8209_v56 = vsel %vm1856_vm6, %v8068_v13, %v5286_v30  ;;  %4284 = vmatpush.bf16.msra.mxu3 %v4198_v12  ;;  %v2523_v30 = vld [vmem:[#allocation3 + $0x1a2] sm:$0xff] }
 0x420   : > { %3902 = vmatpush.bf16.msra.mxu1 %v4198_v12  ;;  %v2504_v32 = vld [vmem:[#allocation3 + $0xc2] sm:$0xff]  ;;  %v5562_v22 = vpack.i.bf16 %v2523_v30, %v2522_v14  ;;  %v5226_v30 = vunpack.i.h.bf16 %v8117_v46 }
 0x421   : > { %v2491_v12 = vld [vmem:[#allocation3 + $0x1a1] sm:$0xff] }
 0x422   : > { %5513 = vrot.lane.b32.xlu2 %v5492_v20, %s5605_s28  ;;  %5508 = vrot.lane.b32.xlu1 %v5507_v63, %s5608_s6  ;;  %v5542_v63 = vpack.i.bf16 %v2505_v11, %v2504_v32  ;;  %v2507_v14 = vld [vmem:[#allocation3 + $0xe2] sm:$0xff]  ;;  %v5225_v32 = vunpack.i.l.bf16 %v8117_v46 }
 0x423   : > { %5533 = vrot.lane.b32.xlu0 %v5532_v60, %s5606_s29  ;;  %v2458_v60 = vld [vmem:[#allocation3 + $0x198] sm:$0xff] }
 0x424   : > { %v8217_v19 = vpop.permute.xlu2 %5348  ;;  %v5299_v13 = vpop.permute.xlu1 %5298  ;;  %v3660_v46 = vsel %vm1823_vm5, %v7975_v24, %v5225_v32  ;;  %v2442_v32 = vld [vmem:[#allocation3 + $0xd8] sm:$0xff] }
 0x425   : > { %v5301_v62 = vunpack.i.h.bf16 %v5299_v13  ;;  %v5300_v34 = vunpack.i.l.bf16 %v5299_v13  ;;  %v5324_v36 = vpop.permute.xlu0 %5323  ;;  %v2459_v13 = vld [vmem:[#allocation3 + $0x1a0] sm:$0xff] }
 0x426   : > { %v5326_v8 = vunpack.i.h.bf16 %v5324_v36  ;;  %v5325_v48 = vunpack.i.l.bf16 %v5324_v36 }
 0x427   : > { %v8221_v40 = vsel %vm1856_vm6, %v8086_v2, %v5300_v34  ;;  %v8225_v20 = vsel %vm1856_vm6, %v8090_v9, %v5301_v62 }
 0x428   : > { %v8229_v5 = vsel %vm1856_vm6, %v8075_v10, %v5325_v48  ;;  %v8233_v54 = vsel %vm1856_vm6, %v8078_v44, %v5326_v8  ;;  %v2472_v44 = vld [vmem:[#allocation3 + $0xc1] sm:$0xff]  ;;  %v5552_v48 = vpack.i.bf16 %v2459_v13, %v2458_v60 }
 0x429   : > { %v5537_v23 = vpack.i.bf16 %v2473_v51, %v2472_v44  ;;  %v5306_v44 = vunpack.i.h.bf16 %v8156_v7 }
 0x42a   : > { %5528 = vrot.lane.b32.xlu2 %v5527_v26, %s5608_s6  ;;  %5523 = vrot.lane.b32.xlu1 %v7767_v29, %s5607_s30  ;;  %v2490_v29 = vld [vmem:[#allocation3 + $0x199] sm:$0xff] }
 0x42b   : > { %5548 = vrot.lane.b32.xlu0 %v5527_v26, %s5605_s28  ;;  %v5557_v8 = vpack.i.bf16 %v2491_v12, %v2490_v29  ;;  %v2506_v26 = vld [vmem:[#allocation3 + $0xda] sm:$0xff]  ;;  %s8472_s28 = scalar_lea.vmem %s8640_s5, %s4195_s25 }
 0x42c   : > { %v8239_v2 = vpop.permute.xlu2 %5363  ;;  %v8241_v9 = vpop.permute.xlu1 %5313  ;;  %v5577_v29 = vpack.i.bf16 %v2507_v14, %v2506_v26  ;;  %v2474_v14 = vld [vmem:[#allocation3 + $0xd9] sm:$0xff] }
 0x42d   : > { %v5339_v10 = vpop.permute.xlu0 %5338 }
 0x42e   : > { %v5341_v12 = vunpack.i.h.bf16 %v5339_v10  ;;  %v5340_v60 = vunpack.i.l.bf16 %v5339_v10  ;;  %v2475_v10 = vld [vmem:[#allocation3 + $0xe1] sm:$0xff] }
 0x432   : > { %5543 = vrot.lane.b32.xlu2 %v5542_v63, %s5608_s6  ;;  %5538 = vrot.lane.b32.xlu1 %v5537_v23, %s5607_s30  ;;  %v5336_v63 = vunpack.i.h.bf16 %v8199_v43  ;;  %v5335_v23 = vunpack.i.l.bf16 %v8199_v43 }
 0x433   : > { %5563 = vrot.lane.b32.xlu0 %v5562_v22, %s5608_s6  ;;  %v5305_v22 = vunpack.i.l.bf16 %v8156_v7 }
 0x434   : > { %v8246_v62 = vpop.permute.xlu2 %5378  ;;  %v5329_v34 = vpop.permute.xlu1 %5328 }
 0x435   : > { %v5331_v36 = vunpack.i.h.bf16 %v5329_v34  ;;  %v5330_v39 = vunpack.i.l.bf16 %v5329_v34  ;;  %v5354_v37 = vpop.permute.xlu0 %5353 }
 0x437   : > { %v8252_v11 = vsel %vm1856_vm6, %v8127_v47, %v5330_v39  ;;  %v8256_v51 = vsel %vm1856_vm6, %v8131_v35, %v5331_v36  ;;  %v3661_v47 = vsel %vm1823_vm5, %v7979_v59, %v5226_v30  ;;  %v3692_v35 = vsel %vm1856_vm6, %v3660_v46, %v5305_v22 }
 0x438   : > { %v3693_v7 = vsel %vm1856_vm6, %v3661_v47, %v5306_v44  ;;  %v3724_v34 = vsel %vm1889_vm8, %v3692_v35, %v5335_v23  ;;  %v5572_v30 = vpack.i.bf16 %v2475_v10, %v2474_v14  ;;  %v5265_v23 = vunpack.i.l.bf16 %v8137_v17 }
 0x439   : > { %v3725_v36 = vsel %vm1889_vm8, %v3693_v7, %v5336_v63  ;;  %v3756_v59 = vsel %vm1922_vm9, %v3724_v34, %v5340_v60  ;;  %v5351_v47 = vunpack.i.h.bf16 %v8217_v19  ;;  %v5350_v35 = vunpack.i.l.bf16 %v8217_v19 }
 0x43a   : > { %5558 = vrot.lane.b32.xlu2 %v5557_v8, %s5607_s30  ;;  %5553 = vrot.lane.b32.xlu1 %v5552_v48, %s5606_s29  ;;  %v2443_v48 = vld [vmem:[#allocation3 + $0xe0] sm:$0xff]  ;;  %v3757_v26 = vsel %vm1922_vm9, %v3725_v36, %v5341_v12  ;;  %v5356_v60 = vunpack.i.h.bf16 %v5354_v37  ;;  %v5355_v7 = vunpack.i.l.bf16 %v5354_v37  ;;  %v3676_v12 = vsel %vm1856_vm6, %v7987_v55, %v5265_v23 }
 0x43b   : > { %5578 = vrot.lane.b32.xlu0 %v5577_v29, %s5608_s6  ;;  %v5266_v29 = vunpack.i.h.bf16 %v8137_v17  ;;  %v5567_v63 = vpack.i.bf16 %v2443_v48, %v2442_v32  ;;  %v3708_v10 = vsel %vm1889_vm8, %v3676_v12, %v5350_v35  ;;  %v5365_v32 = vunpack.i.l.bf16 %v8239_v2 }
 0x43c   : > { %v8271_v43 = vpop.permute.xlu2 %5393  ;;  %v5344_v13 = vpop.permute.xlu1 %5343 }
 0x43d   : > { %v5346_v39 = vunpack.i.h.bf16 %v5344_v13  ;;  %v5345_v8 = vunpack.i.l.bf16 %v5344_v13  ;;  %v5369_v24 = vpop.permute.xlu0 %5368  ;;  %v3677_v17 = vsel %vm1856_vm6, %v7990_v41, %v5266_v29  ;;  %v5311_v41 = vunpack.i.h.bf16 %v8201_v27 }
 0x43e   : > { %v3709_v34 = vsel %vm1889_vm8, %v3677_v17, %v5351_v47  ;;  %v5270_v17 = vunpack.i.l.bf16 %v8179_v18 }
 0x43f   : > { %v3788_v44 = vsel %vm1955_vm10, %v3756_v59, %v5345_v8  ;;  %v3789_v22 = vsel %vm1955_vm10, %v3757_v26, %v5346_v39  ;;  %v3740_v8 = vsel %vm1922_vm9, %v3708_v10, %v5355_v7  ;;  %v3741_v48 = vsel %vm1922_vm9, %v3709_v34, %v5356_v60 }
 0x440   : > { %v3812_v46 = vpack.c.bf16 %v3789_v22, %v3788_v44  ;;  %v5310_v26 = vunpack.i.l.bf16 %v8201_v27  ;;  %v5371_v44 = vunpack.i.h.bf16 %v5369_v24  ;;  %v5370_v22 = vunpack.i.l.bf16 %v5369_v24 }
 0x441   : > { %v3695_v23 = vsel %vm1856_vm6, %v8056_v6, %v5311_v41  ;;  %v5271_v6 = vunpack.i.h.bf16 %v8179_v18  ;;  %v5381_v10 = vunpack.i.h.bf16 %v8246_v62  ;;  %v5380_v34 = vunpack.i.l.bf16 %v8246_v62 }
 0x442   : > { %5573 = vrot.lane.b32.xlu2 %v5572_v30, %s5607_s30  ;;  %5568 = vrot.lane.b32.xlu1 %v5567_v63, %s5606_s29  ;;  %v5366_v30 = vunpack.i.h.bf16 %v8239_v2  ;;  %v3694_v29 = vsel %vm1856_vm6, %v8053_v21, %v5310_v26 }
 0x443   : > { %4184 = vmatmul.msk.bf16.vlgmr.msra.gmra.mxu3 %vm2028_vm11, %v3812_v46  ;;  %v3726_v46 = vsel %vm1889_vm8, %v3694_v29, %v5365_v32  ;;  %v5395_v29 = vunpack.i.l.bf16 %v8271_v43 }
 0x444   : > { %v5359_v13 = vpop.permute.xlu1 %5358  ;;  %v8292_v19 = vpop.permute.xlu2 %5408  ;;  %v3727_v27 = vsel %vm1889_vm8, %v3695_v23, %v5366_v30  ;;  %v3758_v2 = vsel %vm1922_vm9, %v3726_v46, %v5370_v22  ;;  %v5396_v22 = vunpack.i.h.bf16 %v8271_v43 }
 0x445   : > { %v5361_v37 = vunpack.i.h.bf16 %v5359_v13  ;;  %v5360_v36 = vunpack.i.l.bf16 %v5359_v13  ;;  %v5384_v39 = vpop.permute.xlu0 %5383  ;;  %v3759_v24 = vsel %vm1922_vm9, %v3727_v27, %v5371_v44 }
 0x447   : > { %v3772_v59 = vsel %vm1955_vm10, %v3740_v8, %v5360_v36  ;;  %v3773_v55 = vsel %vm1955_vm10, %v3741_v48, %v5361_v37  ;;  %v5386_v37 = vunpack.i.h.bf16 %v5384_v39  ;;  %v5385_v36 = vunpack.i.l.bf16 %v5384_v39 }
 0x448   : > { %v3804_v14 = vpack.c.bf16 %v3773_v55, %v3772_v59  ;;  %v3678_v8 = vsel %vm1856_vm6, %v8042_v52, %v5270_v17  ;;  %v3679_v48 = vsel %vm1856_vm6, %v8046_v57, %v5271_v6  ;;  %v5316_v52 = vunpack.i.h.bf16 %v8241_v9 }
 0x449   : > { %v3710_v55 = vsel %vm1889_vm8, %v3678_v8, %v5380_v34  ;;  %v3711_v18 = vsel %vm1889_vm8, %v3679_v48, %v5381_v10  ;;  %v5315_v57 = vunpack.i.l.bf16 %v8241_v9 }
 0x44a   : > { %4176 = vmatmul.msk.bf16.vlgmr.msra.gmra.mxu1 %vm2028_vm11, %v3804_v14  ;;  %v3742_v62 = vsel %vm1922_vm9, %v3710_v55, %v5385_v36  ;;  %v3743_v39 = vsel %vm1922_vm9, %v3711_v18, %v5386_v37 }
 0x44b   : > { %v3696_v27 = vsel %vm1856_vm6, %v8108_v42, %v5315_v57 }
 0x44c   : > { %v5374_v63 = vpop.permute.xlu1 %5373  ;;  %v8311_v7 = vpop.permute.xlu2 %5423  ;;  %v3728_v9 = vsel %vm1889_vm8, %v3696_v27, %v5395_v29 }
 0x44d   : > { %v5376_v47 = vunpack.i.h.bf16 %v5374_v63  ;;  %v5375_v35 = vunpack.i.l.bf16 %v5374_v63  ;;  %v5399_v60 = vpop.permute.xlu0 %5398 }
 0x44e   : > { %v5401_v63 = vunpack.i.h.bf16 %v5399_v60  ;;  %v5400_v46 = vunpack.i.l.bf16 %v5399_v60 }
 0x44f   : > { %v3790_v12 = vsel %vm1955_vm10, %v3758_v2, %v5375_v35  ;;  %v3791_v21 = vsel %vm1955_vm10, %v3759_v24, %v5376_v47  ;;  %v3697_v47 = vsel %vm1856_vm6, %v8112_v58, %v5316_v52  ;;  %v5410_v58 = vunpack.i.l.bf16 %v8292_v19 }
 0x450   : > { %v3813_v13 = vpack.c.bf16 %v3791_v21, %v3790_v12  ;;  %v3729_v2 = vsel %vm1889_vm8, %v3697_v47, %v5396_v22  ;;  %v3760_v21 = vsel %vm1922_vm9, %v3728_v9, %v5400_v46 }
 0x451   : > { %v3761_v60 = vsel %vm1922_vm9, %v3729_v2, %v5401_v63  ;;  %v3712_v8 = vsel %vm1889_vm8, %v8120_v25, %v5410_v58  ;;  %v5426_v25 = vunpack.i.h.bf16 %v8311_v7 }
 0x453   : > { %4185 = vmatmul.msk.bf16.gmra.mxu3 %vm2028_vm11, %v3813_v13  ;;  %v5411_v13 = vunpack.i.h.bf16 %v8292_v19 }
 0x454   : > { %v5389_v59 = vpop.permute.xlu1 %5388  ;;  %v8334_v23 = vpop.permute.xlu2 %5438 }
 0x455   : > { %v5391_v41 = vunpack.i.h.bf16 %v5389_v59  ;;  %v5390_v26 = vunpack.i.l.bf16 %v5389_v59  ;;  %v5414_v14 = vpop.permute.xlu0 %5413  ;;  %v3713_v48 = vsel %vm1889_vm8, %v8123_v38, %v5411_v13  ;;  %v5425_v38 = vunpack.i.l.bf16 %v8311_v7 }
 0x456   : > { %v5416_v10 = vunpack.i.h.bf16 %v5414_v14  ;;  %v5415_v34 = vunpack.i.l.bf16 %v5414_v14 }
 0x457   : > { %v3774_v30 = vsel %vm1955_vm10, %v3742_v62, %v5390_v26  ;;  %v3775_v32 = vsel %vm1955_vm10, %v3743_v39, %v5391_v41  ;;  %v5321_v62 = vunpack.i.h.bf16 %v8177_v1  ;;  %v5320_v39 = vunpack.i.l.bf16 %v8177_v1 }
 0x458   : > { %v3805_v44 = vpack.c.bf16 %v3775_v32, %v3774_v30  ;;  %v3744_v41 = vsel %vm1922_vm9, %v3712_v8, %v5415_v34  ;;  %v3745_v26 = vsel %vm1922_vm9, %v3713_v48, %v5416_v10 }
 0x459   : > { %v3698_v57 = vsel %vm1856_vm6, %v8147_v28, %v5320_v39 }
 0x45a   : > { %4177 = vmatmul.msk.bf16.gmra.mxu1 %vm2028_vm11, %v3805_v44  ;;  %v3699_v44 = vsel %vm1856_vm6, %v8151_v4, %v5321_v62  ;;  %v3730_v29 = vsel %vm1889_vm8, %v3698_v57, %v5425_v38  ;;  %v5441_v4 = vunpack.i.h.bf16 %v8334_v23 }
 0x45b   : > { %v3731_v1 = vsel %vm1889_vm8, %v3699_v44, %v5426_v25 }
 0x45c   : > { %v5404_v35 = vpop.permute.xlu1 %5403  ;;  %v5454_v37 = vpop.permute.xlu2 %5453 }
 0x45d   : > { %v5406_v24 = vunpack.i.h.bf16 %v5404_v35  ;;  %v5405_v12 = vunpack.i.l.bf16 %v5404_v35  ;;  %v5429_v43 = vpop.permute.xlu0 %5428  ;;  %v5456_v48 = vunpack.i.h.bf16 %v5454_v37 }
 0x45e   : > { %v5431_v32 = vunpack.i.h.bf16 %v5429_v43  ;;  %v5430_v52 = vunpack.i.l.bf16 %v5429_v43 }
 0x45f   : > { %v3792_v6 = vsel %vm1955_vm10, %v3760_v21, %v5405_v12  ;;  %v3793_v17 = vsel %vm1955_vm10, %v3761_v60, %v5406_v24  ;;  %v5440_v24 = vunpack.i.l.bf16 %v8334_v23 }
 0x460   : > { %v3814_v42 = vpack.c.bf16 %v3793_v17, %v3792_v6  ;;  %v3762_v7 = vsel %vm1922_vm9, %v3730_v29, %v5430_v52  ;;  %v3763_v35 = vsel %vm1922_vm9, %v3731_v1, %v5431_v32  ;;  %v3715_v6 = vsel %vm1889_vm8, %v8172_v45, %v5441_v4 }
 0x461   : > { %v3714_v60 = vsel %vm1889_vm8, %v8168_v16, %v5440_v24 }
 0x463   : > { %4186 = vmatmul.msk.bf16.gmra.mxu3 %vm2028_vm11, %v3814_v42 }
 0x464   : > { %v5419_v36 = vpop.permute.xlu1 %5418  ;;  %v5469_v63 = vpop.permute.xlu2 %5468 }
 0x465   : > { %v5421_v59 = vunpack.i.h.bf16 %v5419_v36  ;;  %v5420_v55 = vunpack.i.l.bf16 %v5419_v36  ;;  %v5444_v18 = vpop.permute.xlu0 %5443  ;;  %v5471_v38 = vunpack.i.h.bf16 %v5469_v63  ;;  %v5470_v32 = vunpack.i.l.bf16 %v5469_v63 }
 0x466   : > { %v5446_v12 = vunpack.i.h.bf16 %v5444_v18  ;;  %v5445_v43 = vunpack.i.l.bf16 %v5444_v18 }
 0x467   : > { %v3776_v19 = vsel %vm1955_vm10, %v3744_v41, %v5420_v55  ;;  %v3777_v14 = vsel %vm1955_vm10, %v3745_v26, %v5421_v59  ;;  %v5455_v59 = vunpack.i.l.bf16 %v5454_v37  ;;  %v3733_v41 = vsel %vm1889_vm8, %v8233_v54, %v5456_v48 }
 0x468   : > { %v3806_v30 = vpack.c.bf16 %v3777_v14, %v3776_v19  ;;  %v3746_v58 = vsel %vm1922_vm9, %v3714_v60, %v5445_v43  ;;  %v3747_v10 = vsel %vm1922_vm9, %v3715_v6, %v5446_v12  ;;  %v3716_v44 = vsel %vm1889_vm8, %v8205_v53, %v5470_v32 }
 0x469   : > { %v3732_v18 = vsel %vm1889_vm8, %v8229_v5, %v5455_v59 }
 0x46a   : > { %4178 = vmatmul.msk.bf16.gmra.mxu1 %vm2028_vm11, %v3806_v30 }
 0x46c   : > { %v5434_v22 = vpop.permute.xlu1 %5433  ;;  %v5484_v34 = vpop.permute.xlu2 %5483 }
 0x46d   : > { %v5436_v46 = vunpack.i.h.bf16 %v5434_v22  ;;  %v5435_v27 = vunpack.i.l.bf16 %v5434_v22  ;;  %v5459_v47 = vpop.permute.xlu0 %5458  ;;  %v3717_v22 = vsel %vm1889_vm8, %v8209_v56, %v5471_v38 }
 0x46e   : > { %v5461_v55 = vunpack.i.h.bf16 %v5459_v47  ;;  %v5460_v16 = vunpack.i.l.bf16 %v5459_v47 }
 0x46f   : > { %v3794_v9 = vsel %vm1955_vm10, %v3762_v7, %v5435_v27  ;;  %v3795_v28 = vsel %vm1955_vm10, %v3763_v35, %v5436_v46 }
 0x470   : > { %v3815_v2 = vpack.c.bf16 %v3795_v28, %v3794_v9  ;;  %v3764_v62 = vsel %vm1922_vm9, %v3732_v18, %v5460_v16  ;;  %v3765_v39 = vsel %vm1922_vm9, %v3733_v41, %v5461_v55  ;;  %v5486_v9 = vunpack.i.h.bf16 %v5484_v34 }
 0x471   : > { %v5485_v28 = vunpack.i.l.bf16 %v5484_v34 }
 0x472   : > { %v3735_v12 = vsel %vm1889_vm8, %v8256_v51, %v5486_v9 }
 0x473   : > { %4187 = vmatmul.msk.bf16.gmra.mxu3 %vm2028_vm11, %v3815_v2  ;;  %v3734_v24 = vsel %vm1889_vm8, %v8252_v11, %v5485_v28 }
 0x474   : > { %v5449_v21 = vpop.permute.xlu1 %5448  ;;  %v5499_v52 = vpop.permute.xlu2 %5498 }
 0x475   : > { %v5451_v17 = vunpack.i.h.bf16 %v5449_v21  ;;  %v5450_v42 = vunpack.i.l.bf16 %v5449_v21  ;;  %v5474_v13 = vpop.permute.xlu0 %5473  ;;  %v5500_v34 = vunpack.i.l.bf16 %v5499_v52 }
 0x476   : > { %v5476_v57 = vunpack.i.h.bf16 %v5474_v13  ;;  %v5475_v5 = vunpack.i.l.bf16 %v5474_v13 }
 0x477   : > { %v3778_v23 = vsel %vm1955_vm10, %v3746_v58, %v5450_v42  ;;  %v3779_v36 = vsel %vm1955_vm10, %v3747_v10, %v5451_v17  ;;  %v5501_v10 = vunpack.i.h.bf16 %v5499_v52  ;;  %v3718_v51 = vsel %vm1889_vm8, %v8140_v3, %v5500_v34 }
 0x478   : > { %v3807_v8 = vpack.c.bf16 %v3779_v36, %v3778_v23  ;;  %v3748_v27 = vsel %vm1922_vm9, %v3716_v44, %v5475_v5  ;;  %v3749_v47 = vsel %vm1922_vm9, %v3717_v22, %v5476_v57 }
 0x47a   : > { %4179 = vmatmul.msk.bf16.gmra.mxu1 %vm2028_vm11, %v3807_v8  ;;  %v3719_v8 = vsel %vm1889_vm8, %v8143_v50, %v5501_v10 }
 0x47c   : > { %v5464_v45 = vpop.permute.xlu1 %5463  ;;  %v5514_v53 = vpop.permute.xlu2 %5513 }
 0x47d   : > { %v5466_v26 = vunpack.i.h.bf16 %v5464_v45  ;;  %v5465_v19 = vunpack.i.l.bf16 %v5464_v45  ;;  %v5489_v14 = vpop.permute.xlu0 %5488 }
 0x47e   : > { %v5491_v2 = vunpack.i.h.bf16 %v5489_v14  ;;  %v5490_v4 = vunpack.i.l.bf16 %v5489_v14  ;;  %v5516_v14 = vunpack.i.h.bf16 %v5514_v53 }
 0x47f   : > { %v3796_v37 = vsel %vm1955_vm10, %v3764_v62, %v5465_v19  ;;  %v3797_v30 = vsel %vm1955_vm10, %v3765_v39, %v5466_v26  ;;  %v5515_v62 = vunpack.i.l.bf16 %v5514_v53 }
 0x480   : > { %v3816_v25 = vpack.c.bf16 %v3797_v30, %v3796_v37  ;;  %v3766_v6 = vsel %vm1922_vm9, %v3734_v24, %v5490_v4  ;;  %v3767_v17 = vsel %vm1922_vm9, %v3735_v12, %v5491_v2  ;;  %v3705_v30 = vsel %vm1856_vm6, %v8164_v31, %v5516_v14 }
 0x481   : > { %v3704_v37 = vsel %vm1856_vm6, %v8160_v33, %v5515_v62 }
 0x483   : > { %4188 = vmatmul.msk.bf16.gmra.mxu3 %vm2028_vm11, %v3816_v25 }
 0x484   : > { %v5479_v54 = vpop.permute.xlu1 %5478  ;;  %v5529_v48 = vpop.permute.xlu2 %5528 }
 0x485   : > { %v5481_v29 = vunpack.i.h.bf16 %v5479_v54  ;;  %v5480_v1 = vunpack.i.l.bf16 %v5479_v54  ;;  %v5504_v46 = vpop.permute.xlu0 %5503  ;;  %v5531_v32 = vunpack.i.h.bf16 %v5529_v48  ;;  %v5530_v52 = vunpack.i.l.bf16 %v5529_v48 }
 0x486   : > { %v5506_v23 = vunpack.i.h.bf16 %v5504_v46  ;;  %v5505_v36 = vunpack.i.l.bf16 %v5504_v46 }
 0x487   : > { %v3780_v63 = vsel %vm1955_vm10, %v3748_v27, %v5480_v1  ;;  %v3781_v7 = vsel %vm1955_vm10, %v3749_v47, %v5481_v29 }
 0x488   : > { %v3808_v35 = vpack.c.bf16 %v3781_v7, %v3780_v63  ;;  %v3750_v16 = vsel %vm1922_vm9, %v3718_v51, %v5505_v36  ;;  %v3751_v45 = vsel %vm1922_vm9, %v3719_v8, %v5506_v23 }
 0x48a   : > { %4180 = vmatmul.msk.bf16.gmra.mxu1 %vm2028_vm11, %v3808_v35 }
 0x48c   : > { %v5494_v56 = vpop.permute.xlu1 %5493  ;;  %v5544_v54 = vpop.permute.xlu2 %5543 }
 0x48d   : > { %v5496_v43 = vunpack.i.h.bf16 %v5494_v56  ;;  %v5495_v21 = vunpack.i.l.bf16 %v5494_v56  ;;  %v5519_v60 = vpop.permute.xlu0 %5518  ;;  %v5546_v35 = vunpack.i.h.bf16 %v5544_v54  ;;  %v5545_v9 = vunpack.i.l.bf16 %v5544_v54  ;;  %v9031_v54 = vld [vmem:[#allocation12_spill] sm:$0xff] }
 0x48e   : > { %v5521_v39 = vunpack.i.h.bf16 %v5519_v60  ;;  %v5520_v3 = vunpack.i.l.bf16 %v5519_v60 }
 0x48f   : > { %v3798_v42 = vsel %vm1955_vm10, %v3766_v6, %v5495_v21  ;;  %v3799_v13 = vsel %vm1955_vm10, %v3767_v17, %v5496_v43 }
 0x490   : > { %v3817_v58 = vpack.c.bf16 %v3799_v13, %v3798_v42  ;;  %v3736_v57 = vsel %vm1889_vm8, %v3704_v37, %v5520_v3  ;;  %v3737_v5 = vsel %vm1889_vm8, %v3705_v30, %v5521_v39 }
 0x493   : > { %4189 = vmatmul.msk.bf16.gmra.mxu3 %vm2028_vm11, %v3817_v58 }
 0x494   : > { %v5509_v11 = vpop.permute.xlu1 %5508  ;;  %v5559_v12 = vpop.permute.xlu2 %5558 }
 0x495   : > { %v5511_v59 = vunpack.i.h.bf16 %v5509_v11  ;;  %v5510_v55 = vunpack.i.l.bf16 %v5509_v11  ;;  %v5534_v18 = vpop.permute.xlu0 %5533  ;;  %v5561_v17 = vunpack.i.h.bf16 %v5559_v12 }
 0x496   : > { %v5536_v31 = vunpack.i.h.bf16 %v5534_v18  ;;  %v5535_v27 = vunpack.i.l.bf16 %v5534_v18 }
 0x497   : > { %v3782_v41 = vsel %vm1955_vm10, %v3750_v16, %v5510_v55  ;;  %v3783_v26 = vsel %vm1955_vm10, %v3751_v45, %v5511_v59 }
 0x498   : > { %v3809_v19 = vpack.c.bf16 %v3783_v26, %v3782_v41  ;;  %v3720_v28 = vsel %vm1889_vm8, %v8186_v61, %v5535_v27  ;;  %v3721_v2 = vsel %vm1889_vm8, %v8190_v15, %v5536_v31  ;;  %v5560_v61 = vunpack.i.l.bf16 %v5559_v12 }
 0x49a   : > { %4181 = vmatmul.msk.bf16.gmra.mxu1 %vm2028_vm11, %v3809_v19 }
 0x49c   : > { %v5524_v50 = vpop.permute.xlu1 %5523  ;;  %v5574_v16 = vpop.permute.xlu2 %5573 }
 0x49d   : > { %v5526_v25 = vunpack.i.h.bf16 %v5524_v50  ;;  %v5525_v38 = vunpack.i.l.bf16 %v5524_v50  ;;  %v5549_v29 = vpop.permute.xlu0 %5548  ;;  %v5576_v41 = vunpack.i.h.bf16 %v5574_v16  ;;  %v5575_v26 = vunpack.i.l.bf16 %v5574_v16 }
 0x49e   : > { %v5551_v21 = vunpack.i.h.bf16 %v5549_v29  ;;  %v5550_v60 = vunpack.i.l.bf16 %v5549_v29  ;;  %v9033_v29 = vld [vmem:[#allocation6_spill] sm:$0xff] }
 0x49f   : > { %v3768_v44 = vsel %vm1922_vm9, %v3736_v57, %v5525_v38  ;;  %v3769_v22 = vsel %vm1922_vm9, %v3737_v5, %v5526_v25  ;;  %v8464_v38 = vld [vmem:[%s8639_s4] ss:$0 sm:$0xff] }
 0x4a0   : > { %v3800_v1 = vsel %vm1955_vm10, %v3768_v44, %v5530_v52  ;;  %v3801_v33 = vsel %vm1955_vm10, %v3769_v22, %v5531_v32  ;;  %v3706_v34 = vsel %vm1856_vm6, %v8097_v0, %v5550_v60  ;;  %v3707_v23 = vsel %vm1856_vm6, %v8100_v49, %v5551_v21  ;;  %v9037_v21 = vld [vmem:[#allocation14_spill] sm:$0xff] }
 0x4a1   : > { %v3818_v46 = vpack.c.bf16 %v3801_v33, %v3800_v1  ;;  %v9032_v44 = vunpack.c.l.bf16 %v9031_v54  ;;  %v9034_v1 = vunpack.c.l.bf16 %v9033_v29  ;;  %v9038_v60 = vunpack.c.l.bf16 %v9037_v21 }
 0x4a3   : > { %4190 = vmatmul.msk.bf16.gmra.mxu3 %vm2028_vm11, %v3818_v46 }
 0x4a4   : > { %v5539_v47 = vpop.permute.xlu1 %5538 }
 0x4a5   : > { %v5541_v63 = vunpack.i.h.bf16 %v5539_v47  ;;  %v5540_v7 = vunpack.i.l.bf16 %v5539_v47  ;;  %v5564_v6 = vpop.permute.xlu0 %5563 }
 0x4a6   : > { %v5566_v13 = vunpack.i.h.bf16 %v5564_v6  ;;  %v5565_v15 = vunpack.i.l.bf16 %v5564_v6 }
 0x4a7   : > { %v3752_v4 = vsel %vm1922_vm9, %v3720_v28, %v5540_v7  ;;  %v3753_v53 = vsel %vm1922_vm9, %v3721_v2, %v5541_v63  ;;  %v9036_v28 = vunpack.c.h.bf16 %v9033_v29  ;;  %v9049_v29 = vld [vmem:[#allocation15_spill] sm:$0xff] }
 0x4a8   : > { %v3784_v56 = vsel %vm1955_vm10, %v3752_v4, %v5545_v9  ;;  %v3785_v24 = vsel %vm1955_vm10, %v3753_v53, %v5546_v35  ;;  %v9035_v35 = vunpack.c.h.bf16 %v9031_v54 }
 0x4a9   : > { %v3810_v43 = vpack.c.bf16 %v3785_v24, %v3784_v56 }
 0x4ab   : > { %4182 = vmatmul.msk.bf16.gmra.mxu1 %vm2028_vm11, %v3810_v43 }
 0x4ac   : > { %v5554_v42 = vpop.permute.xlu1 %5553 }
 0x4ad   : > { %v5556_v58 = vunpack.i.h.bf16 %v5554_v42  ;;  %v5555_v10 = vunpack.i.l.bf16 %v5554_v42  ;;  %v5579_v45 = vpop.permute.xlu0 %5578 }
 0x4ae   : > { %v5581_v19 = vunpack.i.h.bf16 %v5579_v45  ;;  %v5580_v14 = vunpack.i.l.bf16 %v5579_v45 }
 0x4af   : > { %v3738_v36 = vsel %vm1889_vm8, %v3706_v34, %v5555_v10  ;;  %v3739_v11 = vsel %vm1889_vm8, %v3707_v23, %v5556_v58 }
 0x4b0   : > { %v3770_v51 = vsel %vm1922_vm9, %v3738_v36, %v5560_v61  ;;  %v3771_v8 = vsel %vm1922_vm9, %v3739_v11, %v5561_v17  ;;  %v9039_v17 = vld [vmem:[#allocation5_spill] sm:$0xff]  ;;  %v9041_v36 = vunpack.c.h.bf16 %v9037_v21 }
 0x4b1   : > { %v3802_v48 = vsel %vm1955_vm10, %v3770_v51, %v5565_v15  ;;  %v3803_v59 = vsel %vm1955_vm10, %v3771_v8, %v5566_v13  ;;  %v9040_v61 = vunpack.c.l.bf16 %v9039_v17  ;;  %v9042_v51 = vunpack.c.h.bf16 %v9039_v17  ;;  %v9055_v17 = vld [vmem:[#allocation17_spill] sm:$0xff] }
 0x4b2   : > { %v3819_v55 = vpack.c.bf16 %v3803_v59, %v3802_v48 }
 0x4b4   : > { %v5569_v18 = vpop.permute.xlu1 %5568  ;;  %4191 = vmatmul.msk.bf16.gmra.mxu3 %vm2028_vm11, %v3819_v55 }
 0x4b5   : > { %v5571_v0 = vunpack.i.h.bf16 %v5569_v18  ;;  %v5570_v49 = vunpack.i.l.bf16 %v5569_v18 }
 0x4b7   : > { %v3722_v62 = vsel %vm1889_vm8, %v8221_v40, %v5570_v49  ;;  %v3723_v39 = vsel %vm1889_vm8, %v8225_v20, %v5571_v0  ;;  %v9043_v0 = vld [vmem:[#allocation13_spill] sm:$0xff] }
 0x4b8   : > { %v3754_v3 = vsel %vm1922_vm9, %v3722_v62, %v5575_v26  ;;  %v3755_v50 = vsel %vm1922_vm9, %v3723_v39, %v5576_v41  ;;  %v9044_v49 = vunpack.c.l.bf16 %v9043_v0  ;;  %v9045_v26 = vld [vmem:[#allocation8_spill] sm:$0xff] }
 0x4b9   : > { %v3786_v37 = vsel %vm1955_vm10, %v3754_v3, %v5580_v14  ;;  %v3787_v30 = vsel %vm1955_vm10, %v3755_v50, %v5581_v19  ;;  %v9046_v19 = vunpack.c.l.bf16 %v9045_v26 }
 0x4ba   : > { %v3811_v25 = vpack.c.bf16 %v3787_v30, %v3786_v37 }
 0x4bc   : > { %4183 = vmatmul.msk.bf16.gmra.mxu1 %vm2028_vm11, %v3811_v25  ;;  %v9047_v25 = vunpack.c.h.bf16 %v9043_v0 }
 0x4c6   : > { %v3944_v40 = vpop.f32.mrf.mxu3 }
 0x4c7   : > { %v3945_v20 = vadd.f32 %v8464_v38, %v3944_v40  ;;  %v3904_v32 = vpop.f32.mrf.mxu1 }
 0x4c8   : > { %v3905_v52 = vadd.f32 %v8464_v38, %v3904_v32 }
 0x4c9   : > { %v4000_v57 = vmax.f32 %v3945_v20, 0.0  ;;  %v9048_v20 = vunpack.c.h.bf16 %v9045_v26  ;;  %v9061_v26 = vld [vmem:[#allocation16_spill] sm:$0xff] }
 0x4ca   : > { %v3984_v5 = vmax.f32 %v3905_v52, 0.0 }
 0x4cb   : > { %v4032_v22 = vadd.f32 %v9032_v44, %v4000_v57 }
 0x4cc   : > { %v4016_v33 = vadd.f32 %v9034_v1, %v3984_v5  ;;  %v9050_v1 = vunpack.c.l.bf16 %v9049_v29 }
 0x4cd   : > { %4064 = vst.msk [vmem:[%s8472_s28 + $0x80] sm:$0xff] %vm226_vm0, %v4032_v22 }
 0x4ce   : > { %4048 = vst.msk [vmem:[%s8472_s28] sm:$0xff] %vm226_vm0, %v4016_v33  ;;  %v3946_v46 = vpop.f32.mrf.mxu3 }
 0x4cf   : > { %v3947_v31 = vadd.f32 %v8464_v38, %v3946_v46  ;;  %v3906_v27 = vpop.f32.mrf.mxu1  ;;  %v9051_v46 = vld [vmem:[#allocation4_spill] sm:$0xff] }
 0x4d0   : > { %v3907_v47 = vadd.f32 %v8464_v38, %v3906_v27 }
 0x4d1   : > { %v4001_v63 = vmax.f32 %v3947_v31, 0.0  ;;  %v9052_v31 = vunpack.c.l.bf16 %v9051_v46 }
 0x4d2   : > { %v3985_v7 = vmax.f32 %v3907_v47, 0.0 }
 0x4d3   : > { %v4033_v9 = vadd.f32 %v9035_v35, %v4001_v63 }
 0x4d4   : > { %v4017_v2 = vadd.f32 %v9036_v28, %v3985_v7 }
 0x4d5   : > { %4065 = vst.msk [vmem:[%s8472_s28 + $0x88] sm:$0xff] %vm226_vm0, %v4033_v9 }
 0x4d6   : > { %4049 = vst.msk [vmem:[%s8472_s28 + $0x8] sm:$0xff] %vm226_vm0, %v4017_v2  ;;  %v3949_v4 = vpop.f32.mrf.mxu3  ;;  %v9053_v2 = vunpack.c.h.bf16 %v9049_v29 }
 0x4d7   : > { %v3950_v53 = vadd.f32 %v8464_v38, %v3949_v4  ;;  %v3909_v56 = vpop.f32.mrf.mxu1 }
 0x4d8   : > { %v3910_v24 = vadd.f32 %v8464_v38, %v3909_v56 }
 0x4d9   : > { %v4002_v12 = vmax.f32 %v3950_v53, 0.0  ;;  %v9054_v53 = vunpack.c.h.bf16 %v9051_v46 }
 0x4da   : > { %v3986_v43 = vmax.f32 %v3910_v24, 0.0 }
 0x4db   : > { %v4034_v6 = vadd.f32 %v9038_v60, %v4002_v12 }
 0x4dc   : > { %v4018_v42 = vadd.f32 %v9040_v61, %v3986_v43  ;;  %v9056_v61 = vunpack.c.l.bf16 %v9055_v17 }
 0x4dd   : > { %4066 = vst.msk [vmem:[%s8472_s28 + $0x90] sm:$0xff] %vm226_vm0, %v4034_v6 }
 0x4de   : > { %4050 = vst.msk [vmem:[%s8472_s28 + $0x10] sm:$0xff] %vm226_vm0, %v4018_v42  ;;  %v3951_v13 = vpop.f32.mrf.mxu3 }
 0x4df   : > { %v3952_v15 = vadd.f32 %v8464_v38, %v3951_v13  ;;  %v3911_v58 = vpop.f32.mrf.mxu1  ;;  %v9057_v13 = vld [vmem:[#allocation7_spill] sm:$0xff] }
 0x4e0   : > { %v3912_v10 = vadd.f32 %v8464_v38, %v3911_v58 }
 0x4e1   : > { %v4003_v34 = vmax.f32 %v3952_v15, 0.0  ;;  %v9058_v15 = vunpack.c.l.bf16 %v9057_v13 }
 0x4e2   : > { %v3987_v23 = vmax.f32 %v3912_v10, 0.0 }
 0x4e3   : > { %v4035_v11 = vadd.f32 %v9041_v36, %v4003_v34 }
 0x4e4   : > { %v4019_v8 = vadd.f32 %v9042_v51, %v3987_v23 }
 0x4e5   : > { %4067 = vst.msk [vmem:[%s8472_s28 + $0x98] sm:$0xff] %vm226_vm0, %v4035_v11 }
 0x4e6   : > { %4051 = vst.msk [vmem:[%s8472_s28 + $0x18] sm:$0xff] %vm226_vm0, %v4019_v8  ;;  %v3954_v48 = vpop.f32.mrf.mxu3  ;;  %v9059_v8 = vunpack.c.h.bf16 %v9055_v17 }
 0x4e7   : > { %v3955_v59 = vadd.f32 %v8464_v38, %v3954_v48  ;;  %v3914_v55 = vpop.f32.mrf.mxu1 }
 0x4e8   : > { %v3915_v16 = vadd.f32 %v8464_v38, %v3914_v55 }
 0x4e9   : > { %v4004_v45 = vmax.f32 %v3955_v59, 0.0  ;;  %v9060_v59 = vunpack.c.h.bf16 %v9057_v13 }
 0x4ea   : > { %v3988_v18 = vmax.f32 %v3915_v16, 0.0 }
 0x4eb   : > { %v4036_v41 = vadd.f32 %v9044_v49, %v4004_v45 }
 0x4ec   : > { %v4020_v14 = vadd.f32 %v9046_v19, %v3988_v18  ;;  %v9062_v19 = vunpack.c.l.bf16 %v9061_v26 }
 0x4ed   : > { %4068 = vst.msk [vmem:[%s8472_s28 + $0xa0] sm:$0xff] %vm226_vm0, %v4036_v41 }
 0x4ee   : > { %4052 = vst.msk [vmem:[%s8472_s28 + $0x20] sm:$0xff] %vm226_vm0, %v4020_v14  ;;  %v3956_v62 = vpop.f32.mrf.mxu3 }
 0x4ef   : > { %v3957_v39 = vadd.f32 %v8464_v38, %v3956_v62  ;;  %v3916_v3 = vpop.f32.mrf.mxu1  ;;  %v9063_v62 = vld [vmem:[#allocation9_spill] sm:$0xff] }
 0x4f0   : > { %v3917_v50 = vadd.f32 %v8464_v38, %v3916_v3 }
 0x4f1   : > { %v4005_v37 = vmax.f32 %v3957_v39, 0.0  ;;  %v9064_v39 = vunpack.c.l.bf16 %v9063_v62 }
 0x4f2   : > { %v3989_v30 = vmax.f32 %v3917_v50, 0.0 }
 0x4f3   : > { %v4037_v40 = vadd.f32 %v9047_v25, %v4005_v37 }
 0x4f4   : > { %v4021_v32 = vadd.f32 %v9048_v20, %v3989_v30 }
 0x4f5   : > { %4069 = vst.msk [vmem:[%s8472_s28 + $0xa8] sm:$0xff] %vm226_vm0, %v4037_v40 }
 0x4f6   : > { %4053 = vst.msk [vmem:[%s8472_s28 + $0x28] sm:$0xff] %vm226_vm0, %v4021_v32  ;;  %v3959_v52 = vpop.f32.mrf.mxu3  ;;  %v9065_v32 = vunpack.c.h.bf16 %v9061_v26 }
 0x4f7   : > { %v3960_v57 = vadd.f32 %v8464_v38, %v3959_v52  ;;  %v3919_v5 = vpop.f32.mrf.mxu1 }
 0x4f8   : > { %v3920_v54 = vadd.f32 %v8464_v38, %v3919_v5 }
 0x4f9   : > { %v4006_v44 = vmax.f32 %v3960_v57, 0.0  ;;  %v9066_v57 = vunpack.c.h.bf16 %v9063_v62 }
 0x4fa   : > { %v3990_v22 = vmax.f32 %v3920_v54, 0.0 }
 0x4fb   : > { %v4038_v33 = vadd.f32 %v9050_v1, %v4006_v44 }
 0x4fc   : > { %v4022_v27 = vadd.f32 %v9052_v31, %v3990_v22 }
 0x4fd   : > { %4070 = vst.msk [vmem:[%s8472_s28 + $0xb0] sm:$0xff] %vm226_vm0, %v4038_v33  ;;  %v9067_v33 = vld [vmem:[#allocation18_spill] sm:$0xff] }
 0x4fe   : > { %4054 = vst.msk [vmem:[%s8472_s28 + $0x30] sm:$0xff] %vm226_vm0, %v4022_v27  ;;  %v3961_v47 = vpop.f32.mrf.mxu3  ;;  %v9068_v46 = vunpack.c.l.bf16 %v9067_v33 }
 0x4ff   : > { %v3962_v63 = vadd.f32 %v8464_v38, %v3961_v47  ;;  %v3921_v7 = vpop.f32.mrf.mxu1  ;;  %v9069_v47 = vld [vmem:[#allocation11_spill] sm:$0xff] }
 0x500   : > { %v3922_v35 = vadd.f32 %v8464_v38, %v3921_v7 }
 0x501   : > { %v4007_v9 = vmax.f32 %v3962_v63, 0.0  ;;  %v9070_v63 = vunpack.c.l.bf16 %v9069_v47 }
 0x502   : > { %v3991_v28 = vmax.f32 %v3922_v35, 0.0 }
 0x503   : > { %v4039_v4 = vadd.f32 %v9053_v2, %v4007_v9 }
 0x504   : > { %v4023_v56 = vadd.f32 %v9054_v53, %v3991_v28  ;;  %v9071_v53 = vunpack.c.h.bf16 %v9067_v33 }
 0x505   : > { %4071 = vst.msk [vmem:[%s8472_s28 + $0xb8] sm:$0xff] %vm226_vm0, %v4039_v4 }
 0x506   : > { %4055 = vst.msk [vmem:[%s8472_s28 + $0x38] sm:$0xff] %vm226_vm0, %v4023_v56  ;;  %v3964_v24 = vpop.f32.mrf.mxu3 }
 0x507   : > { %v3965_v12 = vadd.f32 %v8464_v38, %v3964_v24  ;;  %v3924_v43 = vpop.f32.mrf.mxu1 }
 0x508   : > { %v3925_v21 = vadd.f32 %v8464_v38, %v3924_v43 }
 0x509   : > { %v4008_v60 = vmax.f32 %v3965_v12, 0.0  ;;  %v9072_v12 = vunpack.c.h.bf16 %v9069_v47 }
 0x50a   : > { %v3992_v6 = vmax.f32 %v3925_v21, 0.0 }
 0x50b   : > { %v4040_v42 = vadd.f32 %v9056_v61, %v4008_v60 }
 0x50c   : > { %v4024_v58 = vadd.f32 %v9058_v15, %v3992_v6 }
 0x50d   : > { %4072 = vst.msk [vmem:[%s8472_s28 + $0xc0] sm:$0xff] %vm226_vm0, %v4040_v42  ;;  %v9073_v42 = vld [vmem:[#allocation23_spill] sm:$0xff] }
 0x50e   : > { %4056 = vst.msk [vmem:[%s8472_s28 + $0x40] sm:$0xff] %vm226_vm0, %v4024_v58  ;;  %v3966_v10 = vpop.f32.mrf.mxu3  ;;  %v9074_v13 = vunpack.c.l.bf16 %v9073_v42 }
 0x50f   : > { %v3967_v34 = vadd.f32 %v8464_v38, %v3966_v10  ;;  %v3926_v23 = vpop.f32.mrf.mxu1  ;;  %v9075_v10 = vld [vmem:[#allocation10_spill] sm:$0xff] }
 0x510   : > { %v3927_v36 = vadd.f32 %v8464_v38, %v3926_v23 }
 0x511   : > { %v4009_v11 = vmax.f32 %v3967_v34, 0.0  ;;  %v9076_v34 = vunpack.c.l.bf16 %v9075_v10 }
 0x512   : > { %v3993_v51 = vmax.f32 %v3927_v36, 0.0 }
 0x513   : > { %v4041_v48 = vadd.f32 %v9059_v8, %v4009_v11 }
 0x514   : > { %v4025_v55 = vadd.f32 %v9060_v59, %v3993_v51  ;;  %v9077_v59 = vunpack.c.h.bf16 %v9073_v42 }
 0x515   : > { %4073 = vst.msk [vmem:[%s8472_s28 + $0xc8] sm:$0xff] %vm226_vm0, %v4041_v48 }
 0x516   : > { %4057 = vst.msk [vmem:[%s8472_s28 + $0x48] sm:$0xff] %vm226_vm0, %v4025_v55  ;;  %v3969_v16 = vpop.f32.mrf.mxu3 }
 0x517   : > { %v3970_v45 = vadd.f32 %v8464_v38, %v3969_v16  ;;  %v3929_v18 = vpop.f32.mrf.mxu1 }
 0x518   : > { %v3930_v0 = vadd.f32 %v8464_v38, %v3929_v18 }
 0x519   : > { %v4010_v49 = vmax.f32 %v3970_v45, 0.0  ;;  %v9078_v45 = vunpack.c.h.bf16 %v9075_v10 }
 0x51a   : > { %v3994_v41 = vmax.f32 %v3930_v0, 0.0 }
 0x51b   : > { %v4042_v14 = vadd.f32 %v9062_v19, %v4010_v49 }
 0x51c   : > { %v4026_v3 = vadd.f32 %v9064_v39, %v3994_v41 }
 0x51d   : > { %4074 = vst.msk [vmem:[%s8472_s28 + $0xd0] sm:$0xff] %vm226_vm0, %v4042_v14 }
 0x51e   : > { %4058 = vst.msk [vmem:[%s8472_s28 + $0x50] sm:$0xff] %vm226_vm0, %v4026_v3  ;;  %v3971_v50 = vpop.f32.mrf.mxu3 }
 0x51f   : > { %v3972_v37 = vadd.f32 %v8464_v38, %v3971_v50  ;;  %v3931_v30 = vpop.f32.mrf.mxu1 }
 0x520   : > { %v3932_v25 = vadd.f32 %v8464_v38, %v3931_v30 }
 0x521   : > { %v4011_v40 = vmax.f32 %v3972_v37, 0.0 }
 0x522   : > { %v3995_v20 = vmax.f32 %v3932_v25, 0.0 }
 0x523   : > { %v4043_v52 = vadd.f32 %v9065_v32, %v4011_v40 }
 0x524   : > { %v4027_v5 = vadd.f32 %v9066_v57, %v3995_v20 }
 0x525   : > { %4075 = vst.msk [vmem:[%s8472_s28 + $0xd8] sm:$0xff] %vm226_vm0, %v4043_v52 }
 0x526   : > { %4059 = vst.msk [vmem:[%s8472_s28 + $0x58] sm:$0xff] %vm226_vm0, %v4027_v5  ;;  %v3974_v54 = vpop.f32.mrf.mxu3 }
 0x527   : > { %v3975_v44 = vadd.f32 %v8464_v38, %v3974_v54 }
 0x528   : > { %v3934_v22 = vpop.f32.mrf.mxu1 }
 0x529   : > { %v4012_v29 = vmax.f32 %v3975_v44, 0.0  ;;  %v3935_v1 = vadd.f32 %v8464_v38, %v3934_v22 }
 0x52b   : > { %v4044_v31 = vadd.f32 %v9068_v46, %v4012_v29  ;;  %v3996_v27 = vmax.f32 %v3935_v1, 0.0 }
 0x52d   : > { %4076 = vst.msk [vmem:[%s8472_s28 + $0xe0] sm:$0xff] %vm226_vm0, %v4044_v31  ;;  %v4028_v7 = vadd.f32 %v9070_v63, %v3996_v27 }
 0x52e   : > { %v3976_v35 = vpop.f32.mrf.mxu3 }
 0x52f   : > { %4060 = vst.msk [vmem:[%s8472_s28 + $0x60] sm:$0xff] %vm226_vm0, %v4028_v7  ;;  %v3977_v9 = vadd.f32 %v8464_v38, %v3976_v35 }
 0x530   : > { %v3936_v28 = vpop.f32.mrf.mxu1 }
 0x531   : > { %v4013_v2 = vmax.f32 %v3977_v9, 0.0  ;;  %v3937_v4 = vadd.f32 %v8464_v38, %v3936_v28 }
 0x533   : > { %v4045_v56 = vadd.f32 %v9071_v53, %v4013_v2  ;;  %v3997_v24 = vmax.f32 %v3937_v4, 0.0 }
 0x535   : > { %4077 = vst.msk [vmem:[%s8472_s28 + $0xe8] sm:$0xff] %vm226_vm0, %v4045_v56  ;;  %v4029_v43 = vadd.f32 %v9072_v12, %v3997_v24 }
 0x537   : > { %4061 = vst.msk [vmem:[%s8472_s28 + $0x68] sm:$0xff] %vm226_vm0, %v4029_v43  ;;  %v3979_v21 = vpop.f32.mrf.mxu3 }
 0x538   : > { %v3980_v60 = vadd.f32 %v8464_v38, %v3979_v21 }
 0x539   : > { %v3939_v6 = vpop.f32.mrf.mxu1 }
 0x53a   : > { %v4014_v17 = vmax.f32 %v3980_v60, 0.0  ;;  %v3940_v61 = vadd.f32 %v8464_v38, %v3939_v6 }
 0x53c   : > { %v4046_v15 = vadd.f32 %v9074_v13, %v4014_v17  ;;  %v3998_v58 = vmax.f32 %v3940_v61, 0.0 }
 0x53e   : > { %4078 = vst.msk [vmem:[%s8472_s28 + $0xf0] sm:$0xff] %vm226_vm0, %v4046_v15  ;;  %v4030_v23 = vadd.f32 %v9076_v34, %v3998_v58 }
 0x53f   : > { %v3981_v36 = vpop.f32.mrf.mxu3 }
 0x540   : > { %4062 = vst.msk [vmem:[%s8472_s28 + $0x70] sm:$0xff] %vm226_vm0, %v4030_v23  ;;  %v3982_v11 = vadd.f32 %v8464_v38, %v3981_v36 }
 0x541   : > { %v3941_v51 = vpop.f32.mrf.mxu1 }
 0x542   : > { %v4015_v8 = vmax.f32 %v3982_v11, 0.0  ;;  %v3942_v48 = vadd.f32 %v8464_v38, %v3941_v51 }
 0x544   : > { %v4047_v55 = vadd.f32 %v9077_v59, %v4015_v8  ;;  %v3999_v16 = vmax.f32 %v3942_v48, 0.0 }
 0x546   : > { %4079 = vst.msk [vmem:[%s8472_s28 + $0xf8] sm:$0xff] %vm226_vm0, %v4047_v55  ;;  %v4031_v18 = vadd.f32 %v9078_v45, %v3999_v16 }
 0x548   : > { %4063 = vst.msk [vmem:[%s8472_s28 + $0x78] sm:$0xff] %vm226_vm0, %v4031_v18 }
 0x549 PF: > { %s15_s18 = sadd.s32 1, %s5598_s18  }
 0x54a   : > { %p12_p4 = scmp.ge.s32.totalorder %s15_s18, 4  }
 0x54c   :  { %14 = sbr.rel (!%p12_p4) target bundleno = 1 (0x1), region = 76 }

</bundles_post_ra>
